<compile_context>
chip_gen: v7x
topology: tpu7x:2x2x1
jax: 0.10.0
libtpu: 0.0.40
codegen_flags: <defaults>
</compile_context>

<pallas_src>
import math
from functools import partial

import jax
import jax.numpy as jnp
from jax.experimental import pallas as pl
from jax.experimental.pallas import tpu as pltpu

N_LAYERS = 6  # head0, rb1c1, rb1c2, rb2c1, rb2c2, tail


# ----------------------------------------------------------------------------
# Fused Pallas kernel: full per-sample head + tail conv stack in VMEM,
# channel-major (C, H*W) activations.
# ----------------------------------------------------------------------------
def _ipt_fused_kernel(labels_ref, x_ref, w_ref, b_ref, out_ref, patches_ref, *,
                      H, W, C, n_colors):
    # labels_ref  : SMEM (B,) int32                  (scalar prefetch)
    # x_ref       : VMEM (1, n_colors, H*W)   bf16   (raw NCHW-flattened input)
    # w_ref       : VMEM (n_tasks*6, C, 9*C)  bf16   (resident: constant index_map)
    # b_ref       : VMEM (n_tasks*6, C, 1)    f32
    # out_ref     : VMEM (1, n_colors, H*W)   f32    (lane-dense, NCHW-flattened)
    # patches_ref : VMEM (9*C, H*W)           bf16   (im2col scratch, reused x6)
    b = pl.program_id(0)
    lab = labels_ref[b]
    HW = H * W

    # Hoisted (computed once per sample): column-boundary masks and zero pad.
    col = jax.lax.broadcasted_iota(jnp.int32, (C, HW), 1) % W
    mask_l = (col >= 1).astype(jnp.bfloat16)          # for dw == 0 (reads w-1)
    mask_r = (col <= W - 2).astype(jnp.bfloat16)      # for dw == 2 (reads w+1)
    zpad = jnp.zeros((C, W + 1), jnp.bfloat16)        # absorbs all row (dh) shifts

    def conv3x3(act_bf, layer_idx):
        # act_bf: (C, HW) bf16 channel-major  ->  (C, HW) f32  (3x3 conv + bias)
        # Linear lane padding: apad[:, W+1+i] = act[:, i]; pad regions are zero,
        # so any read that falls off the top/bottom row lands in zeros.
        apad = jnp.concatenate([zpad, act_bf, zpad], axis=1)   # (C, HW + 2W + 2)
        for o in range(9):
            dh, dw = o // 3, o % 3
            start = dh * W + dw                                # == (W+1) + delta
            slab = apad[:, start:start + HW]                   # (C, HW)
            if dw == 0:
                slab = slab * mask_l                           # zero column-wrap reads
            elif dw == 2:
                slab = slab * mask_r
            patches_ref[o * C:(o + 1) * C, :] = slab           # aligned 32-row store
        idx = lab * N_LAYERS + layer_idx
        acc = jnp.dot(w_ref[idx], patches_ref[...],            # (C,9C)@(9C,HW)
                      preferred_element_type=jnp.float32)
        return acc + b_ref[idx]                                # (C, HW) f32

    # Head input: pad channels n_colors -> C once, in VMEM (zero rows keep the
    # padded im2col rows exactly zero; padded weight columns are zero too).
    # TODO(synk): optional compact-head packing (K = 9*n_colors) would shave
    # ~1/6 of the patch-build work; skipped to keep stores tile-aligned.
    x0 = jnp.concatenate(
        [x_ref[0], jnp.zeros((C - n_colors, HW), jnp.bfloat16)], axis=0)

    # head[label]: conv -> ResBlock -> ResBlock   (res_scale == 1)
    y = conv3x3(x0, 0)
    t = jnp.maximum(conv3x3(y.astype(jnp.bfloat16), 1), 0.0)
    y = conv3x3(t.astype(jnp.bfloat16), 2) + y
    t = jnp.maximum(conv3x3(y.astype(jnp.bfloat16), 3), 0.0)
    y = conv3x3(t.astype(jnp.bfloat16), 4) + y
    # image_decodings stubbed to zero  =>  res = head_out = y
    # tail[label]: Upsampler(scale=1) == identity, then conv(n_feats -> n_colors)
    tail = conv3x3(y.astype(jnp.bfloat16), 5)                  # (C, HW) f32
    out_ref[0] = tail[:n_colors, :].astype(out_ref.dtype)      # (n_colors, HW), NCHW order


# ----------------------------------------------------------------------------
# Wrapper (single fused pallas_call over the batch).
# ----------------------------------------------------------------------------
def ipt_forward(x_nchw, params, labels, w_packed, b_packed, *, n_feats, n_colors):
    B, _, H, W = x_nchw.shape
    C = n_feats
    HW = H * W
    n_tasks = w_packed.shape[0] // N_LAYERS

    # Raw NCHW-flattened input in bf16: no transpose, no channel padding here.
    x = x_nchw.reshape(B, n_colors, HW).astype(jnp.bfloat16)

    # Clamp labels: out-of-range labels would silently read adjacent weights.
    labels = jnp.clip(labels.astype(jnp.int32), 0, n_tasks - 1)

    kernel = partial(_ipt_fused_kernel, H=H, W=W, C=C, n_colors=n_colors)
    out_flat = pl.pallas_call(
        kernel,
        out_shape=jax.ShapeDtypeStruct((B, n_colors, HW), jnp.float32),
        grid_spec=pltpu.PrefetchScalarGridSpec(
            num_scalar_prefetch=1,
            grid=(B,),
            in_specs=[
                pl.BlockSpec((1, n_colors, HW), lambda b, lab: (b, 0, 0)),
                # Full weight/bias stacks: constant block index -> stay resident
                # in VMEM across the whole batch loop (no per-sample weight DMA).
                pl.BlockSpec(w_packed.shape, lambda b, lab: (0, 0, 0)),
                pl.BlockSpec(b_packed.shape, lambda b, lab: (0, 0, 0)),
            ],
            out_specs=pl.BlockSpec((1, n_colors, HW), lambda b, lab: (b, 0, 0)),
            # Persistent im2col scratch, reused by all 6 layers of every sample.
            scratch_shapes=[pltpu.VMEM((9 * C, HW), jnp.bfloat16)],
        ),
        compiler_params=pltpu.CompilerParams(
            dimension_semantics=("parallel",)),   # megacore-shard batch on v7x
        # TODO(synk): for large images add an H row-strip grid axis (+1-row
        # halo) and raise vmem_limit_bytes (v7x: 64 MiB physical, 32 MiB
        # scoped default).  At 16x16 the fused buffers use < 2 MiB.
    )(labels, x, w_packed, b_packed)

    # TODO(synk): ImageEncoderViT / PromptEncoder / ImageDecoder are external
    # modules whose definitions are not part of the reference source; stubbed
    # here (zero decoder contribution and zero ssim prediction).
    _ = params
    ssim_pred = jnp.zeros((B, 1), jnp.float32)

    tail_out = out_flat.reshape(B, n_colors, H, W)        # already NCHW; reshape is free
    return tail_out, ssim_pred


# ----------------------------------------------------------------------------
# Parameter construction (deterministic, PyTorch-Conv2d-style uniform init)
# and channel-major packing for the fused kernel.
# ----------------------------------------------------------------------------
_LAYERS = lambda n_colors, n_feats: [
    ("head0", n_colors, n_feats),   # head: conv(n_colors -> n_feats)
    ("rb1c1", n_feats, n_feats),    # ResBlock 1 conv1 (ReLU)
    ("rb1c2", n_feats, n_feats),    # ResBlock 1 conv2 (+x)
    ("rb2c1", n_feats, n_feats),    # ResBlock 2 conv1 (ReLU)
    ("rb2c2", n_feats, n_feats),    # ResBlock 2 conv2 (+x)
    ("tail",  n_feats, n_colors),   # tail: conv(n_feats -> n_colors)
]


def init_weights(key, n_tasks, n_colors, n_feats):
    def conv_init(k, cin, cout):
        kw_, kb_ = jax.random.split(k)
        bound = 1.0 / math.sqrt(cin * 9)
        w = jax.random.uniform(kw_, (3, 3, cin, cout), jnp.float32, -bound, bound)
        b = jax.random.uniform(kb_, (1, cout), jnp.float32, -bound, bound)
        return w, b

    wts = {}
    for idx, (name, cin, cout) in enumerate(_LAYERS(n_colors, n_feats)):
        ws, bs = [], []
        for t in range(n_tasks):
            k = jax.random.fold_in(key, idx * 16 + t)
            w, b = conv_init(k, cin, cout)
            ws.append(w)
            bs.append(b)
        wts[name + "_w"] = jnp.stack(ws)      # (n_tasks, 3, 3, cin, cout)
        wts[name + "_b"] = jnp.stack(bs)      # (n_tasks, 1, cout)
    return wts


def pack_weights(wts, n_tasks, n_colors, n_feats):
    """Zero-pad cin/cout to n_feats, transpose to channel-major im2col form
    (C_out, 9*C) with contraction rows ordered (offset-major, then channel)."""
    C = n_feats
    w_list, b_list = [], []
    for t in range(n_tasks):
        for (name, cin, cout) in _LAYERS(n_colors, n_feats):
            w = wts[name + "_w"][t]                                   # (3,3,cin,cout) HWIO
            b = wts[name + "_b"][t]                                   # (1,cout)
            w = jnp.pad(w, ((0, 0), (0, 0), (0, C - cin), (0, C - cout)))
            b = jnp.pad(b, ((0, 0), (0, C - cout)))
            w = jnp.transpose(w, (3, 0, 1, 2)).reshape(C, 9 * C)      # [m, o*C + c]
            w_list.append(w)
            b_list.append(b.reshape(C, 1))
    w_packed = jnp.stack(w_list).astype(jnp.bfloat16)                 # (n_tasks*6, C, 9C)
    b_packed = jnp.stack(b_list).astype(jnp.float32)                  # (n_tasks*6, C, 1)
    return w_packed, b_packed


# ----------------------------------------------------------------------------
# Pure-JAX f32 reference of the conv stack (decoder stubbed to zero).
# ----------------------------------------------------------------------------
def ipt_forward_ref(x_nchw, labels, wts):
    def conv(x, w, b):
        y = jax.lax.conv_general_dilated(
            x, w, window_strides=(1, 1), padding="SAME",
            dimension_numbers=("NHWC", "HWIO", "NHWC"))
        return y + b.reshape(1, 1, 1, -1)

    x = jnp.transpose(x_nchw, (0, 2, 3, 1))
    outs = []
    for i in range(x.shape[0]):
        t = int(labels[i])
        xi = x[i:i + 1]
        h = conv(xi, wts["head0_w"][t], wts["head0_b"][t])
        r = jax.nn.relu(conv(h, wts["rb1c1_w"][t], wts["rb1c1_b"][t]))
        h = conv(r, wts["rb1c2_w"][t], wts["rb1c2_b"][t]) + h
        r = jax.nn.relu(conv(h, wts["rb2c1_w"][t], wts["rb2c1_b"][t]))
        h = conv(r, wts["rb2c2_w"][t], wts["rb2c2_b"][t]) + h
        outs.append(conv(h, wts["tail_w"][t], wts["tail_b"][t]))
    out = jnp.concatenate(outs, axis=0)
    return jnp.transpose(out, (0, 3, 1, 2))


if __name__ == "__main__":
    key = jax.random.PRNGKey(0)
    k_x, k_p, k_w = jax.random.split(key, 3)

    B, n_colors, H, W = 2, 3, 16, 16
    n_feats = 32
    scale = [1, 1]                               # two tasks, both scale 1 (identity Upsampler)
    n_tasks = len(scale)

    x = jax.random.normal(k_x, (B, n_colors, H, W), jnp.float32)  # NCHW, like PyTorch
    params = jax.random.normal(k_p, (B, 4), jnp.float32)          # prompt params (stub consumer)
    labels = jnp.array([0, 1], dtype=jnp.int32)                   # per-sample task id

    wts = init_weights(k_w, n_tasks, n_colors, n_feats)
    w_packed, b_packed = pack_weights(wts, n_tasks, n_colors, n_feats)

    tail_out, ssim_pred = ipt_forward(x, params, labels, w_packed, b_packed,
                                      n_feats=n_feats, n_colors=n_colors)
    jax.block_until_ready((tail_out, ssim_pred))

    assert tail_out.shape == (B, n_colors, H, W)
    assert ssim_pred.shape == (B, 1)

    # Correctness vs f32 reference (bf16 MXU path -> loose tolerance).
    ref = ipt_forward_ref(x, labels, wts)
    err = float(jnp.max(jnp.abs(tail_out - ref)))
    assert err < 5e-2, f"max abs err {err}"

    print("KERNEL_OK")
</pallas_src>

<mosaic_0001>
module attributes {stable_mosaic.version = 11 : i64} {
  func.func @_ipt_fused_kernel(%arg0: i32, %arg1: memref<2xi32, #tpu.memory_space<smem>>, %arg2: memref<1x3x256xbf16, #tpu.memory_space<vmem>>, %arg3: memref<12x32x288xbf16, #tpu.memory_space<vmem>>, %arg4: memref<12x32x1xf32, #tpu.memory_space<vmem>>, %arg5: memref<1x3x256xf32, #tpu.memory_space<vmem>>, %arg6: memref<288x256xbf16, #tpu.memory_space<vmem>>) attributes {dimension_semantics = [#tpu.dimension_semantics<parallel>], iteration_bounds = array<i64: 2>, scalar_prefetch = 1 : i64, scratch_operands = 1 : i64, tpu.core_type = #tpu.core_type<tc>, window_params = [{transform_indices = @transform_0, window_bounds = array<i64: 1, 3, 256>}, {pipeline_mode = #tpu.pipeline_mode<synchronous>, transform_indices = @transform_1, window_bounds = array<i64: 12, 32, 288>}, {pipeline_mode = #tpu.pipeline_mode<synchronous>, transform_indices = @transform_2, window_bounds = array<i64: 12, 32, 1>}, {transform_indices = @transform_3, window_bounds = array<i64: 1, 3, 256>}]} {
    %0 = arith.index_cast %arg0 : i32 to index
    %1 = memref.load %arg1[%0] : memref<2xi32, #tpu.memory_space<smem>>
    %2 = tpu.iota {dimensions = array<i32: 1>} : vector<32x256xi32>
    %c16_i32 = arith.constant 16 : i32
    %c0_i32 = arith.constant 0 : i32
    %3 = arith.cmpi eq, %c16_i32, %c0_i32 : i32
    %c1_i32 = arith.constant 1 : i32
    %4 = arith.select %3, %c1_i32, %c16_i32 : i32
    %5 = vector.broadcast %4 : i32 to vector<32x256xi32>
    %6 = arith.remsi %2, %5 : vector<32x256xi32>
    %c0_i32_0 = arith.constant 0 : i32
    %7 = vector.broadcast %c0_i32_0 : i32 to vector<32x256xi32>
    %8 = arith.cmpi ne, %6, %7 : vector<32x256xi32>
    %c0_i32_1 = arith.constant 0 : i32
    %9 = vector.broadcast %c0_i32_1 : i32 to vector<32x256xi32>
    %10 = arith.cmpi slt, %6, %9 : vector<32x256xi32>
    %c0_i32_2 = arith.constant 0 : i32
    %11 = arith.cmpi slt, %4, %c0_i32_2 : i32
    %12 = vector.broadcast %11 : i1 to vector<32x256xi1>
    %13 = vector.broadcast %12 : vector<32x256xi1> to vector<32x256xi1>
    %14 = arith.xori %10, %13 : vector<32x256xi1>
    %15 = arith.andi %14, %8 : vector<32x256xi1>
    %16 = vector.broadcast %4 : i32 to vector<32x256xi32>
    %17 = arith.addi %6, %16 : vector<32x256xi32>
    %18 = arith.select %15, %17, %6 : vector<32x256xi1>, vector<32x256xi32>
    %c1_i32_3 = arith.constant 1 : i32
    %19 = vector.broadcast %c1_i32_3 : i32 to vector<32x256xi32>
    %20 = arith.cmpi sge, %18, %19 : vector<32x256xi32>
    %21 = arith.extui %20 : vector<32x256xi1> to vector<32x256xi32>
    %22 = arith.sitofp %21 : vector<32x256xi32> to vector<32x256xf32>
    %23 = arith.truncf %22 : vector<32x256xf32> to vector<32x256xbf16>
    %c14_i32 = arith.constant 14 : i32
    %24 = vector.broadcast %c14_i32 : i32 to vector<32x256xi32>
    %25 = arith.cmpi sle, %18, %24 : vector<32x256xi32>
    %26 = arith.extui %25 : vector<32x256xi1> to vector<32x256xi32>
    %27 = arith.sitofp %26 : vector<32x256xi32> to vector<32x256xf32>
    %28 = arith.truncf %27 : vector<32x256xf32> to vector<32x256xbf16>
    %cst = arith.constant 0.000000e+00 : bf16
    %29 = vector.broadcast %cst : bf16 to vector<32x17xbf16>
    %c0 = arith.constant 0 : index
    %c0_4 = arith.constant 0 : index
    %c0_5 = arith.constant 0 : index
    %30 = vector.load %arg2[%c0, %c0_4, %c0_5] : memref<1x3x256xbf16, #tpu.memory_space<vmem>>, vector<1x3x256xbf16>
    %31 = vector.shape_cast %30 : vector<1x3x256xbf16> to vector<3x256xbf16>
    %cst_6 = arith.constant 0.000000e+00 : bf16
    %32 = vector.broadcast %cst_6 : bf16 to vector<29x256xbf16>
    %33 = tpu.concatenate %31, %32 in 0 : vector<3x256xbf16>, vector<29x256xbf16> -> vector<32x256xbf16>
    %34 = tpu.concatenate %29, %33, %29 in 1 : vector<32x17xbf16>, vector<32x256xbf16>, vector<32x17xbf16> -> vector<32x290xbf16>
    %35 = vector.extract_strided_slice %34 {offsets = [0, 0], sizes = [32, 256], strides = [1, 1]} : vector<32x290xbf16> to vector<32x256xbf16>
    %36 = arith.mulf %35, %23 : vector<32x256xbf16>
    %c0_7 = arith.constant 0 : index
    %c0_8 = arith.constant 0 : index
    %37 = vector.load %arg6[%c0_7, %c0_8] : memref<288x256xbf16, #tpu.memory_space<vmem>>, vector<32x256xbf16>
    tpu.vector_store %arg6[%c0_7, %c0_8], %36 {strides = array<i32>} : memref<288x256xbf16, #tpu.memory_space<vmem>>, vector<32x256xbf16>,
    %38 = vector.extract_strided_slice %34 {offsets = [0, 1], sizes = [32, 256], strides = [1, 1]} : vector<32x290xbf16> to vector<32x256xbf16>
    %c32 = arith.constant 32 : index
    %c0_9 = arith.constant 0 : index
    %39 = vector.load %arg6[%c32, %c0_9] : memref<288x256xbf16, #tpu.memory_space<vmem>>, vector<32x256xbf16>
    tpu.vector_store %arg6[%c32, %c0_9], %38 {strides = array<i32>} : memref<288x256xbf16, #tpu.memory_space<vmem>>, vector<32x256xbf16>,
    %40 = vector.extract_strided_slice %34 {offsets = [0, 2], sizes = [32, 256], strides = [1, 1]} : vector<32x290xbf16> to vector<32x256xbf16>
    %41 = arith.mulf %40, %28 : vector<32x256xbf16>
    %c64 = arith.constant 64 : index
    %c0_10 = arith.constant 0 : index
    %42 = vector.load %arg6[%c64, %c0_10] : memref<288x256xbf16, #tpu.memory_space<vmem>>, vector<32x256xbf16>
    tpu.vector_store %arg6[%c64, %c0_10], %41 {strides = array<i32>} : memref<288x256xbf16, #tpu.memory_space<vmem>>, vector<32x256xbf16>,
    %43 = vector.extract_strided_slice %34 {offsets = [0, 16], sizes = [32, 256], strides = [1, 1]} : vector<32x290xbf16> to vector<32x256xbf16>
    %44 = arith.mulf %43, %23 : vector<32x256xbf16>
    %c96 = arith.constant 96 : index
    %c0_11 = arith.constant 0 : index
    %45 = vector.load %arg6[%c96, %c0_11] : memref<288x256xbf16, #tpu.memory_space<vmem>>, vector<32x256xbf16>
    tpu.vector_store %arg6[%c96, %c0_11], %44 {strides = array<i32>} : memref<288x256xbf16, #tpu.memory_space<vmem>>, vector<32x256xbf16>,
    %46 = vector.extract_strided_slice %34 {offsets = [0, 17], sizes = [32, 256], strides = [1, 1]} : vector<32x290xbf16> to vector<32x256xbf16>
    %c128 = arith.constant 128 : index
    %c0_12 = arith.constant 0 : index
    %47 = vector.load %arg6[%c128, %c0_12] : memref<288x256xbf16, #tpu.memory_space<vmem>>, vector<32x256xbf16>
    tpu.vector_store %arg6[%c128, %c0_12], %46 {strides = array<i32>} : memref<288x256xbf16, #tpu.memory_space<vmem>>, vector<32x256xbf16>,
    %48 = vector.extract_strided_slice %34 {offsets = [0, 18], sizes = [32, 256], strides = [1, 1]} : vector<32x290xbf16> to vector<32x256xbf16>
    %49 = arith.mulf %48, %28 : vector<32x256xbf16>
    %c160 = arith.constant 160 : index
    %c0_13 = arith.constant 0 : index
    %50 = vector.load %arg6[%c160, %c0_13] : memref<288x256xbf16, #tpu.memory_space<vmem>>, vector<32x256xbf16>
    tpu.vector_store %arg6[%c160, %c0_13], %49 {strides = array<i32>} : memref<288x256xbf16, #tpu.memory_space<vmem>>, vector<32x256xbf16>,
    %51 = vector.extract_strided_slice %34 {offsets = [0, 32], sizes = [32, 256], strides = [1, 1]} : vector<32x290xbf16> to vector<32x256xbf16>
    %52 = arith.mulf %51, %23 : vector<32x256xbf16>
    %c192 = arith.constant 192 : index
    %c0_14 = arith.constant 0 : index
    %53 = vector.load %arg6[%c192, %c0_14] : memref<288x256xbf16, #tpu.memory_space<vmem>>, vector<32x256xbf16>
    tpu.vector_store %arg6[%c192, %c0_14], %52 {strides = array<i32>} : memref<288x256xbf16, #tpu.memory_space<vmem>>, vector<32x256xbf16>,
    %54 = vector.extract_strided_slice %34 {offsets = [0, 33], sizes = [32, 256], strides = [1, 1]} : vector<32x290xbf16> to vector<32x256xbf16>
    %c224 = arith.constant 224 : index
    %c0_15 = arith.constant 0 : index
    %55 = vector.load %arg6[%c224, %c0_15] : memref<288x256xbf16, #tpu.memory_space<vmem>>, vector<32x256xbf16>
    tpu.vector_store %arg6[%c224, %c0_15], %54 {strides = array<i32>} : memref<288x256xbf16, #tpu.memory_space<vmem>>, vector<32x256xbf16>,
    %56 = vector.extract_strided_slice %34 {offsets = [0, 34], sizes = [32, 256], strides = [1, 1]} : vector<32x290xbf16> to vector<32x256xbf16>
    %57 = arith.mulf %56, %28 : vector<32x256xbf16>
    %c256 = arith.constant 256 : index
    %c0_16 = arith.constant 0 : index
    %58 = vector.load %arg6[%c256, %c0_16] : memref<288x256xbf16, #tpu.memory_space<vmem>>, vector<32x256xbf16>
    tpu.vector_store %arg6[%c256, %c0_16], %57 {strides = array<i32>} : memref<288x256xbf16, #tpu.memory_space<vmem>>, vector<32x256xbf16>,
    %c6_i32 = arith.constant 6 : i32
    %59 = arith.muli %1, %c6_i32 : i32
    %c0_i32_17 = arith.constant 0 : i32
    %60 = arith.addi %59, %c0_i32_17 : i32
    %61 = arith.index_cast %60 : i32 to index
    %c0_18 = arith.constant 0 : index
    %c0_19 = arith.constant 0 : index
    %62 = vector.load %arg3[%61, %c0_18, %c0_19] : memref<12x32x288xbf16, #tpu.memory_space<vmem>>, vector<1x32x288xbf16>
    %63 = vector.shape_cast %62 : vector<1x32x288xbf16> to vector<32x288xbf16>
    %c0_20 = arith.constant 0 : index
    %c0_21 = arith.constant 0 : index
    %64 = vector.load %arg6[%c0_20, %c0_21] : memref<288x256xbf16, #tpu.memory_space<vmem>>, vector<288x256xbf16>
    %cst_22 = arith.constant dense<0.000000e+00> : vector<32x256xf32>
    %65 = tpu.matmul %63, %64, %cst_22 {dimension_numbers = #tpu.dot_dimension_numbers<[1], [0], [0], [1], [0, 0, 1, 1], [], []>} : vector<32x288xbf16>, vector<288x256xbf16>, vector<32x256xf32> -> vector<32x256xf32>
    %66 = arith.index_cast %60 : i32 to index
    %c0_23 = arith.constant 0 : index
    %c0_24 = arith.constant 0 : index
    %67 = vector.load %arg4[%66, %c0_23, %c0_24] : memref<12x32x1xf32, #tpu.memory_space<vmem>>, vector<1x32x1xf32>
    %68 = vector.shape_cast %67 : vector<1x32x1xf32> to vector<32x1xf32>
    %69 = vector.broadcast %68 : vector<32x1xf32> to vector<32x256xf32>
    %70 = arith.addf %65, %69 : vector<32x256xf32>
    %71 = arith.truncf %70 : vector<32x256xf32> to vector<32x256xbf16>
    %72 = tpu.concatenate %29, %71, %29 in 1 : vector<32x17xbf16>, vector<32x256xbf16>, vector<32x17xbf16> -> vector<32x290xbf16>
    %73 = vector.extract_strided_slice %72 {offsets = [0, 0], sizes = [32, 256], strides = [1, 1]} : vector<32x290xbf16> to vector<32x256xbf16>
    %74 = arith.mulf %73, %23 : vector<32x256xbf16>
    %c0_25 = arith.constant 0 : index
    %c0_26 = arith.constant 0 : index
    %75 = vector.load %arg6[%c0_25, %c0_26] : memref<288x256xbf16, #tpu.memory_space<vmem>>, vector<32x256xbf16>
    tpu.vector_store %arg6[%c0_25, %c0_26], %74 {strides = array<i32>} : memref<288x256xbf16, #tpu.memory_space<vmem>>, vector<32x256xbf16>,
    %76 = vector.extract_strided_slice %72 {offsets = [0, 1], sizes = [32, 256], strides = [1, 1]} : vector<32x290xbf16> to vector<32x256xbf16>
    %c32_27 = arith.constant 32 : index
    %c0_28 = arith.constant 0 : index
    %77 = vector.load %arg6[%c32_27, %c0_28] : memref<288x256xbf16, #tpu.memory_space<vmem>>, vector<32x256xbf16>
    tpu.vector_store %arg6[%c32_27, %c0_28], %76 {strides = array<i32>} : memref<288x256xbf16, #tpu.memory_space<vmem>>, vector<32x256xbf16>,
    %78 = vector.extract_strided_slice %72 {offsets = [0, 2], sizes = [32, 256], strides = [1, 1]} : vector<32x290xbf16> to vector<32x256xbf16>
    %79 = arith.mulf %78, %28 : vector<32x256xbf16>
    %c64_29 = arith.constant 64 : index
    %c0_30 = arith.constant 0 : index
    %80 = vector.load %arg6[%c64_29, %c0_30] : memref<288x256xbf16, #tpu.memory_space<vmem>>, vector<32x256xbf16>
    tpu.vector_store %arg6[%c64_29, %c0_30], %79 {strides = array<i32>} : memref<288x256xbf16, #tpu.memory_space<vmem>>, vector<32x256xbf16>,
    %81 = vector.extract_strided_slice %72 {offsets = [0, 16], sizes = [32, 256], strides = [1, 1]} : vector<32x290xbf16> to vector<32x256xbf16>
    %82 = arith.mulf %81, %23 : vector<32x256xbf16>
    %c96_31 = arith.constant 96 : index
    %c0_32 = arith.constant 0 : index
    %83 = vector.load %arg6[%c96_31, %c0_32] : memref<288x256xbf16, #tpu.memory_space<vmem>>, vector<32x256xbf16>
    tpu.vector_store %arg6[%c96_31, %c0_32], %82 {strides = array<i32>} : memref<288x256xbf16, #tpu.memory_space<vmem>>, vector<32x256xbf16>,
    %84 = vector.extract_strided_slice %72 {offsets = [0, 17], sizes = [32, 256], strides = [1, 1]} : vector<32x290xbf16> to vector<32x256xbf16>
    %c128_33 = arith.constant 128 : index
    %c0_34 = arith.constant 0 : index
    %85 = vector.load %arg6[%c128_33, %c0_34] : memref<288x256xbf16, #tpu.memory_space<vmem>>, vector<32x256xbf16>
    tpu.vector_store %arg6[%c128_33, %c0_34], %84 {strides = array<i32>} : memref<288x256xbf16, #tpu.memory_space<vmem>>, vector<32x256xbf16>,
    %86 = vector.extract_strided_slice %72 {offsets = [0, 18], sizes = [32, 256], strides = [1, 1]} : vector<32x290xbf16> to vector<32x256xbf16>
    %87 = arith.mulf %86, %28 : vector<32x256xbf16>
    %c160_35 = arith.constant 160 : index
    %c0_36 = arith.constant 0 : index
    %88 = vector.load %arg6[%c160_35, %c0_36] : memref<288x256xbf16, #tpu.memory_space<vmem>>, vector<32x256xbf16>
    tpu.vector_store %arg6[%c160_35, %c0_36], %87 {strides = array<i32>} : memref<288x256xbf16, #tpu.memory_space<vmem>>, vector<32x256xbf16>,
    %89 = vector.extract_strided_slice %72 {offsets = [0, 32], sizes = [32, 256], strides = [1, 1]} : vector<32x290xbf16> to vector<32x256xbf16>
    %90 = arith.mulf %89, %23 : vector<32x256xbf16>
    %c192_37 = arith.constant 192 : index
    %c0_38 = arith.constant 0 : index
    %91 = vector.load %arg6[%c192_37, %c0_38] : memref<288x256xbf16, #tpu.memory_space<vmem>>, vector<32x256xbf16>
    tpu.vector_store %arg6[%c192_37, %c0_38], %90 {strides = array<i32>} : memref<288x256xbf16, #tpu.memory_space<vmem>>, vector<32x256xbf16>,
    %92 = vector.extract_strided_slice %72 {offsets = [0, 33], sizes = [32, 256], strides = [1, 1]} : vector<32x290xbf16> to vector<32x256xbf16>
    %c224_39 = arith.constant 224 : index
    %c0_40 = arith.constant 0 : index
    %93 = vector.load %arg6[%c224_39, %c0_40] : memref<288x256xbf16, #tpu.memory_space<vmem>>, vector<32x256xbf16>
    tpu.vector_store %arg6[%c224_39, %c0_40], %92 {strides = array<i32>} : memref<288x256xbf16, #tpu.memory_space<vmem>>, vector<32x256xbf16>,
    %94 = vector.extract_strided_slice %72 {offsets = [0, 34], sizes = [32, 256], strides = [1, 1]} : vector<32x290xbf16> to vector<32x256xbf16>
    %95 = arith.mulf %94, %28 : vector<32x256xbf16>
    %c256_41 = arith.constant 256 : index
    %c0_42 = arith.constant 0 : index
    %96 = vector.load %arg6[%c256_41, %c0_42] : memref<288x256xbf16, #tpu.memory_space<vmem>>, vector<32x256xbf16>
    tpu.vector_store %arg6[%c256_41, %c0_42], %95 {strides = array<i32>} : memref<288x256xbf16, #tpu.memory_space<vmem>>, vector<32x256xbf16>,
    %c6_i32_43 = arith.constant 6 : i32
    %97 = arith.muli %1, %c6_i32_43 : i32
    %c1_i32_44 = arith.constant 1 : i32
    %98 = arith.addi %97, %c1_i32_44 : i32
    %99 = arith.index_cast %98 : i32 to index
    %c0_45 = arith.constant 0 : index
    %c0_46 = arith.constant 0 : index
    %100 = vector.load %arg3[%99, %c0_45, %c0_46] : memref<12x32x288xbf16, #tpu.memory_space<vmem>>, vector<1x32x288xbf16>
    %101 = vector.shape_cast %100 : vector<1x32x288xbf16> to vector<32x288xbf16>
    %c0_47 = arith.constant 0 : index
    %c0_48 = arith.constant 0 : index
    %102 = vector.load %arg6[%c0_47, %c0_48] : memref<288x256xbf16, #tpu.memory_space<vmem>>, vector<288x256xbf16>
    %cst_49 = arith.constant dense<0.000000e+00> : vector<32x256xf32>
    %103 = tpu.matmul %101, %102, %cst_49 {dimension_numbers = #tpu.dot_dimension_numbers<[1], [0], [0], [1], [0, 0, 1, 1], [], []>} : vector<32x288xbf16>, vector<288x256xbf16>, vector<32x256xf32> -> vector<32x256xf32>
    %104 = arith.index_cast %98 : i32 to index
    %c0_50 = arith.constant 0 : index
    %c0_51 = arith.constant 0 : index
    %105 = vector.load %arg4[%104, %c0_50, %c0_51] : memref<12x32x1xf32, #tpu.memory_space<vmem>>, vector<1x32x1xf32>
    %106 = vector.shape_cast %105 : vector<1x32x1xf32> to vector<32x1xf32>
    %107 = vector.broadcast %106 : vector<32x1xf32> to vector<32x256xf32>
    %108 = arith.addf %103, %107 : vector<32x256xf32>
    %cst_52 = arith.constant 0.000000e+00 : f32
    %109 = vector.broadcast %cst_52 : f32 to vector<32x256xf32>
    %110 = arith.maximumf %108, %109 : vector<32x256xf32>
    %111 = arith.truncf %110 : vector<32x256xf32> to vector<32x256xbf16>
    %112 = tpu.concatenate %29, %111, %29 in 1 : vector<32x17xbf16>, vector<32x256xbf16>, vector<32x17xbf16> -> vector<32x290xbf16>
    %113 = vector.extract_strided_slice %112 {offsets = [0, 0], sizes = [32, 256], strides = [1, 1]} : vector<32x290xbf16> to vector<32x256xbf16>
    %114 = arith.mulf %113, %23 : vector<32x256xbf16>
    %c0_53 = arith.constant 0 : index
    %c0_54 = arith.constant 0 : index
    %115 = vector.load %arg6[%c0_53, %c0_54] : memref<288x256xbf16, #tpu.memory_space<vmem>>, vector<32x256xbf16>
    tpu.vector_store %arg6[%c0_53, %c0_54], %114 {strides = array<i32>} : memref<288x256xbf16, #tpu.memory_space<vmem>>, vector<32x256xbf16>,
    %116 = vector.extract_strided_slice %112 {offsets = [0, 1], sizes = [32, 256], strides = [1, 1]} : vector<32x290xbf16> to vector<32x256xbf16>
    %c32_55 = arith.constant 32 : index
    %c0_56 = arith.constant 0 : index
    %117 = vector.load %arg6[%c32_55, %c0_56] : memref<288x256xbf16, #tpu.memory_space<vmem>>, vector<32x256xbf16>
    tpu.vector_store %arg6[%c32_55, %c0_56], %116 {strides = array<i32>} : memref<288x256xbf16, #tpu.memory_space<vmem>>, vector<32x256xbf16>,
    %118 = vector.extract_strided_slice %112 {offsets = [0, 2], sizes = [32, 256], strides = [1, 1]} : vector<32x290xbf16> to vector<32x256xbf16>
    %119 = arith.mulf %118, %28 : vector<32x256xbf16>
    %c64_57 = arith.constant 64 : index
    %c0_58 = arith.constant 0 : index
    %120 = vector.load %arg6[%c64_57, %c0_58] : memref<288x256xbf16, #tpu.memory_space<vmem>>, vector<32x256xbf16>
    tpu.vector_store %arg6[%c64_57, %c0_58], %119 {strides = array<i32>} : memref<288x256xbf16, #tpu.memory_space<vmem>>, vector<32x256xbf16>,
    %121 = vector.extract_strided_slice %112 {offsets = [0, 16], sizes = [32, 256], strides = [1, 1]} : vector<32x290xbf16> to vector<32x256xbf16>
    %122 = arith.mulf %121, %23 : vector<32x256xbf16>
    %c96_59 = arith.constant 96 : index
    %c0_60 = arith.constant 0 : index
    %123 = vector.load %arg6[%c96_59, %c0_60] : memref<288x256xbf16, #tpu.memory_space<vmem>>, vector<32x256xbf16>
    tpu.vector_store %arg6[%c96_59, %c0_60], %122 {strides = array<i32>} : memref<288x256xbf16, #tpu.memory_space<vmem>>, vector<32x256xbf16>,
    %124 = vector.extract_strided_slice %112 {offsets = [0, 17], sizes = [32, 256], strides = [1, 1]} : vector<32x290xbf16> to vector<32x256xbf16>
    %c128_61 = arith.constant 128 : index
    %c0_62 = arith.constant 0 : index
    %125 = vector.load %arg6[%c128_61, %c0_62] : memref<288x256xbf16, #tpu.memory_space<vmem>>, vector<32x256xbf16>
    tpu.vector_store %arg6[%c128_61, %c0_62], %124 {strides = array<i32>} : memref<288x256xbf16, #tpu.memory_space<vmem>>, vector<32x256xbf16>,
    %126 = vector.extract_strided_slice %112 {offsets = [0, 18], sizes = [32, 256], strides = [1, 1]} : vector<32x290xbf16> to vector<32x256xbf16>
    %127 = arith.mulf %126, %28 : vector<32x256xbf16>
    %c160_63 = arith.constant 160 : index
    %c0_64 = arith.constant 0 : index
    %128 = vector.load %arg6[%c160_63, %c0_64] : memref<288x256xbf16, #tpu.memory_space<vmem>>, vector<32x256xbf16>
    tpu.vector_store %arg6[%c160_63, %c0_64], %127 {strides = array<i32>} : memref<288x256xbf16, #tpu.memory_space<vmem>>, vector<32x256xbf16>,
    %129 = vector.extract_strided_slice %112 {offsets = [0, 32], sizes = [32, 256], strides = [1, 1]} : vector<32x290xbf16> to vector<32x256xbf16>
    %130 = arith.mulf %129, %23 : vector<32x256xbf16>
    %c192_65 = arith.constant 192 : index
    %c0_66 = arith.constant 0 : index
    %131 = vector.load %arg6[%c192_65, %c0_66] : memref<288x256xbf16, #tpu.memory_space<vmem>>, vector<32x256xbf16>
    tpu.vector_store %arg6[%c192_65, %c0_66], %130 {strides = array<i32>} : memref<288x256xbf16, #tpu.memory_space<vmem>>, vector<32x256xbf16>,
    %132 = vector.extract_strided_slice %112 {offsets = [0, 33], sizes = [32, 256], strides = [1, 1]} : vector<32x290xbf16> to vector<32x256xbf16>
    %c224_67 = arith.constant 224 : index
    %c0_68 = arith.constant 0 : index
    %133 = vector.load %arg6[%c224_67, %c0_68] : memref<288x256xbf16, #tpu.memory_space<vmem>>, vector<32x256xbf16>
    tpu.vector_store %arg6[%c224_67, %c0_68], %132 {strides = array<i32>} : memref<288x256xbf16, #tpu.memory_space<vmem>>, vector<32x256xbf16>,
    %134 = vector.extract_strided_slice %112 {offsets = [0, 34], sizes = [32, 256], strides = [1, 1]} : vector<32x290xbf16> to vector<32x256xbf16>
    %135 = arith.mulf %134, %28 : vector<32x256xbf16>
    %c256_69 = arith.constant 256 : index
    %c0_70 = arith.constant 0 : index
    %136 = vector.load %arg6[%c256_69, %c0_70] : memref<288x256xbf16, #tpu.memory_space<vmem>>, vector<32x256xbf16>
    tpu.vector_store %arg6[%c256_69, %c0_70], %135 {strides = array<i32>} : memref<288x256xbf16, #tpu.memory_space<vmem>>, vector<32x256xbf16>,
    %c6_i32_71 = arith.constant 6 : i32
    %137 = arith.muli %1, %c6_i32_71 : i32
    %c2_i32 = arith.constant 2 : i32
    %138 = arith.addi %137, %c2_i32 : i32
    %139 = arith.index_cast %138 : i32 to index
    %c0_72 = arith.constant 0 : index
    %c0_73 = arith.constant 0 : index
    %140 = vector.load %arg3[%139, %c0_72, %c0_73] : memref<12x32x288xbf16, #tpu.memory_space<vmem>>, vector<1x32x288xbf16>
    %141 = vector.shape_cast %140 : vector<1x32x288xbf16> to vector<32x288xbf16>
    %c0_74 = arith.constant 0 : index
    %c0_75 = arith.constant 0 : index
    %142 = vector.load %arg6[%c0_74, %c0_75] : memref<288x256xbf16, #tpu.memory_space<vmem>>, vector<288x256xbf16>
    %cst_76 = arith.constant dense<0.000000e+00> : vector<32x256xf32>
    %143 = tpu.matmul %141, %142, %cst_76 {dimension_numbers = #tpu.dot_dimension_numbers<[1], [0], [0], [1], [0, 0, 1, 1], [], []>} : vector<32x288xbf16>, vector<288x256xbf16>, vector<32x256xf32> -> vector<32x256xf32>
    %144 = arith.index_cast %138 : i32 to index
    %c0_77 = arith.constant 0 : index
    %c0_78 = arith.constant 0 : index
    %145 = vector.load %arg4[%144, %c0_77, %c0_78] : memref<12x32x1xf32, #tpu.memory_space<vmem>>, vector<1x32x1xf32>
    %146 = vector.shape_cast %145 : vector<1x32x1xf32> to vector<32x1xf32>
    %147 = vector.broadcast %146 : vector<32x1xf32> to vector<32x256xf32>
    %148 = arith.addf %143, %147 : vector<32x256xf32>
    %149 = arith.addf %148, %70 : vector<32x256xf32>
    %150 = arith.truncf %149 : vector<32x256xf32> to vector<32x256xbf16>
    %151 = tpu.concatenate %29, %150, %29 in 1 : vector<32x17xbf16>, vector<32x256xbf16>, vector<32x17xbf16> -> vector<32x290xbf16>
    %152 = vector.extract_strided_slice %151 {offsets = [0, 0], sizes = [32, 256], strides = [1, 1]} : vector<32x290xbf16> to vector<32x256xbf16>
    %153 = arith.mulf %152, %23 : vector<32x256xbf16>
    %c0_79 = arith.constant 0 : index
    %c0_80 = arith.constant 0 : index
    %154 = vector.load %arg6[%c0_79, %c0_80] : memref<288x256xbf16, #tpu.memory_space<vmem>>, vector<32x256xbf16>
    tpu.vector_store %arg6[%c0_79, %c0_80], %153 {strides = array<i32>} : memref<288x256xbf16, #tpu.memory_space<vmem>>, vector<32x256xbf16>,
    %155 = vector.extract_strided_slice %151 {offsets = [0, 1], sizes = [32, 256], strides = [1, 1]} : vector<32x290xbf16> to vector<32x256xbf16>
    %c32_81 = arith.constant 32 : index
    %c0_82 = arith.constant 0 : index
    %156 = vector.load %arg6[%c32_81, %c0_82] : memref<288x256xbf16, #tpu.memory_space<vmem>>, vector<32x256xbf16>
    tpu.vector_store %arg6[%c32_81, %c0_82], %155 {strides = array<i32>} : memref<288x256xbf16, #tpu.memory_space<vmem>>, vector<32x256xbf16>,
    %157 = vector.extract_strided_slice %151 {offsets = [0, 2], sizes = [32, 256], strides = [1, 1]} : vector<32x290xbf16> to vector<32x256xbf16>
    %158 = arith.mulf %157, %28 : vector<32x256xbf16>
    %c64_83 = arith.constant 64 : index
    %c0_84 = arith.constant 0 : index
    %159 = vector.load %arg6[%c64_83, %c0_84] : memref<288x256xbf16, #tpu.memory_space<vmem>>, vector<32x256xbf16>
    tpu.vector_store %arg6[%c64_83, %c0_84], %158 {strides = array<i32>} : memref<288x256xbf16, #tpu.memory_space<vmem>>, vector<32x256xbf16>,
    %160 = vector.extract_strided_slice %151 {offsets = [0, 16], sizes = [32, 256], strides = [1, 1]} : vector<32x290xbf16> to vector<32x256xbf16>
    %161 = arith.mulf %160, %23 : vector<32x256xbf16>
    %c96_85 = arith.constant 96 : index
    %c0_86 = arith.constant 0 : index
    %162 = vector.load %arg6[%c96_85, %c0_86] : memref<288x256xbf16, #tpu.memory_space<vmem>>, vector<32x256xbf16>
    tpu.vector_store %arg6[%c96_85, %c0_86], %161 {strides = array<i32>} : memref<288x256xbf16, #tpu.memory_space<vmem>>, vector<32x256xbf16>,
    %163 = vector.extract_strided_slice %151 {offsets = [0, 17], sizes = [32, 256], strides = [1, 1]} : vector<32x290xbf16> to vector<32x256xbf16>
    %c128_87 = arith.constant 128 : index
    %c0_88 = arith.constant 0 : index
    %164 = vector.load %arg6[%c128_87, %c0_88] : memref<288x256xbf16, #tpu.memory_space<vmem>>, vector<32x256xbf16>
    tpu.vector_store %arg6[%c128_87, %c0_88], %163 {strides = array<i32>} : memref<288x256xbf16, #tpu.memory_space<vmem>>, vector<32x256xbf16>,
    %165 = vector.extract_strided_slice %151 {offsets = [0, 18], sizes = [32, 256], strides = [1, 1]} : vector<32x290xbf16> to vector<32x256xbf16>
    %166 = arith.mulf %165, %28 : vector<32x256xbf16>
    %c160_89 = arith.constant 160 : index
    %c0_90 = arith.constant 0 : index
    %167 = vector.load %arg6[%c160_89, %c0_90] : memref<288x256xbf16, #tpu.memory_space<vmem>>, vector<32x256xbf16>
    tpu.vector_store %arg6[%c160_89, %c0_90], %166 {strides = array<i32>} : memref<288x256xbf16, #tpu.memory_space<vmem>>, vector<32x256xbf16>,
    %168 = vector.extract_strided_slice %151 {offsets = [0, 32], sizes = [32, 256], strides = [1, 1]} : vector<32x290xbf16> to vector<32x256xbf16>
    %169 = arith.mulf %168, %23 : vector<32x256xbf16>
    %c192_91 = arith.constant 192 : index
    %c0_92 = arith.constant 0 : index
    %170 = vector.load %arg6[%c192_91, %c0_92] : memref<288x256xbf16, #tpu.memory_space<vmem>>, vector<32x256xbf16>
    tpu.vector_store %arg6[%c192_91, %c0_92], %169 {strides = array<i32>} : memref<288x256xbf16, #tpu.memory_space<vmem>>, vector<32x256xbf16>,
    %171 = vector.extract_strided_slice %151 {offsets = [0, 33], sizes = [32, 256], strides = [1, 1]} : vector<32x290xbf16> to vector<32x256xbf16>
    %c224_93 = arith.constant 224 : index
    %c0_94 = arith.constant 0 : index
    %172 = vector.load %arg6[%c224_93, %c0_94] : memref<288x256xbf16, #tpu.memory_space<vmem>>, vector<32x256xbf16>
    tpu.vector_store %arg6[%c224_93, %c0_94], %171 {strides = array<i32>} : memref<288x256xbf16, #tpu.memory_space<vmem>>, vector<32x256xbf16>,
    %173 = vector.extract_strided_slice %151 {offsets = [0, 34], sizes = [32, 256], strides = [1, 1]} : vector<32x290xbf16> to vector<32x256xbf16>
    %174 = arith.mulf %173, %28 : vector<32x256xbf16>
    %c256_95 = arith.constant 256 : index
    %c0_96 = arith.constant 0 : index
    %175 = vector.load %arg6[%c256_95, %c0_96] : memref<288x256xbf16, #tpu.memory_space<vmem>>, vector<32x256xbf16>
    tpu.vector_store %arg6[%c256_95, %c0_96], %174 {strides = array<i32>} : memref<288x256xbf16, #tpu.memory_space<vmem>>, vector<32x256xbf16>,
    %c6_i32_97 = arith.constant 6 : i32
    %176 = arith.muli %1, %c6_i32_97 : i32
    %c3_i32 = arith.constant 3 : i32
    %177 = arith.addi %176, %c3_i32 : i32
    %178 = arith.index_cast %177 : i32 to index
    %c0_98 = arith.constant 0 : index
    %c0_99 = arith.constant 0 : index
    %179 = vector.load %arg3[%178, %c0_98, %c0_99] : memref<12x32x288xbf16, #tpu.memory_space<vmem>>, vector<1x32x288xbf16>
    %180 = vector.shape_cast %179 : vector<1x32x288xbf16> to vector<32x288xbf16>
    %c0_100 = arith.constant 0 : index
    %c0_101 = arith.constant 0 : index
    %181 = vector.load %arg6[%c0_100, %c0_101] : memref<288x256xbf16, #tpu.memory_space<vmem>>, vector<288x256xbf16>
    %cst_102 = arith.constant dense<0.000000e+00> : vector<32x256xf32>
    %182 = tpu.matmul %180, %181, %cst_102 {dimension_numbers = #tpu.dot_dimension_numbers<[1], [0], [0], [1], [0, 0, 1, 1], [], []>} : vector<32x288xbf16>, vector<288x256xbf16>, vector<32x256xf32> -> vector<32x256xf32>
    %183 = arith.index_cast %177 : i32 to index
    %c0_103 = arith.constant 0 : index
    %c0_104 = arith.constant 0 : index
    %184 = vector.load %arg4[%183, %c0_103, %c0_104] : memref<12x32x1xf32, #tpu.memory_space<vmem>>, vector<1x32x1xf32>
    %185 = vector.shape_cast %184 : vector<1x32x1xf32> to vector<32x1xf32>
    %186 = vector.broadcast %185 : vector<32x1xf32> to vector<32x256xf32>
    %187 = arith.addf %182, %186 : vector<32x256xf32>
    %cst_105 = arith.constant 0.000000e+00 : f32
    %188 = vector.broadcast %cst_105 : f32 to vector<32x256xf32>
    %189 = arith.maximumf %187, %188 : vector<32x256xf32>
    %190 = arith.truncf %189 : vector<32x256xf32> to vector<32x256xbf16>
    %191 = tpu.concatenate %29, %190, %29 in 1 : vector<32x17xbf16>, vector<32x256xbf16>, vector<32x17xbf16> -> vector<32x290xbf16>
    %192 = vector.extract_strided_slice %191 {offsets = [0, 0], sizes = [32, 256], strides = [1, 1]} : vector<32x290xbf16> to vector<32x256xbf16>
    %193 = arith.mulf %192, %23 : vector<32x256xbf16>
    %c0_106 = arith.constant 0 : index
    %c0_107 = arith.constant 0 : index
    %194 = vector.load %arg6[%c0_106, %c0_107] : memref<288x256xbf16, #tpu.memory_space<vmem>>, vector<32x256xbf16>
    tpu.vector_store %arg6[%c0_106, %c0_107], %193 {strides = array<i32>} : memref<288x256xbf16, #tpu.memory_space<vmem>>, vector<32x256xbf16>,
    %195 = vector.extract_strided_slice %191 {offsets = [0, 1], sizes = [32, 256], strides = [1, 1]} : vector<32x290xbf16> to vector<32x256xbf16>
    %c32_108 = arith.constant 32 : index
    %c0_109 = arith.constant 0 : index
    %196 = vector.load %arg6[%c32_108, %c0_109] : memref<288x256xbf16, #tpu.memory_space<vmem>>, vector<32x256xbf16>
    tpu.vector_store %arg6[%c32_108, %c0_109], %195 {strides = array<i32>} : memref<288x256xbf16, #tpu.memory_space<vmem>>, vector<32x256xbf16>,
    %197 = vector.extract_strided_slice %191 {offsets = [0, 2], sizes = [32, 256], strides = [1, 1]} : vector<32x290xbf16> to vector<32x256xbf16>
    %198 = arith.mulf %197, %28 : vector<32x256xbf16>
    %c64_110 = arith.constant 64 : index
    %c0_111 = arith.constant 0 : index
    %199 = vector.load %arg6[%c64_110, %c0_111] : memref<288x256xbf16, #tpu.memory_space<vmem>>, vector<32x256xbf16>
    tpu.vector_store %arg6[%c64_110, %c0_111], %198 {strides = array<i32>} : memref<288x256xbf16, #tpu.memory_space<vmem>>, vector<32x256xbf16>,
    %200 = vector.extract_strided_slice %191 {offsets = [0, 16], sizes = [32, 256], strides = [1, 1]} : vector<32x290xbf16> to vector<32x256xbf16>
    %201 = arith.mulf %200, %23 : vector<32x256xbf16>
    %c96_112 = arith.constant 96 : index
    %c0_113 = arith.constant 0 : index
    %202 = vector.load %arg6[%c96_112, %c0_113] : memref<288x256xbf16, #tpu.memory_space<vmem>>, vector<32x256xbf16>
    tpu.vector_store %arg6[%c96_112, %c0_113], %201 {strides = array<i32>} : memref<288x256xbf16, #tpu.memory_space<vmem>>, vector<32x256xbf16>,
    %203 = vector.extract_strided_slice %191 {offsets = [0, 17], sizes = [32, 256], strides = [1, 1]} : vector<32x290xbf16> to vector<32x256xbf16>
    %c128_114 = arith.constant 128 : index
    %c0_115 = arith.constant 0 : index
    %204 = vector.load %arg6[%c128_114, %c0_115] : memref<288x256xbf16, #tpu.memory_space<vmem>>, vector<32x256xbf16>
    tpu.vector_store %arg6[%c128_114, %c0_115], %203 {strides = array<i32>} : memref<288x256xbf16, #tpu.memory_space<vmem>>, vector<32x256xbf16>,
    %205 = vector.extract_strided_slice %191 {offsets = [0, 18], sizes = [32, 256], strides = [1, 1]} : vector<32x290xbf16> to vector<32x256xbf16>
    %206 = arith.mulf %205, %28 : vector<32x256xbf16>
    %c160_116 = arith.constant 160 : index
    %c0_117 = arith.constant 0 : index
    %207 = vector.load %arg6[%c160_116, %c0_117] : memref<288x256xbf16, #tpu.memory_space<vmem>>, vector<32x256xbf16>
    tpu.vector_store %arg6[%c160_116, %c0_117], %206 {strides = array<i32>} : memref<288x256xbf16, #tpu.memory_space<vmem>>, vector<32x256xbf16>,
    %208 = vector.extract_strided_slice %191 {offsets = [0, 32], sizes = [32, 256], strides = [1, 1]} : vector<32x290xbf16> to vector<32x256xbf16>
    %209 = arith.mulf %208, %23 : vector<32x256xbf16>
    %c192_118 = arith.constant 192 : index
    %c0_119 = arith.constant 0 : index
    %210 = vector.load %arg6[%c192_118, %c0_119] : memref<288x256xbf16, #tpu.memory_space<vmem>>, vector<32x256xbf16>
    tpu.vector_store %arg6[%c192_118, %c0_119], %209 {strides = array<i32>} : memref<288x256xbf16, #tpu.memory_space<vmem>>, vector<32x256xbf16>,
    %211 = vector.extract_strided_slice %191 {offsets = [0, 33], sizes = [32, 256], strides = [1, 1]} : vector<32x290xbf16> to vector<32x256xbf16>
    %c224_120 = arith.constant 224 : index
    %c0_121 = arith.constant 0 : index
    %212 = vector.load %arg6[%c224_120, %c0_121] : memref<288x256xbf16, #tpu.memory_space<vmem>>, vector<32x256xbf16>
    tpu.vector_store %arg6[%c224_120, %c0_121], %211 {strides = array<i32>} : memref<288x256xbf16, #tpu.memory_space<vmem>>, vector<32x256xbf16>,
    %213 = vector.extract_strided_slice %191 {offsets = [0, 34], sizes = [32, 256], strides = [1, 1]} : vector<32x290xbf16> to vector<32x256xbf16>
    %214 = arith.mulf %213, %28 : vector<32x256xbf16>
    %c256_122 = arith.constant 256 : index
    %c0_123 = arith.constant 0 : index
    %215 = vector.load %arg6[%c256_122, %c0_123] : memref<288x256xbf16, #tpu.memory_space<vmem>>, vector<32x256xbf16>
    tpu.vector_store %arg6[%c256_122, %c0_123], %214 {strides = array<i32>} : memref<288x256xbf16, #tpu.memory_space<vmem>>, vector<32x256xbf16>,
    %c6_i32_124 = arith.constant 6 : i32
    %216 = arith.muli %1, %c6_i32_124 : i32
    %c4_i32 = arith.constant 4 : i32
    %217 = arith.addi %216, %c4_i32 : i32
    %218 = arith.index_cast %217 : i32 to index
    %c0_125 = arith.constant 0 : index
    %c0_126 = arith.constant 0 : index
    %219 = vector.load %arg3[%218, %c0_125, %c0_126] : memref<12x32x288xbf16, #tpu.memory_space<vmem>>, vector<1x32x288xbf16>
    %220 = vector.shape_cast %219 : vector<1x32x288xbf16> to vector<32x288xbf16>
    %c0_127 = arith.constant 0 : index
    %c0_128 = arith.constant 0 : index
    %221 = vector.load %arg6[%c0_127, %c0_128] : memref<288x256xbf16, #tpu.memory_space<vmem>>, vector<288x256xbf16>
    %cst_129 = arith.constant dense<0.000000e+00> : vector<32x256xf32>
    %222 = tpu.matmul %220, %221, %cst_129 {dimension_numbers = #tpu.dot_dimension_numbers<[1], [0], [0], [1], [0, 0, 1, 1], [], []>} : vector<32x288xbf16>, vector<288x256xbf16>, vector<32x256xf32> -> vector<32x256xf32>
    %223 = arith.index_cast %217 : i32 to index
    %c0_130 = arith.constant 0 : index
    %c0_131 = arith.constant 0 : index
    %224 = vector.load %arg4[%223, %c0_130, %c0_131] : memref<12x32x1xf32, #tpu.memory_space<vmem>>, vector<1x32x1xf32>
    %225 = vector.shape_cast %224 : vector<1x32x1xf32> to vector<32x1xf32>
    %226 = vector.broadcast %225 : vector<32x1xf32> to vector<32x256xf32>
    %227 = arith.addf %222, %226 : vector<32x256xf32>
    %228 = arith.addf %227, %149 : vector<32x256xf32>
    %229 = arith.truncf %228 : vector<32x256xf32> to vector<32x256xbf16>
    %230 = tpu.concatenate %29, %229, %29 in 1 : vector<32x17xbf16>, vector<32x256xbf16>, vector<32x17xbf16> -> vector<32x290xbf16>
    %231 = vector.extract_strided_slice %230 {offsets = [0, 0], sizes = [32, 256], strides = [1, 1]} : vector<32x290xbf16> to vector<32x256xbf16>
    %232 = arith.mulf %231, %23 : vector<32x256xbf16>
    %c0_132 = arith.constant 0 : index
    %c0_133 = arith.constant 0 : index
    %233 = vector.load %arg6[%c0_132, %c0_133] : memref<288x256xbf16, #tpu.memory_space<vmem>>, vector<32x256xbf16>
    tpu.vector_store %arg6[%c0_132, %c0_133], %232 {strides = array<i32>} : memref<288x256xbf16, #tpu.memory_space<vmem>>, vector<32x256xbf16>,
    %234 = vector.extract_strided_slice %230 {offsets = [0, 1], sizes = [32, 256], strides = [1, 1]} : vector<32x290xbf16> to vector<32x256xbf16>
    %c32_134 = arith.constant 32 : index
    %c0_135 = arith.constant 0 : index
    %235 = vector.load %arg6[%c32_134, %c0_135] : memref<288x256xbf16, #tpu.memory_space<vmem>>, vector<32x256xbf16>
    tpu.vector_store %arg6[%c32_134, %c0_135], %234 {strides = array<i32>} : memref<288x256xbf16, #tpu.memory_space<vmem>>, vector<32x256xbf16>,
    %236 = vector.extract_strided_slice %230 {offsets = [0, 2], sizes = [32, 256], strides = [1, 1]} : vector<32x290xbf16> to vector<32x256xbf16>
    %237 = arith.mulf %236, %28 : vector<32x256xbf16>
    %c64_136 = arith.constant 64 : index
    %c0_137 = arith.constant 0 : index
    %238 = vector.load %arg6[%c64_136, %c0_137] : memref<288x256xbf16, #tpu.memory_space<vmem>>, vector<32x256xbf16>
    tpu.vector_store %arg6[%c64_136, %c0_137], %237 {strides = array<i32>} : memref<288x256xbf16, #tpu.memory_space<vmem>>, vector<32x256xbf16>,
    %239 = vector.extract_strided_slice %230 {offsets = [0, 16], sizes = [32, 256], strides = [1, 1]} : vector<32x290xbf16> to vector<32x256xbf16>
    %240 = arith.mulf %239, %23 : vector<32x256xbf16>
    %c96_138 = arith.constant 96 : index
    %c0_139 = arith.constant 0 : index
    %241 = vector.load %arg6[%c96_138, %c0_139] : memref<288x256xbf16, #tpu.memory_space<vmem>>, vector<32x256xbf16>
    tpu.vector_store %arg6[%c96_138, %c0_139], %240 {strides = array<i32>} : memref<288x256xbf16, #tpu.memory_space<vmem>>, vector<32x256xbf16>,
    %242 = vector.extract_strided_slice %230 {offsets = [0, 17], sizes = [32, 256], strides = [1, 1]} : vector<32x290xbf16> to vector<32x256xbf16>
    %c128_140 = arith.constant 128 : index
    %c0_141 = arith.constant 0 : index
    %243 = vector.load %arg6[%c128_140, %c0_141] : memref<288x256xbf16, #tpu.memory_space<vmem>>, vector<32x256xbf16>
    tpu.vector_store %arg6[%c128_140, %c0_141], %242 {strides = array<i32>} : memref<288x256xbf16, #tpu.memory_space<vmem>>, vector<32x256xbf16>,
    %244 = vector.extract_strided_slice %230 {offsets = [0, 18], sizes = [32, 256], strides = [1, 1]} : vector<32x290xbf16> to vector<32x256xbf16>
    %245 = arith.mulf %244, %28 : vector<32x256xbf16>
    %c160_142 = arith.constant 160 : index
    %c0_143 = arith.constant 0 : index
    %246 = vector.load %arg6[%c160_142, %c0_143] : memref<288x256xbf16, #tpu.memory_space<vmem>>, vector<32x256xbf16>
    tpu.vector_store %arg6[%c160_142, %c0_143], %245 {strides = array<i32>} : memref<288x256xbf16, #tpu.memory_space<vmem>>, vector<32x256xbf16>,
    %247 = vector.extract_strided_slice %230 {offsets = [0, 32], sizes = [32, 256], strides = [1, 1]} : vector<32x290xbf16> to vector<32x256xbf16>
    %248 = arith.mulf %247, %23 : vector<32x256xbf16>
    %c192_144 = arith.constant 192 : index
    %c0_145 = arith.constant 0 : index
    %249 = vector.load %arg6[%c192_144, %c0_145] : memref<288x256xbf16, #tpu.memory_space<vmem>>, vector<32x256xbf16>
    tpu.vector_store %arg6[%c192_144, %c0_145], %248 {strides = array<i32>} : memref<288x256xbf16, #tpu.memory_space<vmem>>, vector<32x256xbf16>,
    %250 = vector.extract_strided_slice %230 {offsets = [0, 33], sizes = [32, 256], strides = [1, 1]} : vector<32x290xbf16> to vector<32x256xbf16>
    %c224_146 = arith.constant 224 : index
    %c0_147 = arith.constant 0 : index
    %251 = vector.load %arg6[%c224_146, %c0_147] : memref<288x256xbf16, #tpu.memory_space<vmem>>, vector<32x256xbf16>
    tpu.vector_store %arg6[%c224_146, %c0_147], %250 {strides = array<i32>} : memref<288x256xbf16, #tpu.memory_space<vmem>>, vector<32x256xbf16>,
    %252 = vector.extract_strided_slice %230 {offsets = [0, 34], sizes = [32, 256], strides = [1, 1]} : vector<32x290xbf16> to vector<32x256xbf16>
    %253 = arith.mulf %252, %28 : vector<32x256xbf16>
    %c256_148 = arith.constant 256 : index
    %c0_149 = arith.constant 0 : index
    %254 = vector.load %arg6[%c256_148, %c0_149] : memref<288x256xbf16, #tpu.memory_space<vmem>>, vector<32x256xbf16>
    tpu.vector_store %arg6[%c256_148, %c0_149], %253 {strides = array<i32>} : memref<288x256xbf16, #tpu.memory_space<vmem>>, vector<32x256xbf16>,
    %c6_i32_150 = arith.constant 6 : i32
    %255 = arith.muli %1, %c6_i32_150 : i32
    %c5_i32 = arith.constant 5 : i32
    %256 = arith.addi %255, %c5_i32 : i32
    %257 = arith.index_cast %256 : i32 to index
    %c0_151 = arith.constant 0 : index
    %c0_152 = arith.constant 0 : index
    %258 = vector.load %arg3[%257, %c0_151, %c0_152] : memref<12x32x288xbf16, #tpu.memory_space<vmem>>, vector<1x32x288xbf16>
    %259 = vector.shape_cast %258 : vector<1x32x288xbf16> to vector<32x288xbf16>
    %c0_153 = arith.constant 0 : index
    %c0_154 = arith.constant 0 : index
    %260 = vector.load %arg6[%c0_153, %c0_154] : memref<288x256xbf16, #tpu.memory_space<vmem>>, vector<288x256xbf16>
    %cst_155 = arith.constant dense<0.000000e+00> : vector<32x256xf32>
    %261 = tpu.matmul %259, %260, %cst_155 {dimension_numbers = #tpu.dot_dimension_numbers<[1], [0], [0], [1], [0, 0, 1, 1], [], []>} : vector<32x288xbf16>, vector<288x256xbf16>, vector<32x256xf32> -> vector<32x256xf32>
    %262 = arith.index_cast %256 : i32 to index
    %c0_156 = arith.constant 0 : index
    %c0_157 = arith.constant 0 : index
    %263 = vector.load %arg4[%262, %c0_156, %c0_157] : memref<12x32x1xf32, #tpu.memory_space<vmem>>, vector<1x32x1xf32>
    %264 = vector.shape_cast %263 : vector<1x32x1xf32> to vector<32x1xf32>
    %265 = vector.broadcast %264 : vector<32x1xf32> to vector<32x256xf32>
    %266 = arith.addf %261, %265 : vector<32x256xf32>
    %267 = vector.extract_strided_slice %266 {offsets = [0, 0], sizes = [3, 256], strides = [1, 1]} : vector<32x256xf32> to vector<3x256xf32>
    %c0_158 = arith.constant 0 : index
    %c0_159 = arith.constant 0 : index
    %c0_160 = arith.constant 0 : index
    %268 = vector.load %arg5[%c0_158, %c0_159, %c0_160] : memref<1x3x256xf32, #tpu.memory_space<vmem>>, vector<1x3x256xf32>
    %269 = vector.shape_cast %268 : vector<1x3x256xf32> to vector<3x256xf32>
    %270 = vector.shape_cast %267 : vector<3x256xf32> to vector<1x3x256xf32>
    tpu.vector_store %arg5[%c0_158, %c0_159, %c0_160], %270 {strides = array<i32>} : memref<1x3x256xf32, #tpu.memory_space<vmem>>, vector<1x3x256xf32>,
    return
  }
  func.func @transform_0(%arg0: i32, %arg1: memref<2xi32, #tpu.memory_space<smem>>) -> (i32, i32, i32) {
    %c0_i32 = arith.constant 0 : i32
    %c0_i32_0 = arith.constant 0 : i32
    %c0_i32_1 = arith.constant 0 : i32
    return %arg0, %c0_i32, %c0_i32_0 : i32, i32, i32
  }
  func.func @transform_1(%arg0: i32, %arg1: memref<2xi32, #tpu.memory_space<smem>>) -> (i32, i32, i32) {
    %c0_i32 = arith.constant 0 : i32
    %c0_i32_0 = arith.constant 0 : i32
    %c0_i32_1 = arith.constant 0 : i32
    %c0_i32_2 = arith.constant 0 : i32
    return %c0_i32, %c0_i32_0, %c0_i32_1 : i32, i32, i32
  }
  func.func @transform_2(%arg0: i32, %arg1: memref<2xi32, #tpu.memory_space<smem>>) -> (i32, i32, i32) {
    %c0_i32 = arith.constant 0 : i32
    %c0_i32_0 = arith.constant 0 : i32
    %c0_i32_1 = arith.constant 0 : i32
    %c0_i32_2 = arith.constant 0 : i32
    return %c0_i32, %c0_i32_0, %c0_i32_1 : i32, i32, i32
  }
  func.func @transform_3(%arg0: i32, %arg1: memref<2xi32, #tpu.memory_space<smem>>) -> (i32, i32, i32) {
    %c0_i32 = arith.constant 0 : i32
    %c0_i32_0 = arith.constant 0 : i32
    %c0_i32_1 = arith.constant 0 : i32
    return %arg0, %c0_i32, %c0_i32_0 : i32, i32, i32
  }
}

</mosaic_0001>

<bundles_post_ra>
// kernel: tpu_custom_call.1
= control target key start
LH: loop header
LB: loop body
LE: loop exit
PB: predicated region body
PF: predicated region fallthrough
CT: control target
= control target key end

     0   :  { %s5298_s0 = inlined_call_operand.vmem [shape: s32[2], index: 0, kind: input, shape index: {}]   ;;  %s5299_s1 = inlined_call_operand.vmem [shape: bf16[2,3,256], index: 1, kind: input, shape index: {}]   ;;  %s5300_s2 = inlined_call_operand.hbm [shape: bf16[12,32,288], index: 2, kind: input, shape index: {}]   ;;  %s5301_s3 = inlined_call_operand.vmem [shape: f32[12,32,1], index: 3, kind: input, shape index: {}]   ;;  %s5302_s4 = inlined_call_operand.vmem [shape: f32[2,3,256], index: 4, kind: output, shape index: {}]  }
   0x1   :  { %s9_s17 = sshll.u32 %s5298_s0, 4  ;;  %s10_s17 = int_to_ptr.vmem [resolvable:$true] %s9_s17 }
   0x2   :  { %s3843_s18 = scalar_lea.vmem %s10_s17, 16  ;;  %p3848_p1 = scmp.lt.s32.totalorder %s10_s17, %s10_s17 }
   0x3   :  { %p3844_p0 = scmp.ne.s32.totalorder %s10_s17, %s3843_s18  ;;  %p3849_p2 = scmp.lt.s32.totalorder %s3843_s18, %s3843_s18 }
   0x5   :  { %p3850_p3 = por %p3849_p2, %p3848_p1 }
   0x7   :  { %p3851_p4 = pnand %p3850_p3, %p3844_p0 }
   0x9   :  { %3854 = shalt.err (!%p3851_p4)  }
   0xa   :  { %s3897_s19 = smov [#allocation4]  }
   0xb   :  { %12 = dma.vmem_to_smem %s10_s17, 16, %s3897_s19, [#allocation3] }
   0xc   :  { %3887 = dma.done.wait [#allocation3], 16 }
   0xd   :  { %3888 = vsyncadd [#allocation3], 4294967280 }
   0xe   :  { %14 = sfence }
   0xf   :  { %15 = vsyncpa [#allocation6], 0  ;;  %s3945_s20 = smov 0  }
  0x10 LB: > { %s3951_s0 = sadd.s32 4294967295, %s3895_s20   ;;  %p3514_p5 = scmp.ge.s32.totalorder %s3895_s20, 1  ;;  %s3895_s20 = sphi %s3945_s20, %s21_s20  }
  0x11   : > { %p120_p6 = scmp.lt.s32.totalorder %s3895_s20, 3  ;;  %s3898_s21 = smov [#allocation5]  }
  0x12   : > { %s132_s22 = sshll.u32 %s3898_s21, 4  ;;  %p5303_p8 = scmp.eq.s32.totalorder %s3951_s0, 0  ;;  %s133_s22 = int_to_ptr.vmem [resolvable:$true] %s132_s22 }
  0x13   : > { %p3955_p7 = pnand %p3514_p5, %p120_p6  ;;  %s3855_s27 = scalar_lea.hbm %s5300_s2, 9216 }
  0x14   : > { %p3856_p11 = scmp.ne.s32.totalorder %s5300_s2, %s3855_s27  ;;  %p3862_p1 = scmp.lt.u32.totalorder %s3855_s27, %s5300_s2 }
  0x15   : > { %s5305_s23 = scalar_select %p3955_p7, 1, 0 }
  0x16   : > { %p3744_p9 = pneg %p3955_p7 }
  0x18   : > { %p3964_p10 = pnand %p5303_p8, %p3744_p9 }
  0x1a   : > { %p3857_p12 = pneg %p3964_p10 }
  0x1c   : > { %p3858_p13 = pnand %p3857_p12, %p3856_p11 }
  0x1e   : > { %p3859_p0 = pneg %p3858_p13 }
  0x20   : > { %p3864_p2 = pnand %p3862_p1, %p3859_p0 }
  0x22   : > { %3867 = shalt.err (!%p3864_p2)
}
  0x23   : > { %s3868_s6 = scalar_lea.vmem %s133_s22, 9216  ;;  %p3876_p6 = scmp.lt.s32.totalorder %s133_s22, %s133_s22 }
  0x24   : > { %p3869_p3 = scmp.ne.s32.totalorder %s133_s22, %s3868_s6  ;;  %p3877_p9 = scmp.lt.s32.totalorder %s3868_s6, %s3868_s6 }
  0x26   : > { %p3871_p4 = pnand %p3869_p3, %p3857_p12  ;;  %p3878_p8 = por %p3877_p9, %p3876_p6 }
  0x28   : > { %p3872_p5 = pneg %p3871_p4 }
  0x2a   : > { %p3879_p7 = pnand %p3878_p8, %p3872_p5 }
  0x2c   : > { %3882 = shalt.err (!%p3879_p7)
}
  0x2d   : > { %s3899_s7 = smov 192   ;;  %s3900_s8 = smov 12  }
  0x2e   : > { %3747 = dma.hbm_to_vmem [thread:$0]  (!%p3964_p10), %s5300_s2, 9216, %s133_s22, [#allocation6], %s3899_s7, %s3899_s7, %s3900_s8  }
  0x2f   : > { %p5307_p11 = scmp.ne.s32.totalorder %s5305_s23, 0 }
  0x30   : > { %p5308_p13 = scmp.eq.s32.totalorder (!%p5307_p11), %s3951_s0, 0 }
  0x31   : > { %159 = sbr.rel (%p5307_p11) target bundleno = 3373 (0xd2d), region = 32 }
  0x38   : > { %3890 = dma.done.wait (%p5308_p13), [#allocation6], 9216   ;;  %p5309_p12 = pmov %p5308_p13 }
  0x39   : > { %p183_p7 = scmp.lt.s32.totalorder %s3951_s0, 1  ;;  %v195_v0 = vlaneseq  ;;  %v3901_v1 = vmov 0   ;;  %s3902_s11 = smov 17   ;;  %vm250_vm0 = vcmask 1041408   ;;  %vm251_vm1 = vsmask.f32 1280 }
  0x3a   : > { %3892 = vsyncadd (%p5309_p12), [#allocation6], 4294958080  ;;  %262 = vrot.lane.b32.xlu1 %v3901_v1, %s3902_s11  ;;  %3793 = vset.pattern.permute.xlu0 %v3901_v1  ;;  %v3903_v8 = vmov 0.0   ;;  %s3904_s17 = smov 2   ;;  %s3905_s18 = smov 16   ;;  %vm264_vm7 = vcmask 138240  }
  0x3b   : > { %s3995_s12 = scalar_select %p183_p7, %s3951_s0, 1  ;;  %v196_v2 = vand.u32 127, %v195_v0  ;;  %3794 = vset.pattern.permute.xlu1 %v3901_v1  ;;  %vm4002_vm2 = vmand %vm250_vm0, %vm251_vm1  ;;  %vm324_vm8 = vcmask 15360   ;;  %vm372_vm9 = vcmask 130048   ;;  %vm443_vm10 = vcmask 146432  }
  0x3c   : > { %s3906_s19 = smov 18   ;;  %s3907_s21 = smov 32   ;;  %vm489_vm11 = vcmask 261120   ;;  %vm560_vm12 = vcmask 277504   ;;  %vm305_vm13 = vcmask 1039360   ;;  %vm353_vm14 = vcmask 1031168  }
  0x3d   : > { %s3651_s13 = sshll.u32 %s3995_s12, 2  ;;  %v202_v3 = vand.u32 15, %v196_v2  ;;  %v197_v4 = vadd.s32 128, %v196_v2  ;;  %s3908_s22 = smov 34   ;;  %vm401_vm15 = vcmask 916480   ;;  %vm426_vm0 = vcmask 908288  }
  0x3e   : > { %s187_s16 = scalar_lea.vmem %s5299_s1, %s3651_s13  ;;  %s3909_s23 = smov 127   ;;  %vm472_vm1 = vcmask 900096  }
  0x3f   : > { %vm230_vm3 = vcmp.le.s32.totalorder %v202_v3, 14  ;;  %vm222_vm4 = vcmp.ge.s32.totalorder %v202_v3, 1  ;;  %v209_v6 = vand.u32 15, %v197_v4  ;;  %s3910_s24 = smov 126   ;;  %s3911_s25 = smov 112  }
  0x40   : > { %v3527_v7 = vld.sshfl [vmem:[%s187_s16] sm:$0x33 pattern:$0x76325410]  ;;  %v3525_v9 = vsel %vm230_vm3, 1.0, %v3903_v8  ;;  %v3523_v10 = vsel %vm222_vm4, 1.0, %v3903_v8 }
  0x41   : > { %v253_v11 = vsel %vm4002_vm2, %v3527_v7, 0  ;;  %v247_v12 = vcombine.high %v3527_v7, %v3527_v7  ;;  %v236_v13 = vpack.c.bf16 %v3525_v9, %v3525_v9  ;;  %vm231_vm5 = vcmp.le.s32.totalorder %v209_v6, 14  ;;  %s3912_s26 = smov 111   ;;  %s3913_s27 = smov 110  }
  0x42   : > { %258 = vrot.lane.b32.xlu0 %v253_v11, %s3902_s11  ;;  %v4009_v14 = vpack.c.bf16 %v3523_v10, %v3523_v10  ;;  %v3526_v16 = vsel %vm231_vm5, 1.0, %v3903_v8  ;;  %vm223_vm6 = vcmp.ge.s32.totalorder %v209_v6, 1  ;;  %s3914_s28 = smov 96   ;;  %s4166_s29 = sld [smem:[#allocation4 + %s3951_s0]]  ;;  %vm543_vm3 = vcmask 777216  }
  0x43   : > { %320 = vrot.lane.b32.xlu1 %v236_v13, %s3904_s17  ;;  %v254_v15 = vsel %vm4002_vm2, %v247_v12, 0  ;;  %v237_v17 = vpack.c.bf16 %v3526_v16, %v3526_v16  ;;  %v3524_v18 = vsel %vm223_vm6, 1.0, %v3903_v8  ;;  %s3915_s0 = smov 95   ;;  %s3916_s6 = smov 94   ;;  %vm518_vm2 = vcmask 785408  }
  0x44   : > { %v4015_v19 = vpack.c.bf16 %v3524_v18, %v3524_v18  ;;  %vm589_vm4 = vcmask 769024  }
  0x46   : > { %260 = vrot.lane.b32.xlu0 %v254_v15, %s3902_s11 }
  0x47   : > { %368 = vrot.lane.b32.xlu1 %v4009_v14, %s3905_s18 }
  0x48   : > { %s3653_s30 = smul.u32 288, %s4166_s29 }
  0x49   : > { %s3530_s7 = smul.u32 192, %s4166_s29 }
  0x4a   : > { %322 = vrot.lane.b32.xlu0 %v237_v17, %s3904_s17  ;;  %s4182_s5 = scalar_lea.vmem [#allocation5], %s3653_s30 }
  0x4b   : > { %439 = vrot.lane.b32.xlu1 %v236_v13, %s3906_s19  ;;  %v3797_v6 = vld [vmem:[%s4182_s5 + $0x4] ss:$12 sps:$4 sm:$0xff]   ;;  %s4223_s10 = scalar_lea.vmem %s5301_s3, %s3530_s7 }
  0x4c   : > { %745 = vmatprep.mubr.bf16.mxu0 %v3797_v6  ;;  %v652_v18 = vld [vmem:[%s4223_s10] sm:$0xff] }
  0x4e   : > { %370 = vrot.lane.b32.xlu0 %v4015_v19, %s3905_s18 }
  0x4f   : > { %485 = vrot.lane.b32.xlu1 %v4009_v14, %s3907_s21 }
  0x52   : > { %441 = vrot.lane.b32.xlu0 %v237_v17, %s3906_s19 }
  0x53   : > { %558 = vrot.lane.b32.xlu1 %v237_v17, %s3908_s22  ;;  %v653_v17 = vld [vmem:[%s4223_s10 + $0x8] sm:$0xff] }
  0x56   : > { %487 = vrot.lane.b32.xlu0 %v4015_v19, %s3907_s21 }
  0x5a   : > { %556 = vrot.lane.b32.xlu0 %v236_v13, %s3908_s22 }
  0xac   : > { %v4020_v20 = vpop.permute.xlu1 %262 }
  0xad   : > { %v4024_v21 = vsel %vm264_vm7, 0, %v4020_v20  ;;  %v4028_v22 = vsel %vm264_vm7, %v4020_v20, 0  ;;  %v284_v35 = vmul.bf16 %v4020_v20, %v4015_v19 }
  0xae   : > { %299 = vrot.lane.b32.xlu1 %v4024_v21, %s3909_s23  ;;  %v4034_v23 = vpack.i.bf16 %v4028_v22, %v4020_v20  ;;  %v283_v36 = vmul.bf16 %v4024_v21, %v4009_v14 }
  0xb0   : > { %3779 = vrot.lane.b32.xlu0 %v4034_v23, %s3909_s23 }
  0xb4   : > { %v259_v24 = vpop.permute.xlu0 %258 }
  0xb5   : > { %v4039_v25 = vsel %vm264_vm7, 0, %v259_v24  ;;  %v4043_v26 = vpop.permute.xlu1 %320 }
  0xb6   : > { %293 = vrot.lane.b32.xlu1 %v4039_v25, %s3909_s23  ;;  %v281_v31 = vmul.bf16 %v4039_v25, %v4009_v14  ;;  %v329_v32 = vmul.bf16 %v4043_v26, %v4039_v25  ;;  %v332_v33 = vmul.bf16 %v4043_v26, %v4024_v21 }
  0xb8   : > { %v261_v27 = vpop.permute.xlu0 %260 }
  0xb9   : > { %v4046_v28 = vsel %vm264_vm7, %v259_v24, %v261_v27  ;;  %v4049_v29 = vsel %vm264_vm7, %v261_v27, 0  ;;  %v4063_v34 = vpop.permute.xlu1 %368 }
  0xba   : > { %297 = vrot.lane.b32.xlu0 %v4049_v29, %s3909_s23  ;;  %295 = vrot.lane.b32.xlu1 %v4046_v28, %s3909_s23  ;;  %v282_v30 = vmul.bf16 %v4046_v28, %v4015_v19  ;;  %v377_v37 = vmul.bf16 %v4063_v34, %v4039_v25  ;;  %v380_v38 = vmul.bf16 %v4063_v34, %v4024_v21 }
  0xbc   : > { %713 = vmatprep.subr.bf16.mxu0 %v282_v30  ;;  %v4077_v39 = vpop.permute.xlu0 %322 }
  0xbd   : > { %714 = vmatpush1.bf16.msra.mxu0 %v281_v31  ;;  %v334_v40 = vmul.bf16 %v4077_v39, %v4028_v22  ;;  %v331_v41 = vmul.bf16 %v4077_v39, %v4049_v29  ;;  %v4097_v45 = vsel %vm324_vm8, %v4043_v26, %v4077_v39  ;;  %v4119_v51 = vpop.permute.xlu1 %439 }
  0xbe   : > { %341 = vrot.lane.b32.xlu0 %v329_v32, %s3910_s24  ;;  %347 = vrot.lane.b32.xlu1 %v332_v33, %s3910_s24  ;;  %v330_v46 = vmul.bf16 %v4097_v45, %v4046_v28  ;;  %v333_v47 = vmul.bf16 %v4097_v45, %v4020_v20  ;;  %v448_v52 = vmul.bf16 %v4119_v51, %v4039_v25 }
  0xbf   : > { %715 = vmatprep.subr.bf16.mxu0 %v284_v35  ;;  %v451_v57 = vmul.bf16 %v4119_v51, %v4024_v21 }
  0xc0   : > { %v4087_v42 = vpop.permute.xlu0 %370 }
  0xc1   : > { %716 = vmatpush1.bf16.msra.mxu0 %v283_v36  ;;  %v382_v43 = vmul.bf16 %v4087_v42, %v4028_v22  ;;  %v379_v44 = vmul.bf16 %v4087_v42, %v4049_v29  ;;  %v4109_v48 = vsel %vm372_vm9, %v4063_v34, %v4087_v42  ;;  %v4144_v59 = vpop.permute.xlu1 %485 }
  0xc2   : > { %389 = vrot.lane.b32.xlu0 %v377_v37, %s3911_s25  ;;  %395 = vrot.lane.b32.xlu1 %v380_v38, %s3911_s25  ;;  %v381_v49 = vmul.bf16 %v4109_v48, %v4020_v20  ;;  %v378_v50 = vmul.bf16 %v4109_v48, %v4046_v28  ;;  %v494_v61 = vmul.bf16 %v4144_v59, %v4039_v25 }
  0xc3   : > { %v497_v3 = vmul.bf16 %v4144_v59, %v4024_v21 }
  0xc4   : > { %v4125_v53 = vpop.permute.xlu0 %441 }
  0xc5   : > { %v453_v54 = vmul.bf16 %v4125_v53, %v4028_v22  ;;  %v450_v55 = vmul.bf16 %v4125_v53, %v4049_v29  ;;  %v4136_v56 = vsel %vm443_vm10, %v4119_v51, %v4125_v53  ;;  %v4189_v7 = vpop.permute.xlu1 %558 }
  0xc6   : > { %416 = vrot.lane.b32.xlu0 %v4046_v28, %s3912_s26  ;;  %418 = vrot.lane.b32.xlu1 %v4049_v29, %s3912_s26  ;;  %v449_v58 = vmul.bf16 %v4136_v56, %v4046_v28  ;;  %v452_v0 = vmul.bf16 %v4136_v56, %v4020_v20  ;;  %v567_v9 = vmul.bf16 %v4189_v7, %v4049_v29 }
  0xc7   : > { %v570_v16 = vmul.bf16 %v4189_v7, %v4028_v22 }
  0xc8   : > { %v4146_v60 = vpop.permute.xlu0 %487 }
  0xc9   : > { %v496_v62 = vmul.bf16 %v4146_v60, %v4049_v29  ;;  %v4157_v63 = vsel %vm489_vm11, %v4144_v59, %v4146_v60  ;;  %v499_v4 = vmul.bf16 %v4146_v60, %v4028_v22 }
  0xca   : > { %351 = vrot.lane.b32.xlu0 %v334_v40, %s3910_s24  ;;  %345 = vrot.lane.b32.xlu1 %v331_v41, %s3910_s24  ;;  %v495_v2 = vmul.bf16 %v4157_v63, %v4046_v28  ;;  %v498_v5 = vmul.bf16 %v4157_v63, %v4020_v20 }
  0xcc   : > { %v4191_v8 = vpop.permute.xlu0 %556 }
  0xcd   : > { %v565_v10 = vmul.bf16 %v4191_v8, %v4039_v25  ;;  %v4203_v11 = vsel %vm560_vm12, %v4191_v8, %v4189_v7  ;;  %v568_v15 = vmul.bf16 %v4191_v8, %v4024_v21 }
  0xce   : > { %399 = vrot.lane.b32.xlu0 %v382_v43, %s3911_s25  ;;  %393 = vrot.lane.b32.xlu1 %v379_v44, %s3911_s25  ;;  %v569_v12 = vmul.bf16 %v4203_v11, %v4020_v20  ;;  %v566_v13 = vmul.bf16 %v4203_v11, %v4046_v28  ;;  %v654_v20 = vld [vmem:[%s4223_s10 + $0x10] sm:$0xff] }
  0xd2   : > { %343 = vrot.lane.b32.xlu0 %v330_v46, %s3910_s24  ;;  %349 = vrot.lane.b32.xlu1 %v333_v47, %s3910_s24 }
  0xd6   : > { %414 = vrot.lane.b32.xlu0 %v4039_v25, %s3912_s26  ;;  %3784 = vrot.lane.b32.xlu1 %v4034_v23, %s3912_s26 }
  0xda   : > { %397 = vrot.lane.b32.xlu1 %v381_v49, %s3911_s25  ;;  %391 = vrot.lane.b32.xlu0 %v378_v50, %s3911_s25 }
  0xde   : > { %460 = vrot.lane.b32.xlu1 %v448_v52, %s3913_s27  ;;  %420 = vrot.lane.b32.xlu0 %v4024_v21, %s3912_s26 }
  0xe2   : > { %470 = vrot.lane.b32.xlu1 %v453_v54, %s3913_s27  ;;  %464 = vrot.lane.b32.xlu0 %v450_v55, %s3913_s27 }
  0xe6   : > { %466 = vrot.lane.b32.xlu0 %v451_v57, %s3913_s27  ;;  %462 = vrot.lane.b32.xlu1 %v449_v58, %s3913_s27 }
  0xea   : > { %506 = vrot.lane.b32.xlu1 %v494_v61, %s3914_s28  ;;  %510 = vrot.lane.b32.xlu0 %v496_v62, %s3914_s28 }
  0xee   : > { %468 = vrot.lane.b32.xlu0 %v452_v0, %s3913_s27  ;;  %508 = vrot.lane.b32.xlu1 %v495_v2, %s3914_s28 }
  0xf2   : > { %512 = vrot.lane.b32.xlu0 %v497_v3, %s3914_s28  ;;  %516 = vrot.lane.b32.xlu1 %v499_v4, %s3914_s28 }
  0xf6   : > { %514 = vrot.lane.b32.xlu0 %v498_v5, %s3914_s28  ;;  %533 = vrot.lane.b32.xlu1 %v4046_v28, %s3915_s0 }
  0xfa   : > { %535 = vrot.lane.b32.xlu0 %v4049_v29, %s3915_s0  ;;  %531 = vrot.lane.b32.xlu1 %v4039_v25, %s3915_s0 }
  0xfe   : > { %3789 = vrot.lane.b32.xlu0 %v4034_v23, %s3915_s0  ;;  %537 = vrot.lane.b32.xlu1 %v4024_v21, %s3915_s0  ;;  %v655_v21 = vld [vmem:[%s4223_s10 + $0x18] sm:$0xff] }
 0x102   : > { %581 = vrot.lane.b32.xlu1 %v567_v9, %s3916_s6  ;;  %577 = vrot.lane.b32.xlu0 %v565_v10, %s3916_s6 }
 0x106   : > { %585 = vrot.lane.b32.xlu1 %v569_v12, %s3916_s6  ;;  %579 = vrot.lane.b32.xlu0 %v566_v13, %s3916_s6 }
 0x10a   : > { %583 = vrot.lane.b32.xlu1 %v568_v15, %s3916_s6  ;;  %587 = vrot.lane.b32.xlu0 %v570_v16, %s3916_s6 }
 0x10e   : > { %663 = vperm.xlu1 %3794, %v653_v17   ;;  %658 = vperm.xlu0 %3793, %v652_v18  }
 0x112   : > { %668 = vperm.xlu1 %3794, %v654_v20   ;;  %673 = vperm.xlu0 %3793, %v655_v21  }
 0x120   : > { %v300_v22 = vpop.permute.xlu1 %299 }
 0x122   : > { %v3780_v23 = vpop.permute.xlu0 %3779 }
 0x123   : > { %v3782_v25 = vunpack.i.h.bf16 %v3780_v23  ;;  %v3781_v29 = vunpack.i.l.bf16 %v3780_v23 }
 0x125   : > { %v309_v32 = vsel %vm305_vm13, %v3781_v29, %v3782_v25  ;;  %v308_v36 = vsel %vm305_vm13, %v300_v22, %v3781_v29 }
 0x128   : > { %v294_v24 = vpop.permute.xlu1 %293 }
 0x12c   : > { %v296_v27 = vpop.permute.xlu1 %295  ;;  %v298_v28 = vpop.permute.xlu0 %297 }
 0x12d   : > { %v307_v30 = vsel %vm305_vm13, %v296_v27, %v298_v28  ;;  %v306_v31 = vsel %vm305_vm13, %v294_v24, %v296_v27 }
 0x12e   : > { %717 = vmatprep.subr.bf16.mxu0 %v307_v30 }
 0x12f   : > { %718 = vmatpush1.bf16.msra.mxu0 %v306_v31 }
 0x130   : > { %v348_v33 = vpop.permute.xlu1 %347  ;;  %v342_v35 = vpop.permute.xlu0 %341  ;;  %719 = vmatprep.subr.bf16.mxu0 %v309_v32 }
 0x133   : > { %720 = vmatpush1.bf16.msra.mxu0 %v308_v36 }
 0x134   : > { %v396_v37 = vpop.permute.xlu1 %395  ;;  %v390_v38 = vpop.permute.xlu0 %389 }
 0x138   : > { %v419_v40 = vpop.permute.xlu1 %418  ;;  %v417_v41 = vpop.permute.xlu0 %416 }
 0x139   : > { %v428_v13 = vsel %vm426_vm0, %v417_v41, %v419_v40 }
 0x13c   : > { %v346_v43 = vpop.permute.xlu1 %345  ;;  %v352_v44 = vpop.permute.xlu0 %351 }
 0x140   : > { %v394_v46 = vpop.permute.xlu1 %393  ;;  %v400_v47 = vpop.permute.xlu0 %399 }
 0x144   : > { %v350_v49 = vpop.permute.xlu1 %349  ;;  %v344_v50 = vpop.permute.xlu0 %343 }
 0x145   : > { %v355_v52 = vsel %vm353_vm14, %v344_v50, %v346_v43  ;;  %v354_v54 = vsel %vm353_vm14, %v342_v35, %v344_v50  ;;  %v357_v55 = vsel %vm353_vm14, %v350_v49, %v352_v44  ;;  %v356_v61 = vsel %vm353_vm14, %v348_v33, %v350_v49 }
 0x146   : > { %721 = vmatprep.subr.bf16.mxu0 %v355_v52 }
 0x147   : > { %722 = vmatpush1.bf16.msra.mxu0 %v354_v54 }
 0x148   : > { %v3785_v57 = vpop.permute.xlu1 %3784  ;;  %v415_v58 = vpop.permute.xlu0 %414  ;;  %723 = vmatprep.subr.bf16.mxu0 %v357_v55 }
 0x149   : > { %v3787_v10 = vunpack.i.h.bf16 %v3785_v57  ;;  %v3786_v12 = vunpack.i.l.bf16 %v3785_v57  ;;  %v427_v17 = vsel %vm426_vm0, %v415_v58, %v417_v41 }
 0x14b   : > { %724 = vmatpush1.bf16.msra.mxu0 %v356_v61  ;;  %v430_v18 = vsel %vm426_vm0, %v3786_v12, %v3787_v10  ;;  %v3800_v10 = vld [vmem:[%s4182_s5 + $0x18] ss:$12 sps:$4 sm:$0xff]  }
 0x14c   : > { %v398_v62 = vpop.permute.xlu1 %397  ;;  %v392_v0 = vpop.permute.xlu0 %391 }
 0x14d   : > { %v403_v2 = vsel %vm401_vm15, %v392_v0, %v394_v46  ;;  %v402_v3 = vsel %vm401_vm15, %v390_v38, %v392_v0  ;;  %v405_v4 = vsel %vm401_vm15, %v398_v62, %v400_v47  ;;  %v404_v9 = vsel %vm401_vm15, %v396_v37, %v398_v62  ;;  %v3795_v62 = vld [vmem:[%s4182_s5] ss:$12 sps:$4 sm:$0xff]   ;;  %v3798_v0 = vld [vmem:[%s4182_s5 + $0x1c] ss:$12 sps:$4 sm:$0xff]  }
 0x14e   : > { %725 = vmatprep.subr.bf16.mxu0 %v403_v2 }
 0x14f   : > { %726 = vmatpush1.bf16.msra.mxu0 %v402_v3 }
 0x150   : > { %v461_v5 = vpop.permute.xlu1 %460  ;;  %v421_v6 = vpop.permute.xlu0 %420  ;;  %727 = vmatprep.subr.bf16.mxu0 %v405_v4 }
 0x151   : > { %v429_v22 = vsel %vm426_vm0, %v421_v6, %v3786_v12 }
 0x153   : > { %728 = vmatpush1.bf16.msra.mxu0 %v404_v9 }
 0x154   : > { %v471_v15 = vpop.permute.xlu1 %470  ;;  %v465_v16 = vpop.permute.xlu0 %464  ;;  %729 = vmatprep.subr.bf16.mxu0 %v428_v13 }
 0x157   : > { %730 = vmatpush1.bf16.msra.mxu0 %v427_v17 }
 0x158   : > { %v463_v20 = vpop.permute.xlu1 %462  ;;  %v467_v21 = vpop.permute.xlu0 %466  ;;  %731 = vmatprep.subr.bf16.mxu0 %v430_v18 }
 0x159   : > { %v474_v23 = vsel %vm472_vm1, %v463_v20, %v465_v16  ;;  %v473_v27 = vsel %vm472_vm1, %v461_v5, %v463_v20  ;;  %v3802_v16 = vld [vmem:[%s4182_s5 + $0x20] ss:$12 sps:$4 sm:$0xff]  }
 0x15b   : > { %732 = vmatpush1.bf16.msra.mxu0 %v429_v22 }
 0x15c   : > { %v507_v24 = vpop.permute.xlu1 %506  ;;  %v511_v25 = vpop.permute.xlu0 %510  ;;  %733 = vmatprep.subr.bf16.mxu0 %v474_v23 }
 0x15f   : > { %734 = vmatpush1.bf16.msra.mxu0 %v473_v27 }
 0x160   : > { %v509_v28 = vpop.permute.xlu1 %508  ;;  %v469_v29 = vpop.permute.xlu0 %468 }
 0x161   : > { %v476_v30 = vsel %vm472_vm1, %v469_v29, %v471_v15  ;;  %v475_v31 = vsel %vm472_vm1, %v467_v21, %v469_v29  ;;  %v520_v32 = vsel %vm518_vm2, %v509_v28, %v511_v25  ;;  %v519_v36 = vsel %vm518_vm2, %v507_v24, %v509_v28  ;;  %v3801_v15 = vld [vmem:[%s4182_s5 + $0x8] ss:$12 sps:$4 sm:$0xff]  }
 0x162   : > { %735 = vmatprep.subr.bf16.mxu0 %v476_v30 }
 0x163   : > { %736 = vmatpush1.bf16.msra.mxu0 %v475_v31 }
 0x164   : > { %v517_v33 = vpop.permute.xlu1 %516  ;;  %v513_v35 = vpop.permute.xlu0 %512  ;;  %737 = vmatprep.subr.bf16.mxu0 %v520_v32 }
 0x167   : > { %738 = vmatpush1.bf16.msra.mxu0 %v519_v36 }
 0x168   : > { %v534_v37 = vpop.permute.xlu1 %533  ;;  %v515_v38 = vpop.permute.xlu0 %514 }
 0x169   : > { %v522_v40 = vsel %vm518_vm2, %v515_v38, %v517_v33  ;;  %v521_v41 = vsel %vm518_vm2, %v513_v35, %v515_v38 }
 0x16a   : > { %739 = vmatprep.subr.bf16.mxu0 %v522_v40 }
 0x16b   : > { %740 = vmatpush1.bf16.msra.mxu0 %v521_v41 }
 0x16c   : > { %v532_v43 = vpop.permute.xlu1 %531  ;;  %v536_v44 = vpop.permute.xlu0 %535 }
 0x16d   : > { %v545_v46 = vsel %vm543_vm3, %v534_v37, %v536_v44  ;;  %v544_v47 = vsel %vm543_vm3, %v532_v43, %v534_v37 }
 0x16e   : > { %741 = vmatprep.subr.bf16.mxu0 %v545_v46 }
 0x16f   : > { %742 = vmatpush1.bf16.msra.mxu0 %v544_v47 }
 0x170   : > { %v538_v49 = vpop.permute.xlu1 %537  ;;  %v3790_v50 = vpop.permute.xlu0 %3789 }
 0x171   : > { %v3792_v52 = vunpack.i.h.bf16 %v3790_v50  ;;  %v3791_v54 = vunpack.i.l.bf16 %v3790_v50 }
 0x173   : > { %v547_v55 = vsel %vm543_vm3, %v3791_v54, %v3792_v52  ;;  %v546_v57 = vsel %vm543_vm3, %v538_v49, %v3791_v54 }
 0x174   : > { %v582_v58 = vpop.permute.xlu1 %581  ;;  %v578_v61 = vpop.permute.xlu0 %577  ;;  %743 = vmatprep.subr.bf16.mxu0 %v547_v55 }
 0x175   : > { %744 = vmatpush1.bf16.msra.mxu0 %v546_v57 }
 0x178   : > { %v586_v2 = vpop.permute.xlu1 %585  ;;  %v580_v3 = vpop.permute.xlu0 %579  ;;  %746 = vmatmul.mubr.bf16.vlgmr.msra.gmra.mrb[0].mxu0 %v3795_v62 }
 0x179   : > { %v591_v4 = vsel %vm589_vm4, %v580_v3, %v582_v58  ;;  %v590_v5 = vsel %vm589_vm4, %v578_v61, %v580_v3  ;;  %755 = vmatprep.mubr.bf16.mxu0 %v3798_v0 }
 0x17a   : > { %766 = vmatprep.subr.bf16.mxu0 %v591_v4 }
 0x17b   : > { %767 = vmatpush1.bf16.msra.mxu0 %v590_v5 }
 0x17c   : > { %v584_v6 = vpop.permute.xlu1 %583  ;;  %v588_v9 = vpop.permute.xlu0 %587 }
 0x17d   : > { %v592_v12 = vsel %vm589_vm4, %v584_v6, %v586_v2  ;;  %v593_v13 = vsel %vm589_vm4, %v586_v2, %v588_v9 }
 0x17e   : > { %768 = vmatprep.subr.bf16.mxu0 %v593_v13 }
 0x17f   : > { %769 = vmatpush1.bf16.msra.mxu0 %v592_v12 }
 0x180   : > { %756 = vmatmul.mubr.bf16.gmra.mrb[4].mxu0 %v3800_v10 }
 0x181   : > { %798 = vmatprep.mubr.bf16.mxu0 %v3901_v1 }
 0x188   : > { %3537 = vmatmul.mubr.msk.bf16.vlgmr.msra.gmra.mrb[0].mxu0 %vm489_vm11, %v3801_v15 }
 0x189   : > { %808 = vmatprep.mubr.bf16.mxu0 %v3901_v1 }
 0x18d   : > { %v664_v18 = vpop.permute.xlu1 %663  ;;  %v659_v21 = vpop.permute.xlu0 %658 }
 0x190   : > { %3538 = vmatmul.mubr.msk.bf16.gmra.mrb[4].mxu0 %vm489_vm11, %v3802_v16 }
 0x191   : > { %v669_v32 = vpop.permute.xlu1 %668  ;;  %v674_v35 = vpop.permute.xlu0 %673 }
 0x25b   : > { %v800_v17 = vpop.f32.mrb[0].mxu0 }
 0x25c   : > { %v802_v20 = vpop.f32.mrb[1].mxu0  ;;  %v4270_v23 = vadd.f32 %v800_v17, %v659_v21 }
 0x25d   : > { %v804_v22 = vpop.f32.mrb[2].mxu0  ;;  %v4274_v27 = vadd.f32 %v802_v20, %v659_v21 }
 0x25e   : > { %v4272_v24 = vadd.f32 %v804_v22, %v664_v18  ;;  %v806_v25 = vpop.f32.mrb[3].mxu0 }
 0x25f   : > { %v4276_v28 = vadd.f32 %v806_v25, %v664_v18 }
 0x260   : > { %v819_v29 = vpack.c.bf16 %v4272_v24, %v4270_v23 }
 0x261   : > { %v820_v30 = vpack.c.bf16 %v4276_v28, %v4274_v27 }
 0x262   : > { %827 = vrot.lane.b32.xlu1 %v819_v29, %s3902_s11 }
 0x263   : > { %v810_v31 = vpop.f32.mrb[4].mxu0  ;;  %829 = vrot.lane.b32.xlu0 %v820_v30, %s3902_s11 }
 0x264   : > { %v812_v33 = vpop.f32.mrb[5].mxu0  ;;  %v4284_v37 = vadd.f32 %v810_v31, %v669_v32 }
 0x265   : > { %v814_v36 = vpop.f32.mrb[6].mxu0  ;;  %v4288_v41 = vadd.f32 %v812_v33, %v669_v32 }
 0x266   : > { %v4286_v38 = vadd.f32 %v814_v36, %v674_v35  ;;  %v816_v40 = vpop.f32.mrb[7].mxu0 }
 0x267   : > { %v4290_v43 = vadd.f32 %v816_v40, %v674_v35 }
 0x268   : > { %v821_v44 = vpack.c.bf16 %v4286_v38, %v4284_v37 }
 0x269   : > { %v822_v46 = vpack.c.bf16 %v4290_v43, %v4288_v41 }
 0x26a   : > { %831 = vrot.lane.b32.xlu1 %v821_v44, %s3902_s11 }
 0x26b   : > { %833 = vrot.lane.b32.xlu0 %v822_v46, %s3902_s11 }
 0x2d4   : > { %v828_v47 = vpop.permute.xlu1 %827 }
 0x2d5   : > { %v4299_v49 = vsel %vm264_vm7, 0, %v828_v47  ;;  %v830_v50 = vpop.permute.xlu0 %829 }
 0x2d6   : > { %v4302_v52 = vsel %vm264_vm7, %v828_v47, %v830_v50  ;;  %v4305_v54 = vsel %vm264_vm7, %v830_v50, 0  ;;  %863 = vrot.lane.b32.xlu1 %v4299_v49, %s3909_s23  ;;  %v851_v57 = vmul.bf16 %v4299_v49, %v4009_v14  ;;  %v887_v6 = vmul.bf16 %v4299_v49, %v4043_v26  ;;  %v3805_v47 = vld [vmem:[%s4182_s5 + $0x34] ss:$12 sps:$4 sm:$0xff]  }
 0x2d7   : > { %867 = vrot.lane.b32.xlu0 %v4305_v54, %s3909_s23  ;;  %v852_v55 = vmul.bf16 %v4302_v52, %v4015_v19  ;;  %v889_v0 = vmul.bf16 %v4305_v54, %v4077_v39  ;;  %v925_v5 = vmul.bf16 %v4305_v54, %v4087_v42  ;;  %v923_v9 = vmul.bf16 %v4299_v49, %v4063_v34 }
 0x2d8   : > { %v888_v10 = vmul.bf16 %v4302_v52, %v4097_v45  ;;  %v924_v12 = vmul.bf16 %v4302_v52, %v4109_v48  ;;  %v984_v20 = vmul.bf16 %v4302_v52, %v4136_v56  ;;  %v985_v25 = vmul.bf16 %v4305_v54, %v4125_v53  ;;  %1257 = vmatprep.mubr.bf16.mxu1 %v3805_v47 }
 0x2d9   : > { %1225 = vmatprep.subr.bf16.mxu1 %v852_v55  ;;  %v983_v29 = vmul.bf16 %v4299_v49, %v4119_v51  ;;  %v1020_v31 = vmul.bf16 %v4302_v52, %v4157_v63  ;;  %v1021_v32 = vmul.bf16 %v4305_v54, %v4146_v60  ;;  %v1019_v33 = vmul.bf16 %v4299_v49, %v4144_v59 }
 0x2da   : > { %959 = vrot.lane.b32.xlu1 %v4299_v49, %s3912_s26  ;;  %1226 = vmatpush1.bf16.msra.mxu1 %v851_v57  ;;  %v1080_v50 = vmul.bf16 %v4302_v52, %v4203_v11  ;;  %v1081_v55 = vmul.bf16 %v4305_v54, %v4189_v7  ;;  %v1079_v57 = vmul.bf16 %v4299_v49, %v4191_v8 }
 0x2db   : > { %963 = vrot.lane.b32.xlu0 %v4305_v54, %s3912_s26 }
 0x2dc   : > { %v832_v58 = vpop.permute.xlu1 %831 }
 0x2dd   : > { %v4320_v61 = vsel %vm264_vm7, 0, %v832_v58  ;;  %v834_v62 = vpop.permute.xlu0 %833 }
 0x2de   : > { %v4325_v2 = vsel %vm264_vm7, %v832_v58, %v834_v62  ;;  %865 = vrot.lane.b32.xlu1 %v4302_v52, %s3909_s23  ;;  %v853_v4 = vmul.bf16 %v4320_v61, %v4009_v14  ;;  %v890_v13 = vmul.bf16 %v4320_v61, %v4043_v26  ;;  %v849_v15 = vsel %vm264_vm7, %v834_v62, 0  ;;  %v3549_v62 = vld [vmem:[%s4223_s10 + $0x20] sm:$0xff] }
 0x2df   : > { %903 = vrot.lane.b32.xlu0 %v889_v0, %s3910_s24  ;;  %v854_v3 = vmul.bf16 %v4325_v2, %v4015_v19  ;;  %v926_v16 = vmul.bf16 %v4320_v61, %v4063_v34  ;;  %v891_v17 = vmul.bf16 %v4325_v2, %v4097_v45  ;;  %v892_v18 = vmul.bf16 %v849_v15, %v4077_v39  ;;  %v3550_v0 = vld [vmem:[%s4223_s10 + $0x28] sm:$0xff] }
 0x2e0   : > { %v927_v21 = vmul.bf16 %v4325_v2, %v4109_v48  ;;  %v928_v22 = vmul.bf16 %v849_v15, %v4087_v42  ;;  %v986_v30 = vmul.bf16 %v4320_v61, %v4119_v51  ;;  %v987_v35 = vmul.bf16 %v4325_v2, %v4136_v56 }
 0x2e1   : > { %1227 = vmatprep.subr.bf16.mxu1 %v854_v3  ;;  %v988_v36 = vmul.bf16 %v849_v15, %v4125_v53  ;;  %v1022_v40 = vmul.bf16 %v4320_v61, %v4144_v59  ;;  %v1023_v44 = vmul.bf16 %v4325_v2, %v4157_v63  ;;  %v1024_v46 = vmul.bf16 %v849_v15, %v4146_v60  ;;  %v3552_v3 = vld [vmem:[%s4223_s10 + $0x38] sm:$0xff] }
 0x2e2   : > { %961 = vrot.lane.b32.xlu1 %v4302_v52, %s3912_s26  ;;  %1228 = vmatpush1.bf16.msra.mxu1 %v853_v4  ;;  %v1083_v58 = vmul.bf16 %v4325_v2, %v4203_v11 }
 0x2e3   : > { %939 = vrot.lane.b32.xlu0 %v925_v5, %s3911_s25 }
 0x2e6   : > { %899 = vrot.lane.b32.xlu1 %v887_v6, %s3910_s24 }
 0x2e7   : > { %869 = vrot.lane.b32.xlu0 %v4320_v61, %s3909_s23 }
 0x2ea   : > { %935 = vrot.lane.b32.xlu1 %v923_v9, %s3911_s25 }
 0x2eb   : > { %871 = vrot.lane.b32.xlu0 %v4325_v2, %s3909_s23 }
 0x2ee   : > { %901 = vrot.lane.b32.xlu1 %v888_v10, %s3910_s24 }
 0x2ef   : > { %967 = vrot.lane.b32.xlu0 %v4325_v2, %s3912_s26 }
 0x2f2   : > { %937 = vrot.lane.b32.xlu1 %v924_v12, %s3911_s25 }
 0x2f3   : > { %905 = vrot.lane.b32.xlu0 %v890_v13, %s3910_s24 }
 0x2f6   : > { %873 = vrot.lane.b32.xlu1 %v849_v15, %s3909_s23 }
 0x2f7   : > { %941 = vrot.lane.b32.xlu0 %v926_v16, %s3911_s25 }
 0x2fa   : > { %969 = vrot.lane.b32.xlu1 %v849_v15, %s3912_s26 }
 0x2fb   : > { %907 = vrot.lane.b32.xlu0 %v891_v17, %s3910_s24 }
 0x2fe   : > { %909 = vrot.lane.b32.xlu1 %v892_v18, %s3910_s24 }
 0x2ff   : > { %965 = vrot.lane.b32.xlu0 %v4320_v61, %s3912_s26 }
 0x302   : > { %997 = vrot.lane.b32.xlu1 %v984_v20, %s3913_s27 }
 0x303   : > { %943 = vrot.lane.b32.xlu0 %v927_v21, %s3911_s25 }
 0x306   : > { %945 = vrot.lane.b32.xlu1 %v928_v22, %s3911_s25 }
 0x307   : > { %999 = vrot.lane.b32.xlu0 %v985_v25, %s3913_s27 }
 0x30a   : > { %995 = vrot.lane.b32.xlu1 %v983_v29, %s3913_s27 }
 0x30b   : > { %1001 = vrot.lane.b32.xlu0 %v986_v30, %s3913_s27 }
 0x30e   : > { %1033 = vrot.lane.b32.xlu1 %v1020_v31, %s3914_s28 }
 0x30f   : > { %1035 = vrot.lane.b32.xlu0 %v1021_v32, %s3914_s28 }
 0x312   : > { %1031 = vrot.lane.b32.xlu1 %v1019_v33, %s3914_s28 }
 0x313   : > { %1003 = vrot.lane.b32.xlu0 %v987_v35, %s3913_s27 }
 0x316   : > { %1005 = vrot.lane.b32.xlu1 %v988_v36, %s3913_s27 }
 0x317   : > { %1037 = vrot.lane.b32.xlu0 %v1022_v40, %s3914_s28 }
 0x31a   : > { %1057 = vrot.lane.b32.xlu1 %v4302_v52, %s3915_s0  ;;  %v1084_v52 = vmul.bf16 %v849_v15, %v4189_v7 }
 0x31b   : > { %1039 = vrot.lane.b32.xlu0 %v1023_v44, %s3914_s28 }
 0x31e   : > { %1041 = vrot.lane.b32.xlu1 %v1024_v46, %s3914_s28 }
 0x31f   : > { %1059 = vrot.lane.b32.xlu0 %v4305_v54, %s3915_s0  ;;  %v1082_v54 = vmul.bf16 %v4320_v61, %v4191_v8 }
 0x322   : > { %1055 = vrot.lane.b32.xlu1 %v4299_v49, %s3915_s0  ;;  %v3551_v49 = vld [vmem:[%s4223_s10 + $0x30] sm:$0xff] }
 0x323   : > { %1063 = vrot.lane.b32.xlu0 %v4325_v2, %s3915_s0 }
 0x326   : > { %1065 = vrot.lane.b32.xlu1 %v849_v15, %s3915_s0 }
 0x327   : > { %1061 = vrot.lane.b32.xlu0 %v4320_v61, %s3915_s0 }
 0x32a   : > { %1093 = vrot.lane.b32.xlu1 %v1080_v50, %s3916_s6 }
 0x32b   : > { %1095 = vrot.lane.b32.xlu0 %v1081_v55, %s3916_s6 }
 0x32e   : > { %1091 = vrot.lane.b32.xlu1 %v1079_v57, %s3916_s6 }
 0x32f   : > { %1099 = vrot.lane.b32.xlu0 %v1083_v58, %s3916_s6 }
 0x332   : > { %1101 = vrot.lane.b32.xlu1 %v1084_v52, %s3916_s6 }
 0x333   : > { %1097 = vrot.lane.b32.xlu0 %v1082_v54, %s3916_s6 }
 0x336   : > { %1171 = vperm.xlu1 %3794, %v3549_v62  }
 0x337   : > { %1176 = vperm.xlu0 %3793, %v3550_v0  }
 0x33a   : > { %1181 = vperm.xlu1 %3794, %v3551_v49  }
 0x33b   : > { %1186 = vperm.xlu0 %3793, %v3552_v3  }
 0x348   : > { %v864_v2 = vpop.permute.xlu1 %863 }
 0x349   : > { %v868_v4 = vpop.permute.xlu0 %867 }
 0x34c   : > { %v960_v5 = vpop.permute.xlu1 %959 }
 0x34d   : > { %v964_v6 = vpop.permute.xlu0 %963 }
 0x350   : > { %v866_v9 = vpop.permute.xlu1 %865 }
 0x351   : > { %v904_v10 = vpop.permute.xlu0 %903  ;;  %v876_v61 = vsel %vm305_vm13, %v866_v9, %v868_v4  ;;  %v875_v12 = vsel %vm305_vm13, %v864_v2, %v866_v9 }
 0x352   : > { %1229 = vmatprep.subr.bf16.mxu1 %v876_v61 }
 0x353   : > { %1230 = vmatpush1.bf16.msra.mxu1 %v875_v12 }
 0x354   : > { %v962_v13 = vpop.permute.xlu1 %961 }
 0x355   : > { %v940_v15 = vpop.permute.xlu0 %939  ;;  %v972_v2 = vsel %vm426_vm0, %v962_v13, %v964_v6 }
 0x358   : > { %v900_v16 = vpop.permute.xlu1 %899 }
 0x359   : > { %v870_v17 = vpop.permute.xlu0 %869 }
 0x35c   : > { %v936_v18 = vpop.permute.xlu1 %935 }
 0x35d   : > { %v872_v20 = vpop.permute.xlu0 %871 }
 0x35e   : > { %v877_v33 = vsel %vm305_vm13, %v870_v17, %v872_v20 }
 0x360   : > { %v902_v21 = vpop.permute.xlu1 %901 }
 0x361   : > { %v968_v22 = vpop.permute.xlu0 %967  ;;  %v912_v35 = vsel %vm353_vm14, %v902_v21, %v904_v10  ;;  %v911_v44 = vsel %vm353_vm14, %v900_v16, %v902_v21  ;;  %v971_v10 = vsel %vm426_vm0, %v960_v5, %v962_v13 }
 0x364   : > { %v938_v25 = vpop.permute.xlu1 %937 }
 0x365   : > { %v906_v29 = vpop.permute.xlu0 %905  ;;  %v948_v57 = vsel %vm401_vm15, %v938_v25, %v940_v15  ;;  %v947_v54 = vsel %vm401_vm15, %v936_v18, %v938_v25 }
 0x368   : > { %v874_v30 = vpop.permute.xlu1 %873 }
 0x369   : > { %v942_v31 = vpop.permute.xlu0 %941  ;;  %v878_v32 = vsel %vm305_vm13, %v872_v20, %v874_v30 }
 0x36a   : > { %1231 = vmatprep.subr.bf16.mxu1 %v878_v32 }
 0x36b   : > { %1232 = vmatpush1.bf16.msra.mxu1 %v877_v33 }
 0x36c   : > { %1233 = vmatprep.subr.bf16.mxu1 %v912_v35  ;;  %v970_v36 = vpop.permute.xlu1 %969 }
 0x36d   : > { %v908_v40 = vpop.permute.xlu0 %907  ;;  %v974_v61 = vsel %vm426_vm0, %v968_v22, %v970_v36 }
 0x36e   : > { %v913_v55 = vsel %vm353_vm14, %v906_v29, %v908_v40 }
 0x36f   : > { %1234 = vmatpush1.bf16.msra.mxu1 %v911_v44 }
 0x370   : > { %v910_v46 = vpop.permute.xlu1 %909 }
 0x371   : > { %v966_v47 = vpop.permute.xlu0 %965  ;;  %v914_v50 = vsel %vm353_vm14, %v908_v40, %v910_v46 }
 0x372   : > { %1235 = vmatprep.subr.bf16.mxu1 %v914_v50  ;;  %v973_v16 = vsel %vm426_vm0, %v966_v47, %v968_v22 }
 0x373   : > { %1236 = vmatpush1.bf16.msra.mxu1 %v913_v55 }
 0x374   : > { %1237 = vmatprep.subr.bf16.mxu1 %v948_v57  ;;  %v998_v58 = vpop.permute.xlu1 %997 }
 0x375   : > { %v944_v52 = vpop.permute.xlu0 %943 }
 0x376   : > { %v949_v3 = vsel %vm401_vm15, %v942_v31, %v944_v52 }
 0x377   : > { %1238 = vmatpush1.bf16.msra.mxu1 %v947_v54  ;;  %v3806_v54 = vld [vmem:[%s4182_s5 + $0x4c] ss:$12 sps:$4 sm:$0xff]  }
 0x378   : > { %v946_v62 = vpop.permute.xlu1 %945 }
 0x379   : > { %v1000_v0 = vpop.permute.xlu0 %999  ;;  %v950_v49 = vsel %vm401_vm15, %v944_v52, %v946_v62  ;;  %v3803_v52 = vld [vmem:[%s4182_s5 + $0x30] ss:$12 sps:$4 sm:$0xff]  }
 0x37a   : > { %1239 = vmatprep.subr.bf16.mxu1 %v950_v49  ;;  %v1008_v17 = vsel %vm472_vm1, %v998_v58, %v1000_v0 }
 0x37b   : > { %1240 = vmatpush1.bf16.msra.mxu1 %v949_v3 }
 0x37c   : > { %1241 = vmatprep.subr.bf16.mxu1 %v972_v2  ;;  %v996_v4 = vpop.permute.xlu1 %995 }
 0x37d   : > { %v1002_v9 = vpop.permute.xlu0 %1001  ;;  %v1007_v6 = vsel %vm472_vm1, %v996_v4, %v998_v58 }
 0x37f   : > { %1242 = vmatpush1.bf16.msra.mxu1 %v971_v10 }
 0x380   : > { %1243 = vmatprep.subr.bf16.mxu1 %v974_v61  ;;  %v1034_v12 = vpop.permute.xlu1 %1033 }
 0x381   : > { %v1036_v15 = vpop.permute.xlu0 %1035 }
 0x382   : > { %v1044_v29 = vsel %vm518_vm2, %v1034_v12, %v1036_v15 }
 0x383   : > { %1244 = vmatpush1.bf16.msra.mxu1 %v973_v16  ;;  %v3809_v16 = vld [vmem:[%s4182_s5 + $0x38] ss:$12 sps:$4 sm:$0xff]  }
 0x384   : > { %1245 = vmatprep.subr.bf16.mxu1 %v1008_v17  ;;  %v1032_v18 = vpop.permute.xlu1 %1031  ;;  %v3810_v17 = vld [vmem:[%s4182_s5 + $0x50] ss:$12 sps:$4 sm:$0xff]  }
 0x385   : > { %v1004_v20 = vpop.permute.xlu0 %1003  ;;  %v1043_v31 = vsel %vm518_vm2, %v1032_v18, %v1034_v12 }
 0x386   : > { %v1009_v13 = vsel %vm472_vm1, %v1002_v9, %v1004_v20  ;;  %v3808_v9 = vld [vmem:[%s4182_s5 + $0x48] ss:$12 sps:$4 sm:$0xff]  }
 0x387   : > { %1246 = vmatpush1.bf16.msra.mxu1 %v1007_v6 }
 0x388   : > { %v1006_v21 = vpop.permute.xlu1 %1005 }
 0x389   : > { %v1038_v25 = vpop.permute.xlu0 %1037  ;;  %v1010_v5 = vsel %vm472_vm1, %v1004_v20, %v1006_v21 }
 0x38a   : > { %1247 = vmatprep.subr.bf16.mxu1 %v1010_v5 }
 0x38b   : > { %1248 = vmatpush1.bf16.msra.mxu1 %v1009_v13 }
 0x38c   : > { %1249 = vmatprep.subr.bf16.mxu1 %v1044_v29  ;;  %v1058_v22 = vpop.permute.xlu1 %1057 }
 0x38d   : > { %v1040_v30 = vpop.permute.xlu0 %1039 }
 0x38e   : > { %v1045_v36 = vsel %vm518_vm2, %v1038_v25, %v1040_v30 }
 0x38f   : > { %1250 = vmatpush1.bf16.msra.mxu1 %v1043_v31 }
 0x390   : > { %v1042_v32 = vpop.permute.xlu1 %1041 }
 0x391   : > { %v1060_v33 = vpop.permute.xlu0 %1059  ;;  %v1046_v35 = vsel %vm518_vm2, %v1040_v30, %v1042_v32 }
 0x392   : > { %1251 = vmatprep.subr.bf16.mxu1 %v1046_v35  ;;  %v1068_v40 = vsel %vm543_vm3, %v1058_v22, %v1060_v33 }
 0x393   : > { %1252 = vmatpush1.bf16.msra.mxu1 %v1045_v36 }
 0x394   : > { %1253 = vmatprep.subr.bf16.mxu1 %v1068_v40  ;;  %v1056_v44 = vpop.permute.xlu1 %1055 }
 0x395   : > { %v1064_v46 = vpop.permute.xlu0 %1063  ;;  %v1067_v47 = vsel %vm543_vm3, %v1056_v44, %v1058_v22 }
 0x397   : > { %1254 = vmatpush1.bf16.msra.mxu1 %v1067_v47 }
 0x398   : > { %v1066_v50 = vpop.permute.xlu1 %1065 }
 0x399   : > { %v1062_v55 = vpop.permute.xlu0 %1061  ;;  %v1070_v57 = vsel %vm543_vm3, %v1064_v46, %v1066_v50 }
 0x39a   : > { %1255 = vmatprep.subr.bf16.mxu1 %v1070_v57  ;;  %v1069_v58 = vsel %vm543_vm3, %v1062_v55, %v1064_v46 }
 0x39b   : > { %1256 = vmatpush1.bf16.msra.mxu1 %v1069_v58 }
 0x39c   : > { %v1094_v62 = vpop.permute.xlu1 %1093 }
 0x39d   : > { %v1096_v0 = vpop.permute.xlu0 %1095 }
 0x39e   : > { %1258 = vmatmul.mubr.bf16.vlgmr.msra.gmra.mrb[0].mxu1 %v3803_v52  ;;  %v1104_v49 = vsel %vm589_vm4, %v1094_v62, %v1096_v0 }
 0x39f   : > { %1278 = vmatprep.subr.bf16.mxu1 %v1104_v49  ;;  %1267 = vmatprep.mubr.bf16.mxu1 %v3806_v54 }
 0x3a0   : > { %v1092_v3 = vpop.permute.xlu1 %1091 }
 0x3a1   : > { %v1103_v2 = vsel %vm589_vm4, %v1092_v3, %v1094_v62  ;;  %v1100_v4 = vpop.permute.xlu0 %1099 }
 0x3a2   : > { %1279 = vmatpush1.bf16.msra.mxu1 %v1103_v2 }
 0x3a4   : > { %v1102_v10 = vpop.permute.xlu1 %1101 }
 0x3a5   : > { %v1098_v61 = vpop.permute.xlu0 %1097  ;;  %v1106_v12 = vsel %vm589_vm4, %v1100_v4, %v1102_v10 }
 0x3a6   : > { %v1105_v15 = vsel %vm589_vm4, %v1098_v61, %v1100_v4  ;;  %1268 = vmatmul.mubr.bf16.gmra.mrb[4].mxu1 %v3808_v9  ;;  %1280 = vmatprep.subr.bf16.mxu1 %v1106_v12 }
 0x3a7   : > { %1281 = vmatpush1.bf16.msra.mxu1 %v1105_v15  ;;  %1310 = vmatprep.mubr.bf16.mxu1 %v3901_v1 }
 0x3ae   : > { %3559 = vmatmul.mubr.msk.bf16.vlgmr.msra.gmra.mrb[0].mxu1 %vm489_vm11, %v3809_v16 }
 0x3af   : > { %1320 = vmatprep.mubr.bf16.mxu1 %v3901_v1 }
 0x3b5   : > { %v1172_v18 = vpop.permute.xlu1 %1171 }
 0x3b6   : > { %3560 = vmatmul.mubr.msk.bf16.gmra.mrb[4].mxu1 %vm489_vm11, %v3810_v17  ;;  %v1177_v25 = vpop.permute.xlu0 %1176 }
 0x3b9   : > { %v1182_v40 = vpop.permute.xlu1 %1181 }
 0x3ba   : > { %v1187_v55 = vpop.permute.xlu0 %1186 }
 0x481   : > { %v1312_v20 = vpop.f32.mrb[0].mxu1 }
 0x482   : > { %v3662_v6 = vadd.f32 %v1312_v20, %v1172_v18  ;;  %v1314_v21 = vpop.f32.mrb[1].mxu1 }
 0x483   : > { %v3663_v5 = vadd.f32 %v1314_v21, %v1172_v18  ;;  %v1316_v13 = vpop.f32.mrb[2].mxu1 }
 0x484   : > { %v3664_v29 = vadd.f32 %v1316_v13, %v1177_v25  ;;  %v1318_v22 = vpop.f32.mrb[3].mxu1  ;;  %v1331_v31 = vmax.f32 %v3662_v6, 0.0 }
 0x485   : > { %v3665_v30 = vadd.f32 %v1318_v22, %v1177_v25  ;;  %v1332_v33 = vmax.f32 %v3663_v5, 0.0 }
 0x486   : > { %v1333_v32 = vmax.f32 %v3664_v29, 0.0 }
 0x487   : > { %v1334_v35 = vmax.f32 %v3665_v30, 0.0 }
 0x488   : > { %v1339_v36 = vpack.c.bf16 %v1333_v32, %v1331_v31 }
 0x489   : > { %v1340_v44 = vpack.c.bf16 %v1334_v35, %v1332_v33  ;;  %v1322_v46 = vpop.f32.mrb[4].mxu1 }
 0x48a   : > { %v3666_v47 = vadd.f32 %v1322_v46, %v1182_v40  ;;  %v1324_v50 = vpop.f32.mrb[5].mxu1  ;;  %1347 = vrot.lane.b32.xlu1 %v1339_v36, %s3902_s11 }
 0x48b   : > { %v3667_v57 = vadd.f32 %v1324_v50, %v1182_v40  ;;  %v1326_v58 = vpop.f32.mrb[6].mxu1  ;;  %1349 = vrot.lane.b32.xlu0 %v1340_v44, %s3902_s11 }
 0x48c   : > { %v3668_v52 = vadd.f32 %v1326_v58, %v1187_v55  ;;  %v1328_v54 = vpop.f32.mrb[7].mxu1  ;;  %v1335_v0 = vmax.f32 %v3666_v47, 0.0 }
 0x48d   : > { %v3669_v62 = vadd.f32 %v1328_v54, %v1187_v55  ;;  %v1336_v3 = vmax.f32 %v3667_v57, 0.0 }
 0x48e   : > { %v1337_v49 = vmax.f32 %v3668_v52, 0.0 }
 0x48f   : > { %v1338_v2 = vmax.f32 %v3669_v62, 0.0 }
 0x490   : > { %v1341_v4 = vpack.c.bf16 %v1337_v49, %v1335_v0 }
 0x491   : > { %v1342_v9 = vpack.c.bf16 %v1338_v2, %v1336_v3 }
 0x492   : > { %1351 = vrot.lane.b32.xlu1 %v1341_v4, %s3902_s11 }
 0x493   : > { %1353 = vrot.lane.b32.xlu0 %v1342_v9, %s3902_s11 }
 0x4fc   : > { %v1348_v10 = vpop.permute.xlu1 %1347 }
 0x4fd   : > { %v4491_v61 = vsel %vm264_vm7, 0, %v1348_v10  ;;  %v1350_v12 = vpop.permute.xlu0 %1349 }
 0x4fe   : > { %v4494_v15 = vsel %vm264_vm7, %v1348_v10, %v1350_v12  ;;  %v4497_v16 = vsel %vm264_vm7, %v1350_v12, 0  ;;  %1383 = vrot.lane.b32.xlu1 %v4491_v61, %s3909_s23  ;;  %v1371_v18 = vmul.bf16 %v4491_v61, %v4009_v14  ;;  %v1407_v30 = vmul.bf16 %v4491_v61, %v4043_v26  ;;  %v3813_v10 = vld [vmem:[%s4182_s5 + $0x64] ss:$12 sps:$4 sm:$0xff]  }
 0x4ff   : > { %1387 = vrot.lane.b32.xlu0 %v4497_v16, %s3909_s23  ;;  %v1372_v17 = vmul.bf16 %v4494_v15, %v4015_v19  ;;  %v1409_v25 = vmul.bf16 %v4497_v16, %v4077_v39  ;;  %v1445_v22 = vmul.bf16 %v4497_v16, %v4087_v42  ;;  %v1443_v31 = vmul.bf16 %v4491_v61, %v4063_v34 }
 0x500   : > { %v1408_v32 = vmul.bf16 %v4494_v15, %v4097_v45  ;;  %v1444_v33 = vmul.bf16 %v4494_v15, %v4109_v48  ;;  %v1504_v47 = vmul.bf16 %v4494_v15, %v4136_v56  ;;  %v1505_v57 = vmul.bf16 %v4497_v16, %v4125_v53  ;;  %1777 = vmatprep.mubr.bf16.mxu0 %v3813_v10 }
 0x501   : > { %1745 = vmatprep.subr.bf16.mxu0 %v1372_v17  ;;  %v1503_v58 = vmul.bf16 %v4491_v61, %v4119_v51  ;;  %v1540_v54 = vmul.bf16 %v4494_v15, %v4157_v63  ;;  %v1541_v62 = vmul.bf16 %v4497_v16, %v4146_v60  ;;  %v1539_v0 = vmul.bf16 %v4491_v61, %v4144_v59 }
 0x502   : > { %1479 = vrot.lane.b32.xlu1 %v4491_v61, %s3912_s26  ;;  %1746 = vmatpush1.bf16.msra.mxu0 %v1371_v18  ;;  %v1600_v12 = vmul.bf16 %v4494_v15, %v4203_v11  ;;  %v1601_v17 = vmul.bf16 %v4497_v16, %v4189_v7  ;;  %v1599_v18 = vmul.bf16 %v4491_v61, %v4191_v8 }
 0x503   : > { %1483 = vrot.lane.b32.xlu0 %v4497_v16, %s3912_s26 }
 0x504   : > { %v1352_v20 = vpop.permute.xlu1 %1351 }
 0x505   : > { %v4512_v6 = vsel %vm264_vm7, 0, %v1352_v20  ;;  %v1354_v21 = vpop.permute.xlu0 %1353 }
 0x506   : > { %v4517_v5 = vsel %vm264_vm7, %v1352_v20, %v1354_v21  ;;  %1385 = vrot.lane.b32.xlu1 %v4494_v15, %s3909_s23  ;;  %v1373_v29 = vmul.bf16 %v4512_v6, %v4009_v14  ;;  %v1410_v35 = vmul.bf16 %v4512_v6, %v4043_v26  ;;  %v1369_v36 = vsel %vm264_vm7, %v1354_v21, 0  ;;  %v3571_v21 = vld [vmem:[%s4223_s10 + $0x40] sm:$0xff] }
 0x507   : > { %1423 = vrot.lane.b32.xlu0 %v1409_v25, %s3910_s24  ;;  %v1374_v13 = vmul.bf16 %v4517_v5, %v4015_v19  ;;  %v1446_v40 = vmul.bf16 %v4512_v6, %v4063_v34  ;;  %v1411_v44 = vmul.bf16 %v4517_v5, %v4097_v45  ;;  %v1412_v46 = vmul.bf16 %v1369_v36, %v4077_v39  ;;  %v3572_v25 = vld [vmem:[%s4223_s10 + $0x48] sm:$0xff] }
 0x508   : > { %v1447_v50 = vmul.bf16 %v4517_v5, %v4109_v48  ;;  %v1448_v55 = vmul.bf16 %v1369_v36, %v4087_v42  ;;  %v1506_v52 = vmul.bf16 %v4512_v6, %v4119_v51  ;;  %v1507_v49 = vmul.bf16 %v4517_v5, %v4136_v56 }
 0x509   : > { %1747 = vmatprep.subr.bf16.mxu0 %v1374_v13  ;;  %v1508_v3 = vmul.bf16 %v1369_v36, %v4125_v53  ;;  %v1542_v2 = vmul.bf16 %v4512_v6, %v4144_v59  ;;  %v1543_v4 = vmul.bf16 %v4517_v5, %v4157_v63  ;;  %v1544_v9 = vmul.bf16 %v1369_v36, %v4146_v60  ;;  %v3574_v13 = vld [vmem:[%s4223_s10 + $0x58] sm:$0xff] }
 0x50a   : > { %1481 = vrot.lane.b32.xlu1 %v4494_v15, %s3912_s26  ;;  %1748 = vmatpush1.bf16.msra.mxu0 %v1373_v29  ;;  %v1603_v20 = vmul.bf16 %v4517_v5, %v4203_v11 }
 0x50b   : > { %1459 = vrot.lane.b32.xlu0 %v1445_v22, %s3911_s25 }
 0x50e   : > { %1419 = vrot.lane.b32.xlu1 %v1407_v30, %s3910_s24 }
 0x50f   : > { %1389 = vrot.lane.b32.xlu0 %v4512_v6, %s3909_s23 }
 0x512   : > { %1455 = vrot.lane.b32.xlu1 %v1443_v31, %s3911_s25 }
 0x513   : > { %1391 = vrot.lane.b32.xlu0 %v4517_v5, %s3909_s23 }
 0x516   : > { %1421 = vrot.lane.b32.xlu1 %v1408_v32, %s3910_s24 }
 0x517   : > { %1487 = vrot.lane.b32.xlu0 %v4517_v5, %s3912_s26 }
 0x51a   : > { %1457 = vrot.lane.b32.xlu1 %v1444_v33, %s3911_s25 }
 0x51b   : > { %1425 = vrot.lane.b32.xlu0 %v1410_v35, %s3910_s24 }
 0x51e   : > { %1393 = vrot.lane.b32.xlu1 %v1369_v36, %s3909_s23 }
 0x51f   : > { %1461 = vrot.lane.b32.xlu0 %v1446_v40, %s3911_s25 }
 0x522   : > { %1489 = vrot.lane.b32.xlu1 %v1369_v36, %s3912_s26 }
 0x523   : > { %1427 = vrot.lane.b32.xlu0 %v1411_v44, %s3910_s24 }
 0x526   : > { %1429 = vrot.lane.b32.xlu1 %v1412_v46, %s3910_s24 }
 0x527   : > { %1485 = vrot.lane.b32.xlu0 %v4512_v6, %s3912_s26 }
 0x52a   : > { %1517 = vrot.lane.b32.xlu1 %v1504_v47, %s3913_s27 }
 0x52b   : > { %1463 = vrot.lane.b32.xlu0 %v1447_v50, %s3911_s25 }
 0x52e   : > { %1465 = vrot.lane.b32.xlu1 %v1448_v55, %s3911_s25 }
 0x52f   : > { %1519 = vrot.lane.b32.xlu0 %v1505_v57, %s3913_s27 }
 0x532   : > { %1515 = vrot.lane.b32.xlu1 %v1503_v58, %s3913_s27 }
 0x533   : > { %1521 = vrot.lane.b32.xlu0 %v1506_v52, %s3913_s27 }
 0x536   : > { %1553 = vrot.lane.b32.xlu1 %v1540_v54, %s3914_s28 }
 0x537   : > { %1555 = vrot.lane.b32.xlu0 %v1541_v62, %s3914_s28 }
 0x53a   : > { %1551 = vrot.lane.b32.xlu1 %v1539_v0, %s3914_s28 }
 0x53b   : > { %1523 = vrot.lane.b32.xlu0 %v1507_v49, %s3913_s27 }
 0x53e   : > { %1525 = vrot.lane.b32.xlu1 %v1508_v3, %s3913_s27 }
 0x53f   : > { %1557 = vrot.lane.b32.xlu0 %v1542_v2, %s3914_s28 }
 0x542   : > { %1577 = vrot.lane.b32.xlu1 %v4494_v15, %s3915_s0  ;;  %v1604_v15 = vmul.bf16 %v1369_v36, %v4189_v7 }
 0x543   : > { %1559 = vrot.lane.b32.xlu0 %v1543_v4, %s3914_s28 }
 0x546   : > { %1561 = vrot.lane.b32.xlu1 %v1544_v9, %s3914_s28 }
 0x547   : > { %1579 = vrot.lane.b32.xlu0 %v4497_v16, %s3915_s0  ;;  %v1602_v16 = vmul.bf16 %v4512_v6, %v4191_v8 }
 0x54a   : > { %1575 = vrot.lane.b32.xlu1 %v4491_v61, %s3915_s0  ;;  %v3573_v61 = vld [vmem:[%s4223_s10 + $0x50] sm:$0xff] }
 0x54b   : > { %1583 = vrot.lane.b32.xlu0 %v4517_v5, %s3915_s0 }
 0x54e   : > { %1585 = vrot.lane.b32.xlu1 %v1369_v36, %s3915_s0 }
 0x54f   : > { %1581 = vrot.lane.b32.xlu0 %v4512_v6, %s3915_s0 }
 0x552   : > { %1613 = vrot.lane.b32.xlu1 %v1600_v12, %s3916_s6 }
 0x553   : > { %1615 = vrot.lane.b32.xlu0 %v1601_v17, %s3916_s6 }
 0x556   : > { %1611 = vrot.lane.b32.xlu1 %v1599_v18, %s3916_s6 }
 0x557   : > { %1619 = vrot.lane.b32.xlu0 %v1603_v20, %s3916_s6 }
 0x55a   : > { %1621 = vrot.lane.b32.xlu1 %v1604_v15, %s3916_s6 }
 0x55b   : > { %1617 = vrot.lane.b32.xlu0 %v1602_v16, %s3916_s6 }
 0x55e   : > { %1691 = vperm.xlu1 %3794, %v3571_v21  }
 0x55f   : > { %1696 = vperm.xlu0 %3793, %v3572_v25  }
 0x562   : > { %1701 = vperm.xlu1 %3794, %v3573_v61  }
 0x563   : > { %1706 = vperm.xlu0 %3793, %v3574_v13  }
 0x570   : > { %v1384_v5 = vpop.permute.xlu1 %1383 }
 0x571   : > { %v1388_v29 = vpop.permute.xlu0 %1387 }
 0x574   : > { %v1480_v22 = vpop.permute.xlu1 %1479 }
 0x575   : > { %v1484_v30 = vpop.permute.xlu0 %1483 }
 0x578   : > { %v1386_v31 = vpop.permute.xlu1 %1385 }
 0x579   : > { %v1424_v32 = vpop.permute.xlu0 %1423  ;;  %v1396_v6 = vsel %vm305_vm13, %v1386_v31, %v1388_v29  ;;  %v1395_v33 = vsel %vm305_vm13, %v1384_v5, %v1386_v31 }
 0x57a   : > { %1749 = vmatprep.subr.bf16.mxu0 %v1396_v6 }
 0x57b   : > { %1750 = vmatpush1.bf16.msra.mxu0 %v1395_v33 }
 0x57c   : > { %v1482_v35 = vpop.permute.xlu1 %1481 }
 0x57d   : > { %v1460_v36 = vpop.permute.xlu0 %1459  ;;  %v1492_v5 = vsel %vm426_vm0, %v1482_v35, %v1484_v30 }
 0x580   : > { %v1420_v40 = vpop.permute.xlu1 %1419 }
 0x581   : > { %v1390_v44 = vpop.permute.xlu0 %1389 }
 0x584   : > { %v1456_v46 = vpop.permute.xlu1 %1455 }
 0x585   : > { %v1392_v47 = vpop.permute.xlu0 %1391 }
 0x586   : > { %v1397_v0 = vsel %vm305_vm13, %v1390_v44, %v1392_v47 }
 0x588   : > { %v1422_v50 = vpop.permute.xlu1 %1421 }
 0x589   : > { %v1488_v55 = vpop.permute.xlu0 %1487  ;;  %v1432_v49 = vsel %vm353_vm14, %v1422_v50, %v1424_v32  ;;  %v1431_v4 = vsel %vm353_vm14, %v1420_v40, %v1422_v50  ;;  %v1491_v32 = vsel %vm426_vm0, %v1480_v22, %v1482_v35 }
 0x58c   : > { %v1458_v57 = vpop.permute.xlu1 %1457 }
 0x58d   : > { %v1426_v58 = vpop.permute.xlu0 %1425  ;;  %v1468_v18 = vsel %vm401_vm15, %v1458_v57, %v1460_v36  ;;  %v1467_v16 = vsel %vm401_vm15, %v1456_v46, %v1458_v57 }
 0x590   : > { %v1394_v52 = vpop.permute.xlu1 %1393 }
 0x591   : > { %v1462_v54 = vpop.permute.xlu0 %1461  ;;  %v1398_v62 = vsel %vm305_vm13, %v1392_v47, %v1394_v52 }
 0x592   : > { %1751 = vmatprep.subr.bf16.mxu0 %v1398_v62 }
 0x593   : > { %1752 = vmatpush1.bf16.msra.mxu0 %v1397_v0 }
 0x594   : > { %1753 = vmatprep.subr.bf16.mxu0 %v1432_v49  ;;  %v1490_v3 = vpop.permute.xlu1 %1489 }
 0x595   : > { %v1428_v2 = vpop.permute.xlu0 %1427  ;;  %v1494_v6 = vsel %vm426_vm0, %v1488_v55, %v1490_v3 }
 0x596   : > { %v1433_v17 = vsel %vm353_vm14, %v1426_v58, %v1428_v2 }
 0x597   : > { %1754 = vmatpush1.bf16.msra.mxu0 %v1431_v4 }
 0x598   : > { %v1430_v9 = vpop.permute.xlu1 %1429 }
 0x599   : > { %v1486_v10 = vpop.permute.xlu0 %1485  ;;  %v1434_v12 = vsel %vm353_vm14, %v1428_v2, %v1430_v9 }
 0x59a   : > { %1755 = vmatprep.subr.bf16.mxu0 %v1434_v12  ;;  %v1493_v40 = vsel %vm426_vm0, %v1486_v10, %v1488_v55 }
 0x59b   : > { %1756 = vmatpush1.bf16.msra.mxu0 %v1433_v17 }
 0x59c   : > { %1757 = vmatprep.subr.bf16.mxu0 %v1468_v18  ;;  %v1518_v20 = vpop.permute.xlu1 %1517 }
 0x59d   : > { %v1464_v15 = vpop.permute.xlu0 %1463 }
 0x59e   : > { %v1469_v13 = vsel %vm401_vm15, %v1462_v54, %v1464_v15 }
 0x59f   : > { %1758 = vmatpush1.bf16.msra.mxu0 %v1467_v16  ;;  %v3814_v16 = vld [vmem:[%s4182_s5 + $0x7c] ss:$12 sps:$4 sm:$0xff]  }
 0x5a0   : > { %v1466_v21 = vpop.permute.xlu1 %1465 }
 0x5a1   : > { %v1520_v25 = vpop.permute.xlu0 %1519  ;;  %v1470_v61 = vsel %vm401_vm15, %v1464_v15, %v1466_v21  ;;  %v3811_v15 = vld [vmem:[%s4182_s5 + $0x60] ss:$12 sps:$4 sm:$0xff]  }
 0x5a2   : > { %1759 = vmatprep.subr.bf16.mxu0 %v1470_v61  ;;  %v1528_v44 = vsel %vm472_vm1, %v1518_v20, %v1520_v25 }
 0x5a3   : > { %1760 = vmatpush1.bf16.msra.mxu0 %v1469_v13 }
 0x5a4   : > { %1761 = vmatprep.subr.bf16.mxu0 %v1492_v5  ;;  %v1516_v29 = vpop.permute.xlu1 %1515 }
 0x5a5   : > { %v1522_v31 = vpop.permute.xlu0 %1521  ;;  %v1527_v30 = vsel %vm472_vm1, %v1516_v29, %v1518_v20 }
 0x5a7   : > { %1762 = vmatpush1.bf16.msra.mxu0 %v1491_v32 }
 0x5a8   : > { %1763 = vmatprep.subr.bf16.mxu0 %v1494_v6  ;;  %v1554_v33 = vpop.permute.xlu1 %1553 }
 0x5a9   : > { %v1556_v36 = vpop.permute.xlu0 %1555 }
 0x5aa   : > { %v1564_v58 = vsel %vm518_vm2, %v1554_v33, %v1556_v36 }
 0x5ab   : > { %1764 = vmatpush1.bf16.msra.mxu0 %v1493_v40  ;;  %v3817_v40 = vld [vmem:[%s4182_s5 + $0x68] ss:$12 sps:$4 sm:$0xff]  }
 0x5ac   : > { %1765 = vmatprep.subr.bf16.mxu0 %v1528_v44  ;;  %v1552_v46 = vpop.permute.xlu1 %1551  ;;  %v3818_v44 = vld [vmem:[%s4182_s5 + $0x80] ss:$12 sps:$4 sm:$0xff]  }
 0x5ad   : > { %v1524_v47 = vpop.permute.xlu0 %1523  ;;  %v1563_v54 = vsel %vm518_vm2, %v1552_v46, %v1554_v33 }
 0x5ae   : > { %v1529_v35 = vsel %vm472_vm1, %v1522_v31, %v1524_v47  ;;  %v3816_v31 = vld [vmem:[%s4182_s5 + $0x78] ss:$12 sps:$4 sm:$0xff]  }
 0x5af   : > { %1766 = vmatpush1.bf16.msra.mxu0 %v1527_v30 }
 0x5b0   : > { %v1526_v50 = vpop.permute.xlu1 %1525 }
 0x5b1   : > { %v1558_v57 = vpop.permute.xlu0 %1557  ;;  %v1530_v22 = vsel %vm472_vm1, %v1524_v47, %v1526_v50 }
 0x5b2   : > { %1767 = vmatprep.subr.bf16.mxu0 %v1530_v22 }
 0x5b3   : > { %1768 = vmatpush1.bf16.msra.mxu0 %v1529_v35 }
 0x5b4   : > { %1769 = vmatprep.subr.bf16.mxu0 %v1564_v58  ;;  %v1578_v55 = vpop.permute.xlu1 %1577 }
 0x5b5   : > { %v1560_v52 = vpop.permute.xlu0 %1559 }
 0x5b6   : > { %v1565_v3 = vsel %vm518_vm2, %v1558_v57, %v1560_v52 }
 0x5b7   : > { %1770 = vmatpush1.bf16.msra.mxu0 %v1563_v54 }
 0x5b8   : > { %v1562_v62 = vpop.permute.xlu1 %1561 }
 0x5b9   : > { %v1580_v0 = vpop.permute.xlu0 %1579  ;;  %v1566_v49 = vsel %vm518_vm2, %v1560_v52, %v1562_v62 }
 0x5ba   : > { %1771 = vmatprep.subr.bf16.mxu0 %v1566_v49  ;;  %v1588_v2 = vsel %vm543_vm3, %v1578_v55, %v1580_v0 }
 0x5bb   : > { %1772 = vmatpush1.bf16.msra.mxu0 %v1565_v3 }
 0x5bc   : > { %1773 = vmatprep.subr.bf16.mxu0 %v1588_v2  ;;  %v1576_v4 = vpop.permute.xlu1 %1575 }
 0x5bd   : > { %v1587_v9 = vsel %vm543_vm3, %v1576_v4, %v1578_v55  ;;  %v1584_v10 = vpop.permute.xlu0 %1583 }
 0x5bf   : > { %1774 = vmatpush1.bf16.msra.mxu0 %v1587_v9 }
 0x5c0   : > { %v1586_v12 = vpop.permute.xlu1 %1585 }
 0x5c1   : > { %v1582_v17 = vpop.permute.xlu0 %1581  ;;  %v1590_v18 = vsel %vm543_vm3, %v1584_v10, %v1586_v12 }
 0x5c2   : > { %v1589_v20 = vsel %vm543_vm3, %v1582_v17, %v1584_v10  ;;  %1775 = vmatprep.subr.bf16.mxu0 %v1590_v18 }
 0x5c3   : > { %1776 = vmatpush1.bf16.msra.mxu0 %v1589_v20 }
 0x5c4   : > { %v1614_v21 = vpop.permute.xlu1 %1613 }
 0x5c5   : > { %v1616_v25 = vpop.permute.xlu0 %1615 }
 0x5c6   : > { %1778 = vmatmul.mubr.bf16.vlgmr.msra.gmra.mrb[8].mxu0 %v3811_v15  ;;  %v1624_v61 = vsel %vm589_vm4, %v1614_v21, %v1616_v25 }
 0x5c7   : > { %1798 = vmatprep.subr.bf16.mxu0 %v1624_v61  ;;  %1787 = vmatprep.mubr.bf16.mxu0 %v3814_v16 }
 0x5c8   : > { %v1612_v13 = vpop.permute.xlu1 %1611 }
 0x5c9   : > { %v1623_v5 = vsel %vm589_vm4, %v1612_v13, %v1614_v21  ;;  %v1620_v29 = vpop.permute.xlu0 %1619 }
 0x5ca   : > { %1799 = vmatpush1.bf16.msra.mxu0 %v1623_v5 }
 0x5cc   : > { %v1622_v32 = vpop.permute.xlu1 %1621 }
 0x5cd   : > { %v1618_v6 = vpop.permute.xlu0 %1617  ;;  %v1626_v33 = vsel %vm589_vm4, %v1620_v29, %v1622_v32 }
 0x5ce   : > { %v1625_v36 = vsel %vm589_vm4, %v1618_v6, %v1620_v29  ;;  %1788 = vmatmul.mubr.bf16.gmra.mrb[12].mxu0 %v3816_v31  ;;  %1800 = vmatprep.subr.bf16.mxu0 %v1626_v33 }
 0x5cf   : > { %1801 = vmatpush1.bf16.msra.mxu0 %v1625_v36  ;;  %1830 = vmatprep.mubr.bf16.mxu0 %v3901_v1 }
 0x5d6   : > { %3581 = vmatmul.mubr.msk.bf16.vlgmr.msra.gmra.mrb[8].mxu0 %vm489_vm11, %v3817_v40 }
 0x5d7   : > { %1840 = vmatprep.mubr.bf16.mxu0 %v3901_v1 }
 0x5dd   : > { %v1692_v46 = vpop.permute.xlu1 %1691 }
 0x5de   : > { %3582 = vmatmul.mubr.msk.bf16.gmra.mrb[12].mxu0 %vm489_vm11, %v3818_v44  ;;  %v1697_v57 = vpop.permute.xlu0 %1696 }
 0x5e1   : > { %v1702_v2 = vpop.permute.xlu1 %1701 }
 0x6a9   : > { %v1832_v47 = vpop.f32.mrb[8].mxu0 }
 0x6aa   : > { %v3670_v30 = vadd.f32 %v1832_v47, %v1692_v46  ;;  %v1834_v50 = vpop.f32.mrb[9].mxu0 }
 0x6ab   : > { %v3671_v22 = vadd.f32 %v1834_v50, %v1692_v46  ;;  %v1836_v35 = vpop.f32.mrb[10].mxu0 }
 0x6ac   : > { %v3672_v58 = vadd.f32 %v1836_v35, %v1697_v57  ;;  %v1838_v55 = vpop.f32.mrb[11].mxu0  ;;  %v4679_v54 = vadd.f32 %v3670_v30, %v4270_v23 }
 0x6ad   : > { %v3673_v52 = vadd.f32 %v1838_v55, %v1697_v57  ;;  %v4685_v0 = vadd.f32 %v3671_v22, %v4274_v27 }
 0x6ae   : > { %v4682_v62 = vadd.f32 %v3672_v58, %v4272_v24  ;;  %v1707_v24 = vpop.permute.xlu0 %1706 }
 0x6af   : > { %v4688_v49 = vadd.f32 %v3673_v52, %v4276_v28 }
 0x6b0   : > { %v1859_v3 = vpack.c.bf16 %v4682_v62, %v4679_v54 }
 0x6b1   : > { %v1860_v4 = vpack.c.bf16 %v4688_v49, %v4685_v0  ;;  %v1842_v9 = vpop.f32.mrb[12].mxu0 }
 0x6b2   : > { %v3674_v10 = vadd.f32 %v1842_v9, %v1702_v2  ;;  %v1844_v23 = vpop.f32.mrb[13].mxu0  ;;  %1867 = vrot.lane.b32.xlu1 %v1859_v3, %s3902_s11 }
 0x6b3   : > { %v3675_v12 = vadd.f32 %v1844_v23, %v1702_v2  ;;  %v1846_v17 = vpop.f32.mrb[14].mxu0  ;;  %1869 = vrot.lane.b32.xlu0 %v1860_v4, %s3902_s11 }
 0x6b4   : > { %v3676_v27 = vadd.f32 %v1846_v17, %v1707_v24  ;;  %v1848_v28 = vpop.f32.mrb[15].mxu0  ;;  %v4697_v20 = vadd.f32 %v3674_v10, %v4284_v37 }
 0x6b5   : > { %v3677_v18 = vadd.f32 %v1848_v28, %v1707_v24  ;;  %v4703_v16 = vadd.f32 %v3675_v12, %v4288_v41 }
 0x6b6   : > { %v4700_v15 = vadd.f32 %v3676_v27, %v4286_v38 }
 0x6b7   : > { %v4706_v21 = vadd.f32 %v3677_v18, %v4290_v43 }
 0x6b8   : > { %v1861_v25 = vpack.c.bf16 %v4700_v15, %v4697_v20 }
 0x6b9   : > { %v1862_v61 = vpack.c.bf16 %v4706_v21, %v4703_v16 }
 0x6ba   : > { %1871 = vrot.lane.b32.xlu1 %v1861_v25, %s3902_s11 }
 0x6bb   : > { %1873 = vrot.lane.b32.xlu0 %v1862_v61, %s3902_s11 }
 0x724   : > { %v1868_v37 = vpop.permute.xlu1 %1867 }
 0x725   : > { %v4715_v38 = vsel %vm264_vm7, 0, %v1868_v37  ;;  %v1870_v13 = vpop.permute.xlu0 %1869 }
 0x726   : > { %v4718_v41 = vsel %vm264_vm7, %v1868_v37, %v1870_v13  ;;  %v4721_v43 = vsel %vm264_vm7, %v1870_v13, 0  ;;  %1903 = vrot.lane.b32.xlu1 %v4715_v38, %s3909_s23  ;;  %v1891_v29 = vmul.bf16 %v4715_v38, %v4009_v14  ;;  %v1927_v47 = vmul.bf16 %v4715_v38, %v4043_v26  ;;  %v3821_v37 = vld [vmem:[%s4182_s5 + $0x94] ss:$12 sps:$4 sm:$0xff]  }
 0x727   : > { %1907 = vrot.lane.b32.xlu0 %v4721_v43, %s3909_s23  ;;  %v1892_v5 = vmul.bf16 %v4718_v41, %v4015_v19  ;;  %v1929_v33 = vmul.bf16 %v4721_v43, %v4077_v39  ;;  %v1965_v46 = vmul.bf16 %v4721_v43, %v4087_v42  ;;  %v1963_v30 = vmul.bf16 %v4715_v38, %v4063_v34 }
 0x728   : > { %v1928_v50 = vmul.bf16 %v4718_v41, %v4097_v45  ;;  %v1964_v57 = vmul.bf16 %v4718_v41, %v4109_v48  ;;  %v2024_v3 = vmul.bf16 %v4718_v41, %v4136_v56  ;;  %v2025_v9 = vmul.bf16 %v4721_v43, %v4125_v53  ;;  %2297 = vmatprep.mubr.bf16.mxu1 %v3821_v37 }
 0x729   : > { %2265 = vmatprep.subr.bf16.mxu1 %v1892_v5  ;;  %v2023_v10 = vmul.bf16 %v4715_v38, %v4119_v51  ;;  %v2060_v24 = vmul.bf16 %v4718_v41, %v4157_v63  ;;  %v2061_v12 = vmul.bf16 %v4721_v43, %v4146_v60  ;;  %v2059_v17 = vmul.bf16 %v4715_v38, %v4144_v59 }
 0x72a   : > { %1999 = vrot.lane.b32.xlu1 %v4715_v38, %s3912_s26  ;;  %2266 = vmatpush1.bf16.msra.mxu1 %v1891_v29  ;;  %v2120_v13 = vmul.bf16 %v4718_v41, %v4203_v11  ;;  %v2121_v5 = vmul.bf16 %v4721_v43, %v4189_v7  ;;  %v2119_v29 = vmul.bf16 %v4715_v38, %v4191_v8 }
 0x72b   : > { %2003 = vrot.lane.b32.xlu0 %v4721_v43, %s3912_s26 }
 0x72c   : > { %v1872_v31 = vpop.permute.xlu1 %1871 }
 0x72d   : > { %v4736_v32 = vsel %vm264_vm7, 0, %v1872_v31  ;;  %v1874_v6 = vpop.permute.xlu0 %1873 }
 0x72e   : > { %v4741_v36 = vsel %vm264_vm7, %v1872_v31, %v1874_v6  ;;  %1905 = vrot.lane.b32.xlu1 %v4718_v41, %s3909_s23  ;;  %v1893_v44 = vmul.bf16 %v4736_v32, %v4009_v14  ;;  %v1930_v22 = vmul.bf16 %v4736_v32, %v4043_v26  ;;  %v1889_v35 = vsel %vm264_vm7, %v1874_v6, 0  ;;  %v3593_v6 = vld [vmem:[%s4223_s10 + $0x60] sm:$0xff] }
 0x72f   : > { %1943 = vrot.lane.b32.xlu0 %v1929_v33, %s3910_s24  ;;  %v1894_v40 = vmul.bf16 %v4741_v36, %v4015_v19  ;;  %v1966_v58 = vmul.bf16 %v4736_v32, %v4063_v34  ;;  %v1931_v55 = vmul.bf16 %v4741_v36, %v4097_v45  ;;  %v1932_v52 = vmul.bf16 %v1889_v35, %v4077_v39  ;;  %v3594_v33 = vld [vmem:[%s4223_s10 + $0x68] sm:$0xff] }
 0x730   : > { %v1967_v2 = vmul.bf16 %v4741_v36, %v4109_v48  ;;  %v1968_v4 = vmul.bf16 %v1889_v35, %v4087_v42  ;;  %v2026_v23 = vmul.bf16 %v4736_v32, %v4119_v51  ;;  %v2027_v27 = vmul.bf16 %v4741_v36, %v4136_v56 }
 0x731   : > { %2267 = vmatprep.subr.bf16.mxu1 %v1894_v40  ;;  %v2028_v28 = vmul.bf16 %v1889_v35, %v4125_v53  ;;  %v2062_v18 = vmul.bf16 %v4736_v32, %v4144_v59  ;;  %v2063_v25 = vmul.bf16 %v4741_v36, %v4157_v63  ;;  %v2064_v61 = vmul.bf16 %v1889_v35, %v4146_v60  ;;  %v3596_v40 = vld [vmem:[%s4223_s10 + $0x78] sm:$0xff] }
 0x732   : > { %2001 = vrot.lane.b32.xlu1 %v4718_v41, %s3912_s26  ;;  %2268 = vmatpush1.bf16.msra.mxu1 %v1893_v44  ;;  %v2123_v31 = vmul.bf16 %v4741_v36, %v4203_v11 }
 0x733   : > { %1979 = vrot.lane.b32.xlu0 %v1965_v46, %s3911_s25 }
 0x736   : > { %1939 = vrot.lane.b32.xlu1 %v1927_v47, %s3910_s24 }
 0x737   : > { %1909 = vrot.lane.b32.xlu0 %v4736_v32, %s3909_s23 }
 0x73a   : > { %1975 = vrot.lane.b32.xlu1 %v1963_v30, %s3911_s25 }
 0x73b   : > { %1911 = vrot.lane.b32.xlu0 %v4741_v36, %s3909_s23 }
 0x73e   : > { %1941 = vrot.lane.b32.xlu1 %v1928_v50, %s3910_s24 }
 0x73f   : > { %2007 = vrot.lane.b32.xlu0 %v4741_v36, %s3912_s26 }
 0x742   : > { %1977 = vrot.lane.b32.xlu1 %v1964_v57, %s3911_s25 }
 0x743   : > { %1945 = vrot.lane.b32.xlu0 %v1930_v22, %s3910_s24 }
 0x746   : > { %1913 = vrot.lane.b32.xlu1 %v1889_v35, %s3909_s23 }
 0x747   : > { %1981 = vrot.lane.b32.xlu0 %v1966_v58, %s3911_s25 }
 0x74a   : > { %2009 = vrot.lane.b32.xlu1 %v1889_v35, %s3912_s26 }
 0x74b   : > { %1947 = vrot.lane.b32.xlu0 %v1931_v55, %s3910_s24 }
 0x74e   : > { %1949 = vrot.lane.b32.xlu1 %v1932_v52, %s3910_s24 }
 0x74f   : > { %2005 = vrot.lane.b32.xlu0 %v4736_v32, %s3912_s26 }
 0x752   : > { %2037 = vrot.lane.b32.xlu1 %v2024_v3, %s3913_s27 }
 0x753   : > { %1983 = vrot.lane.b32.xlu0 %v1967_v2, %s3911_s25 }
 0x756   : > { %1985 = vrot.lane.b32.xlu1 %v1968_v4, %s3911_s25 }
 0x757   : > { %2039 = vrot.lane.b32.xlu0 %v2025_v9, %s3913_s27 }
 0x75a   : > { %2035 = vrot.lane.b32.xlu1 %v2023_v10, %s3913_s27 }
 0x75b   : > { %2041 = vrot.lane.b32.xlu0 %v2026_v23, %s3913_s27 }
 0x75e   : > { %2073 = vrot.lane.b32.xlu1 %v2060_v24, %s3914_s28 }
 0x75f   : > { %2075 = vrot.lane.b32.xlu0 %v2061_v12, %s3914_s28 }
 0x762   : > { %2071 = vrot.lane.b32.xlu1 %v2059_v17, %s3914_s28 }
 0x763   : > { %2043 = vrot.lane.b32.xlu0 %v2027_v27, %s3913_s27 }
 0x766   : > { %2045 = vrot.lane.b32.xlu1 %v2028_v28, %s3913_s27 }
 0x767   : > { %2077 = vrot.lane.b32.xlu0 %v2062_v18, %s3914_s28 }
 0x76a   : > { %2097 = vrot.lane.b32.xlu1 %v4718_v41, %s3915_s0  ;;  %v2124_v41 = vmul.bf16 %v1889_v35, %v4189_v7 }
 0x76b   : > { %2079 = vrot.lane.b32.xlu0 %v2063_v25, %s3914_s28 }
 0x76e   : > { %2081 = vrot.lane.b32.xlu1 %v2064_v61, %s3914_s28 }
 0x76f   : > { %2099 = vrot.lane.b32.xlu0 %v4721_v43, %s3915_s0  ;;  %v2122_v43 = vmul.bf16 %v4736_v32, %v4191_v8 }
 0x772   : > { %2095 = vrot.lane.b32.xlu1 %v4715_v38, %s3915_s0  ;;  %v3595_v38 = vld [vmem:[%s4223_s10 + $0x70] sm:$0xff] }
 0x773   : > { %2103 = vrot.lane.b32.xlu0 %v4741_v36, %s3915_s0 }
 0x776   : > { %2105 = vrot.lane.b32.xlu1 %v1889_v35, %s3915_s0 }
 0x777   : > { %2101 = vrot.lane.b32.xlu0 %v4736_v32, %s3915_s0 }
 0x77a   : > { %2133 = vrot.lane.b32.xlu1 %v2120_v13, %s3916_s6 }
 0x77b   : > { %2135 = vrot.lane.b32.xlu0 %v2121_v5, %s3916_s6 }
 0x77e   : > { %2131 = vrot.lane.b32.xlu1 %v2119_v29, %s3916_s6 }
 0x77f   : > { %2139 = vrot.lane.b32.xlu0 %v2123_v31, %s3916_s6 }
 0x782   : > { %2141 = vrot.lane.b32.xlu1 %v2124_v41, %s3916_s6 }
 0x783   : > { %2137 = vrot.lane.b32.xlu0 %v2122_v43, %s3916_s6 }
 0x786   : > { %2211 = vperm.xlu1 %3794, %v3593_v6  }
 0x787   : > { %2216 = vperm.xlu0 %3793, %v3594_v33  }
 0x78a   : > { %2221 = vperm.xlu1 %3794, %v3595_v38  }
 0x78b   : > { %2226 = vperm.xlu0 %3793, %v3596_v40  }
 0x798   : > { %v1904_v36 = vpop.permute.xlu1 %1903 }
 0x799   : > { %v1908_v44 = vpop.permute.xlu0 %1907 }
 0x79c   : > { %v2000_v46 = vpop.permute.xlu1 %1999 }
 0x79d   : > { %v2004_v47 = vpop.permute.xlu0 %2003 }
 0x7a0   : > { %v1906_v30 = vpop.permute.xlu1 %1905 }
 0x7a1   : > { %v1944_v50 = vpop.permute.xlu0 %1943  ;;  %v1916_v32 = vsel %vm305_vm13, %v1906_v30, %v1908_v44  ;;  %v1915_v57 = vsel %vm305_vm13, %v1904_v36, %v1906_v30 }
 0x7a2   : > { %2269 = vmatprep.subr.bf16.mxu1 %v1916_v32 }
 0x7a3   : > { %2270 = vmatpush1.bf16.msra.mxu1 %v1915_v57 }
 0x7a4   : > { %v2002_v22 = vpop.permute.xlu1 %2001 }
 0x7a5   : > { %v1980_v35 = vpop.permute.xlu0 %1979  ;;  %v2012_v36 = vsel %vm426_vm0, %v2002_v22, %v2004_v47 }
 0x7a8   : > { %v1940_v58 = vpop.permute.xlu1 %1939 }
 0x7a9   : > { %v1910_v55 = vpop.permute.xlu0 %1909 }
 0x7ac   : > { %v1976_v52 = vpop.permute.xlu1 %1975 }
 0x7ad   : > { %v1912_v3 = vpop.permute.xlu0 %1911 }
 0x7ae   : > { %v1917_v17 = vsel %vm305_vm13, %v1910_v55, %v1912_v3 }
 0x7b0   : > { %v1942_v2 = vpop.permute.xlu1 %1941 }
 0x7b1   : > { %v2008_v4 = vpop.permute.xlu0 %2007  ;;  %v1952_v27 = vsel %vm353_vm14, %v1942_v2, %v1944_v50  ;;  %v1951_v25 = vsel %vm353_vm14, %v1940_v58, %v1942_v2  ;;  %v2011_v50 = vsel %vm426_vm0, %v2000_v46, %v2002_v22 }
 0x7b4   : > { %v1978_v9 = vpop.permute.xlu1 %1977 }
 0x7b5   : > { %v1946_v10 = vpop.permute.xlu0 %1945  ;;  %v1988_v29 = vsel %vm401_vm15, %v1978_v9, %v1980_v35  ;;  %v1987_v43 = vsel %vm401_vm15, %v1976_v52, %v1978_v9 }
 0x7b8   : > { %v1914_v23 = vpop.permute.xlu1 %1913 }
 0x7b9   : > { %v1982_v24 = vpop.permute.xlu0 %1981  ;;  %v1918_v12 = vsel %vm305_vm13, %v1912_v3, %v1914_v23 }
 0x7ba   : > { %2271 = vmatprep.subr.bf16.mxu1 %v1918_v12 }
 0x7bb   : > { %2272 = vmatpush1.bf16.msra.mxu1 %v1917_v17 }
 0x7bc   : > { %2273 = vmatprep.subr.bf16.mxu1 %v1952_v27  ;;  %v2010_v28 = vpop.permute.xlu1 %2009 }
 0x7bd   : > { %v1948_v18 = vpop.permute.xlu0 %1947  ;;  %v2014_v32 = vsel %vm426_vm0, %v2008_v4, %v2010_v28 }
 0x7be   : > { %v1953_v5 = vsel %vm353_vm14, %v1946_v10, %v1948_v18 }
 0x7bf   : > { %2274 = vmatpush1.bf16.msra.mxu1 %v1951_v25 }
 0x7c0   : > { %v1950_v61 = vpop.permute.xlu1 %1949 }
 0x7c1   : > { %v2006_v37 = vpop.permute.xlu0 %2005  ;;  %v1954_v13 = vsel %vm353_vm14, %v1948_v18, %v1950_v61 }
 0x7c2   : > { %2275 = vmatprep.subr.bf16.mxu1 %v1954_v13  ;;  %v2013_v58 = vsel %vm426_vm0, %v2006_v37, %v2008_v4 }
 0x7c3   : > { %2276 = vmatpush1.bf16.msra.mxu1 %v1953_v5 }
 0x7c4   : > { %2277 = vmatprep.subr.bf16.mxu1 %v1988_v29  ;;  %v2038_v31 = vpop.permute.xlu1 %2037 }
 0x7c5   : > { %v1984_v41 = vpop.permute.xlu0 %1983 }
 0x7c6   : > { %v1989_v40 = vsel %vm401_vm15, %v1982_v24, %v1984_v41 }
 0x7c7   : > { %2278 = vmatpush1.bf16.msra.mxu1 %v1987_v43  ;;  %v3822_v43 = vld [vmem:[%s4182_s5 + $0xac] ss:$12 sps:$4 sm:$0xff]  }
 0x7c8   : > { %v1986_v6 = vpop.permute.xlu1 %1985 }
 0x7c9   : > { %v2040_v33 = vpop.permute.xlu0 %2039  ;;  %v1990_v38 = vsel %vm401_vm15, %v1984_v41, %v1986_v6  ;;  %v3819_v41 = vld [vmem:[%s4182_s5 + $0x90] ss:$12 sps:$4 sm:$0xff]  }
 0x7ca   : > { %2279 = vmatprep.subr.bf16.mxu1 %v1990_v38  ;;  %v2048_v55 = vsel %vm472_vm1, %v2038_v31, %v2040_v33 }
 0x7cb   : > { %2280 = vmatpush1.bf16.msra.mxu1 %v1989_v40 }
 0x7cc   : > { %2281 = vmatprep.subr.bf16.mxu1 %v2012_v36  ;;  %v2036_v44 = vpop.permute.xlu1 %2035 }
 0x7cd   : > { %v2042_v30 = vpop.permute.xlu0 %2041  ;;  %v2047_v47 = vsel %vm472_vm1, %v2036_v44, %v2038_v31 }
 0x7cf   : > { %2282 = vmatpush1.bf16.msra.mxu1 %v2011_v50 }
 0x7d0   : > { %2283 = vmatprep.subr.bf16.mxu1 %v2014_v32  ;;  %v2074_v57 = vpop.permute.xlu1 %2073 }
 0x7d1   : > { %v2076_v35 = vpop.permute.xlu0 %2075 }
 0x7d2   : > { %v2084_v10 = vsel %vm518_vm2, %v2074_v57, %v2076_v35 }
 0x7d3   : > { %2284 = vmatpush1.bf16.msra.mxu1 %v2013_v58  ;;  %v3825_v58 = vld [vmem:[%s4182_s5 + $0x98] ss:$12 sps:$4 sm:$0xff]  }
 0x7d4   : > { %2285 = vmatprep.subr.bf16.mxu1 %v2048_v55  ;;  %v2072_v52 = vpop.permute.xlu1 %2071  ;;  %v3826_v55 = vld [vmem:[%s4182_s5 + $0xb0] ss:$12 sps:$4 sm:$0xff]  }
 0x7d5   : > { %v2044_v3 = vpop.permute.xlu0 %2043  ;;  %v2083_v24 = vsel %vm518_vm2, %v2072_v52, %v2074_v57 }
 0x7d6   : > { %v2049_v22 = vsel %vm472_vm1, %v2042_v30, %v2044_v3  ;;  %v3824_v30 = vld [vmem:[%s4182_s5 + $0xa8] ss:$12 sps:$4 sm:$0xff]  }
 0x7d7   : > { %2286 = vmatpush1.bf16.msra.mxu1 %v2047_v47 }
 0x7d8   : > { %v2046_v2 = vpop.permute.xlu1 %2045 }
 0x7d9   : > { %v2078_v9 = vpop.permute.xlu0 %2077  ;;  %v2050_v46 = vsel %vm472_vm1, %v2044_v3, %v2046_v2 }
 0x7da   : > { %2287 = vmatprep.subr.bf16.mxu1 %v2050_v46 }
 0x7db   : > { %2288 = vmatpush1.bf16.msra.mxu1 %v2049_v22 }
 0x7dc   : > { %2289 = vmatprep.subr.bf16.mxu1 %v2084_v10  ;;  %v2098_v4 = vpop.permute.xlu1 %2097 }
 0x7dd   : > { %v2080_v23 = vpop.permute.xlu0 %2079 }
 0x7de   : > { %v2085_v28 = vsel %vm518_vm2, %v2078_v9, %v2080_v23 }
 0x7df   : > { %2290 = vmatpush1.bf16.msra.mxu1 %v2083_v24 }
 0x7e0   : > { %v2082_v12 = vpop.permute.xlu1 %2081 }
 0x7e1   : > { %v2100_v17 = vpop.permute.xlu0 %2099  ;;  %v2086_v27 = vsel %vm518_vm2, %v2080_v23, %v2082_v12 }
 0x7e2   : > { %2291 = vmatprep.subr.bf16.mxu1 %v2086_v27  ;;  %v2108_v18 = vsel %vm543_vm3, %v2098_v4, %v2100_v17 }
 0x7e3   : > { %2292 = vmatpush1.bf16.msra.mxu1 %v2085_v28 }
 0x7e4   : > { %2293 = vmatprep.subr.bf16.mxu1 %v2108_v18  ;;  %v2096_v25 = vpop.permute.xlu1 %2095 }
 0x7e5   : > { %v2107_v61 = vsel %vm543_vm3, %v2096_v25, %v2098_v4  ;;  %v2104_v37 = vpop.permute.xlu0 %2103 }
 0x7e7   : > { %2294 = vmatpush1.bf16.msra.mxu1 %v2107_v61 }
 0x7e8   : > { %v2106_v13 = vpop.permute.xlu1 %2105 }
 0x7e9   : > { %v2102_v5 = vpop.permute.xlu0 %2101  ;;  %v2110_v29 = vsel %vm543_vm3, %v2104_v37, %v2106_v13 }
 0x7ea   : > { %v2109_v31 = vsel %vm543_vm3, %v2102_v5, %v2104_v37  ;;  %2295 = vmatprep.subr.bf16.mxu1 %v2110_v29 }
 0x7eb   : > { %2296 = vmatpush1.bf16.msra.mxu1 %v2109_v31 }
 0x7ec   : > { %v2134_v6 = vpop.permute.xlu1 %2133 }
 0x7ed   : > { %v2136_v33 = vpop.permute.xlu0 %2135 }
 0x7ee   : > { %2298 = vmatmul.mubr.bf16.vlgmr.msra.gmra.mrb[8].mxu1 %v3819_v41  ;;  %v2144_v38 = vsel %vm589_vm4, %v2134_v6, %v2136_v33 }
 0x7ef   : > { %2318 = vmatprep.subr.bf16.mxu1 %v2144_v38  ;;  %2307 = vmatprep.mubr.bf16.mxu1 %v3822_v43 }
 0x7f0   : > { %v2132_v40 = vpop.permute.xlu1 %2131 }
 0x7f1   : > { %v2143_v36 = vsel %vm589_vm4, %v2132_v40, %v2134_v6  ;;  %v2140_v44 = vpop.permute.xlu0 %2139 }
 0x7f2   : > { %2319 = vmatpush1.bf16.msra.mxu1 %v2143_v36 }
 0x7f4   : > { %v2142_v50 = vpop.permute.xlu1 %2141 }
 0x7f5   : > { %v2138_v32 = vpop.permute.xlu0 %2137  ;;  %v2146_v57 = vsel %vm589_vm4, %v2140_v44, %v2142_v50 }
 0x7f6   : > { %v2145_v35 = vsel %vm589_vm4, %v2138_v32, %v2140_v44  ;;  %2308 = vmatmul.mubr.bf16.gmra.mrb[12].mxu1 %v3824_v30  ;;  %2320 = vmatprep.subr.bf16.mxu1 %v2146_v57 }
 0x7f7   : > { %2321 = vmatpush1.bf16.msra.mxu1 %v2145_v35  ;;  %2350 = vmatprep.mubr.bf16.mxu1 %v3901_v1 }
 0x7fe   : > { %3603 = vmatmul.mubr.msk.bf16.vlgmr.msra.gmra.mrb[8].mxu1 %vm489_vm11, %v3825_v58 }
 0x7ff   : > { %2360 = vmatprep.mubr.bf16.mxu1 %v3901_v1 }
 0x805   : > { %v2212_v52 = vpop.permute.xlu1 %2211 }
 0x806   : > { %3604 = vmatmul.mubr.msk.bf16.gmra.mrb[12].mxu1 %vm489_vm11, %v3826_v55  ;;  %v2217_v9 = vpop.permute.xlu0 %2216 }
 0x809   : > { %v2222_v18 = vpop.permute.xlu1 %2221 }
 0x80a   : > { %v2227_v5 = vpop.permute.xlu0 %2226 }
 0x8d1   : > { %v2352_v3 = vpop.f32.mrb[8].mxu1 }
 0x8d2   : > { %v3678_v47 = vadd.f32 %v2352_v3, %v2212_v52  ;;  %v2354_v2 = vpop.f32.mrb[9].mxu1 }
 0x8d3   : > { %v3679_v46 = vadd.f32 %v2354_v2, %v2212_v52  ;;  %v2356_v22 = vpop.f32.mrb[10].mxu1 }
 0x8d4   : > { %v3680_v10 = vadd.f32 %v2356_v22, %v2217_v9  ;;  %v2358_v4 = vpop.f32.mrb[11].mxu1  ;;  %v2371_v24 = vmax.f32 %v3678_v47, 0.0 }
 0x8d5   : > { %v3681_v23 = vadd.f32 %v2358_v4, %v2217_v9  ;;  %v2372_v17 = vmax.f32 %v3679_v46, 0.0 }
 0x8d6   : > { %v2373_v12 = vmax.f32 %v3680_v10, 0.0 }
 0x8d7   : > { %v2374_v27 = vmax.f32 %v3681_v23, 0.0 }
 0x8d8   : > { %v2379_v28 = vpack.c.bf16 %v2373_v12, %v2371_v24 }
 0x8d9   : > { %v2380_v25 = vpack.c.bf16 %v2374_v27, %v2372_v17  ;;  %v2362_v61 = vpop.f32.mrb[12].mxu1 }
 0x8da   : > { %v3682_v37 = vadd.f32 %v2362_v61, %v2222_v18  ;;  %v2364_v13 = vpop.f32.mrb[13].mxu1  ;;  %2387 = vrot.lane.b32.xlu1 %v2379_v28, %s3902_s11 }
 0x8db   : > { %v3683_v29 = vadd.f32 %v2364_v13, %v2222_v18  ;;  %v2366_v31 = vpop.f32.mrb[14].mxu1  ;;  %2389 = vrot.lane.b32.xlu0 %v2380_v25, %s3902_s11 }
 0x8dc   : > { %v3684_v41 = vadd.f32 %v2366_v31, %v2227_v5  ;;  %v2368_v43 = vpop.f32.mrb[15].mxu1  ;;  %v2375_v33 = vmax.f32 %v3682_v37, 0.0 }
 0x8dd   : > { %v3685_v6 = vadd.f32 %v2368_v43, %v2227_v5  ;;  %v2376_v40 = vmax.f32 %v3683_v29, 0.0 }
 0x8de   : > { %v2377_v38 = vmax.f32 %v3684_v41, 0.0 }
 0x8df   : > { %v2378_v36 = vmax.f32 %v3685_v6, 0.0 }
 0x8e0   : > { %v2381_v44 = vpack.c.bf16 %v2377_v38, %v2375_v33 }
 0x8e1   : > { %v2382_v30 = vpack.c.bf16 %v2378_v36, %v2376_v40 }
 0x8e2   : > { %2391 = vrot.lane.b32.xlu1 %v2381_v44, %s3902_s11 }
 0x8e3   : > { %2393 = vrot.lane.b32.xlu0 %v2382_v30, %s3902_s11 }
 0x94c   : > { %v2388_v50 = vpop.permute.xlu1 %2387 }
 0x94d   : > { %v4907_v32 = vsel %vm264_vm7, 0, %v2388_v50  ;;  %v2390_v57 = vpop.permute.xlu0 %2389 }
 0x94e   : > { %v4910_v35 = vsel %vm264_vm7, %v2388_v50, %v2390_v57  ;;  %v4913_v58 = vsel %vm264_vm7, %v2390_v57, 0  ;;  %2423 = vrot.lane.b32.xlu1 %v4907_v32, %s3909_s23  ;;  %v2411_v52 = vmul.bf16 %v4907_v32, %v4009_v14  ;;  %v2447_v23 = vmul.bf16 %v4907_v32, %v4043_v26  ;;  %v3829_v50 = vld [vmem:[%s4182_s5 + $0xc4] ss:$12 sps:$4 sm:$0xff]  }
 0x94f   : > { %2427 = vrot.lane.b32.xlu0 %v4913_v58, %s3909_s23  ;;  %v2412_v55 = vmul.bf16 %v4910_v35, %v4015_v19  ;;  %v2449_v9 = vmul.bf16 %v4913_v58, %v4077_v39  ;;  %v2485_v4 = vmul.bf16 %v4913_v58, %v4087_v42  ;;  %v2483_v24 = vmul.bf16 %v4907_v32, %v4063_v34 }
 0x950   : > { %v2448_v12 = vmul.bf16 %v4910_v35, %v4097_v45  ;;  %v2484_v17 = vmul.bf16 %v4910_v35, %v4109_v48  ;;  %v2544_v37 = vmul.bf16 %v4910_v35, %v4136_v56  ;;  %v2545_v29 = vmul.bf16 %v4913_v58, %v4125_v53  ;;  %2817 = vmatprep.mubr.bf16.mxu0 %v3829_v50 }
 0x951   : > { %2785 = vmatprep.subr.bf16.mxu0 %v2412_v55  ;;  %v2543_v31 = vmul.bf16 %v4907_v32, %v4119_v51  ;;  %v2580_v43 = vmul.bf16 %v4910_v35, %v4157_v63  ;;  %v2581_v6 = vmul.bf16 %v4913_v58, %v4146_v60  ;;  %v2579_v33 = vmul.bf16 %v4907_v32, %v4144_v59 }
 0x952   : > { %2519 = vrot.lane.b32.xlu1 %v4907_v32, %s3912_s26  ;;  %2786 = vmatpush1.bf16.msra.mxu0 %v2411_v52  ;;  %v2640_v57 = vmul.bf16 %v4910_v35, %v4203_v11  ;;  %v2641_v55 = vmul.bf16 %v4913_v58, %v4189_v7  ;;  %v2639_v52 = vmul.bf16 %v4907_v32, %v4191_v8 }
 0x953   : > { %2523 = vrot.lane.b32.xlu0 %v4913_v58, %s3912_s26 }
 0x954   : > { %v2392_v3 = vpop.permute.xlu1 %2391 }
 0x955   : > { %v4928_v47 = vsel %vm264_vm7, 0, %v2392_v3  ;;  %v2394_v2 = vpop.permute.xlu0 %2393 }
 0x956   : > { %v4933_v46 = vsel %vm264_vm7, %v2392_v3, %v2394_v2  ;;  %2425 = vrot.lane.b32.xlu1 %v4910_v35, %s3909_s23  ;;  %v2413_v10 = vmul.bf16 %v4928_v47, %v4009_v14  ;;  %v2450_v27 = vmul.bf16 %v4928_v47, %v4043_v26  ;;  %v2409_v28 = vsel %vm264_vm7, %v2394_v2, 0  ;;  %v3615_v2 = vld [vmem:[%s4223_s10 + $0x80] sm:$0xff] }
 0x957   : > { %2463 = vrot.lane.b32.xlu0 %v2449_v9, %s3910_s24  ;;  %v2414_v22 = vmul.bf16 %v4933_v46, %v4015_v19  ;;  %v2486_v18 = vmul.bf16 %v4928_v47, %v4063_v34  ;;  %v2451_v25 = vmul.bf16 %v4933_v46, %v4097_v45  ;;  %v2452_v61 = vmul.bf16 %v2409_v28, %v4077_v39  ;;  %v3616_v9 = vld [vmem:[%s4223_s10 + $0x88] sm:$0xff] }
 0x958   : > { %v2487_v13 = vmul.bf16 %v4933_v46, %v4109_v48  ;;  %v2488_v5 = vmul.bf16 %v2409_v28, %v4087_v42  ;;  %v2546_v41 = vmul.bf16 %v4928_v47, %v4119_v51  ;;  %v2547_v38 = vmul.bf16 %v4933_v46, %v4136_v56 }
 0x959   : > { %2787 = vmatprep.subr.bf16.mxu0 %v2414_v22  ;;  %v2548_v40 = vmul.bf16 %v2409_v28, %v4125_v53  ;;  %v2582_v36 = vmul.bf16 %v4928_v47, %v4144_v59  ;;  %v2583_v44 = vmul.bf16 %v4933_v46, %v4157_v63  ;;  %v2584_v30 = vmul.bf16 %v2409_v28, %v4146_v60  ;;  %v3618_v22 = vld [vmem:[%s4223_s10 + $0x98] sm:$0xff] }
 0x95a   : > { %2521 = vrot.lane.b32.xlu1 %v4910_v35, %s3912_s26  ;;  %2788 = vmatpush1.bf16.msra.mxu0 %v2413_v10  ;;  %v2643_v3 = vmul.bf16 %v4933_v46, %v4203_v11 }
 0x95b   : > { %2499 = vrot.lane.b32.xlu0 %v2485_v4, %s3911_s25 }
 0x95e   : > { %2459 = vrot.lane.b32.xlu1 %v2447_v23, %s3910_s24 }
 0x95f   : > { %2429 = vrot.lane.b32.xlu0 %v4928_v47, %s3909_s23 }
 0x962   : > { %2495 = vrot.lane.b32.xlu1 %v2483_v24, %s3911_s25 }
 0x963   : > { %2431 = vrot.lane.b32.xlu0 %v4933_v46, %s3909_s23 }
 0x966   : > { %2461 = vrot.lane.b32.xlu1 %v2448_v12, %s3910_s24 }
 0x967   : > { %2527 = vrot.lane.b32.xlu0 %v4933_v46, %s3912_s26 }
 0x96a   : > { %2497 = vrot.lane.b32.xlu1 %v2484_v17, %s3911_s25 }
 0x96b   : > { %2465 = vrot.lane.b32.xlu0 %v2450_v27, %s3910_s24 }
 0x96e   : > { %2433 = vrot.lane.b32.xlu1 %v2409_v28, %s3909_s23 }
 0x96f   : > { %2501 = vrot.lane.b32.xlu0 %v2486_v18, %s3911_s25 }
 0x972   : > { %2529 = vrot.lane.b32.xlu1 %v2409_v28, %s3912_s26 }
 0x973   : > { %2467 = vrot.lane.b32.xlu0 %v2451_v25, %s3910_s24 }
 0x976   : > { %2469 = vrot.lane.b32.xlu1 %v2452_v61, %s3910_s24 }
 0x977   : > { %2525 = vrot.lane.b32.xlu0 %v4928_v47, %s3912_s26 }
 0x97a   : > { %2557 = vrot.lane.b32.xlu1 %v2544_v37, %s3913_s27 }
 0x97b   : > { %2503 = vrot.lane.b32.xlu0 %v2487_v13, %s3911_s25 }
 0x97e   : > { %2505 = vrot.lane.b32.xlu1 %v2488_v5, %s3911_s25 }
 0x97f   : > { %2559 = vrot.lane.b32.xlu0 %v2545_v29, %s3913_s27 }
 0x982   : > { %2555 = vrot.lane.b32.xlu1 %v2543_v31, %s3913_s27 }
 0x983   : > { %2561 = vrot.lane.b32.xlu0 %v2546_v41, %s3913_s27 }
 0x986   : > { %2593 = vrot.lane.b32.xlu1 %v2580_v43, %s3914_s28 }
 0x987   : > { %2595 = vrot.lane.b32.xlu0 %v2581_v6, %s3914_s28 }
 0x98a   : > { %2591 = vrot.lane.b32.xlu1 %v2579_v33, %s3914_s28 }
 0x98b   : > { %2563 = vrot.lane.b32.xlu0 %v2547_v38, %s3913_s27 }
 0x98e   : > { %2565 = vrot.lane.b32.xlu1 %v2548_v40, %s3913_s27 }
 0x98f   : > { %2597 = vrot.lane.b32.xlu0 %v2582_v36, %s3914_s28 }
 0x992   : > { %2617 = vrot.lane.b32.xlu1 %v4910_v35, %s3915_s0  ;;  %v2644_v35 = vmul.bf16 %v2409_v28, %v4189_v7 }
 0x993   : > { %2599 = vrot.lane.b32.xlu0 %v2583_v44, %s3914_s28 }
 0x996   : > { %2601 = vrot.lane.b32.xlu1 %v2584_v30, %s3914_s28 }
 0x997   : > { %2619 = vrot.lane.b32.xlu0 %v4913_v58, %s3915_s0  ;;  %v2642_v58 = vmul.bf16 %v4928_v47, %v4191_v8 }
 0x99a   : > { %2615 = vrot.lane.b32.xlu1 %v4907_v32, %s3915_s0  ;;  %v3617_v32 = vld [vmem:[%s4223_s10 + $0x90] sm:$0xff] }
 0x99b   : > { %2623 = vrot.lane.b32.xlu0 %v4933_v46, %s3915_s0 }
 0x99e   : > { %2625 = vrot.lane.b32.xlu1 %v2409_v28, %s3915_s0 }
 0x99f   : > { %2621 = vrot.lane.b32.xlu0 %v4928_v47, %s3915_s0 }
 0x9a2   : > { %2653 = vrot.lane.b32.xlu1 %v2640_v57, %s3916_s6 }
 0x9a3   : > { %2655 = vrot.lane.b32.xlu0 %v2641_v55, %s3916_s6 }
 0x9a6   : > { %2651 = vrot.lane.b32.xlu1 %v2639_v52, %s3916_s6 }
 0x9a7   : > { %2659 = vrot.lane.b32.xlu0 %v2643_v3, %s3916_s6 }
 0x9aa   : > { %2661 = vrot.lane.b32.xlu1 %v2644_v35, %s3916_s6 }
 0x9ab   : > { %2657 = vrot.lane.b32.xlu0 %v2642_v58, %s3916_s6 }
 0x9ae   : > { %2731 = vperm.xlu1 %3794, %v3615_v2  }
 0x9af   : > { %2736 = vperm.xlu0 %3793, %v3616_v9  }
 0x9b2   : > { %2741 = vperm.xlu1 %3794, %v3617_v32  }
 0x9b3   : > { %2746 = vperm.xlu0 %3793, %v3618_v22  }
 0x9c0   : > { %v2424_v46 = vpop.permute.xlu1 %2423 }
 0x9c1   : > { %v2428_v10 = vpop.permute.xlu0 %2427 }
 0x9c4   : > { %v2520_v4 = vpop.permute.xlu1 %2519 }
 0x9c5   : > { %v2524_v23 = vpop.permute.xlu0 %2523 }
 0x9c8   : > { %v2426_v24 = vpop.permute.xlu1 %2425 }
 0x9c9   : > { %v2464_v12 = vpop.permute.xlu0 %2463  ;;  %v2436_v47 = vsel %vm305_vm13, %v2426_v24, %v2428_v10  ;;  %v2435_v17 = vsel %vm305_vm13, %v2424_v46, %v2426_v24 }
 0x9ca   : > { %2789 = vmatprep.subr.bf16.mxu0 %v2436_v47 }
 0x9cb   : > { %2790 = vmatpush1.bf16.msra.mxu0 %v2435_v17 }
 0x9cc   : > { %v2522_v27 = vpop.permute.xlu1 %2521 }
 0x9cd   : > { %v2500_v28 = vpop.permute.xlu0 %2499  ;;  %v2532_v46 = vsel %vm426_vm0, %v2522_v27, %v2524_v23 }
 0x9d0   : > { %v2460_v18 = vpop.permute.xlu1 %2459 }
 0x9d1   : > { %v2430_v25 = vpop.permute.xlu0 %2429 }
 0x9d4   : > { %v2496_v61 = vpop.permute.xlu1 %2495 }
 0x9d5   : > { %v2432_v37 = vpop.permute.xlu0 %2431 }
 0x9d6   : > { %v2437_v33 = vsel %vm305_vm13, %v2430_v25, %v2432_v37 }
 0x9d8   : > { %v2462_v13 = vpop.permute.xlu1 %2461 }
 0x9d9   : > { %v2528_v5 = vpop.permute.xlu0 %2527  ;;  %v2472_v38 = vsel %vm353_vm14, %v2462_v13, %v2464_v12  ;;  %v2471_v44 = vsel %vm353_vm14, %v2460_v18, %v2462_v13  ;;  %v2531_v12 = vsel %vm426_vm0, %v2520_v4, %v2522_v27 }
 0x9dc   : > { %v2498_v29 = vpop.permute.xlu1 %2497 }
 0x9dd   : > { %v2466_v31 = vpop.permute.xlu0 %2465  ;;  %v2508_v52 = vsel %vm401_vm15, %v2498_v29, %v2500_v28  ;;  %v2507_v58 = vsel %vm401_vm15, %v2496_v61, %v2498_v29 }
 0x9e0   : > { %v2434_v41 = vpop.permute.xlu1 %2433 }
 0x9e1   : > { %v2502_v43 = vpop.permute.xlu0 %2501  ;;  %v2438_v6 = vsel %vm305_vm13, %v2432_v37, %v2434_v41 }
 0x9e2   : > { %2791 = vmatprep.subr.bf16.mxu0 %v2438_v6 }
 0x9e3   : > { %2792 = vmatpush1.bf16.msra.mxu0 %v2437_v33 }
 0x9e4   : > { %2793 = vmatprep.subr.bf16.mxu0 %v2472_v38  ;;  %v2530_v40 = vpop.permute.xlu1 %2529 }
 0x9e5   : > { %v2468_v36 = vpop.permute.xlu0 %2467  ;;  %v2534_v47 = vsel %vm426_vm0, %v2528_v5, %v2530_v40 }
 0x9e6   : > { %v2473_v55 = vsel %vm353_vm14, %v2466_v31, %v2468_v36 }
 0x9e7   : > { %2794 = vmatpush1.bf16.msra.mxu0 %v2471_v44 }
 0x9e8   : > { %v2470_v30 = vpop.permute.xlu1 %2469 }
 0x9e9   : > { %v2526_v50 = vpop.permute.xlu0 %2525  ;;  %v2474_v57 = vsel %vm353_vm14, %v2468_v36, %v2470_v30 }
 0x9ea   : > { %2795 = vmatprep.subr.bf16.mxu0 %v2474_v57  ;;  %v2533_v18 = vsel %vm426_vm0, %v2526_v50, %v2528_v5 }
 0x9eb   : > { %2796 = vmatpush1.bf16.msra.mxu0 %v2473_v55 }
 0x9ec   : > { %2797 = vmatprep.subr.bf16.mxu0 %v2508_v52  ;;  %v2558_v3 = vpop.permute.xlu1 %2557 }
 0x9ed   : > { %v2504_v35 = vpop.permute.xlu0 %2503 }
 0x9ee   : > { %v2509_v22 = vsel %vm401_vm15, %v2502_v43, %v2504_v35 }
 0x9ef   : > { %2798 = vmatpush1.bf16.msra.mxu0 %v2507_v58  ;;  %v3830_v58 = vld [vmem:[%s4182_s5 + $0xdc] ss:$12 sps:$4 sm:$0xff]  }
 0x9f0   : > { %v2506_v2 = vpop.permute.xlu1 %2505 }
 0x9f1   : > { %v2560_v9 = vpop.permute.xlu0 %2559  ;;  %v2510_v32 = vsel %vm401_vm15, %v2504_v35, %v2506_v2  ;;  %v3827_v35 = vld [vmem:[%s4182_s5 + $0xc0] ss:$12 sps:$4 sm:$0xff]  }
 0x9f2   : > { %2799 = vmatprep.subr.bf16.mxu0 %v2510_v32  ;;  %v2568_v25 = vsel %vm472_vm1, %v2558_v3, %v2560_v9 }
 0x9f3   : > { %2800 = vmatpush1.bf16.msra.mxu0 %v2509_v22 }
 0x9f4   : > { %2801 = vmatprep.subr.bf16.mxu0 %v2532_v46  ;;  %v2556_v10 = vpop.permute.xlu1 %2555 }
 0x9f5   : > { %v2562_v24 = vpop.permute.xlu0 %2561  ;;  %v2567_v23 = vsel %vm472_vm1, %v2556_v10, %v2558_v3 }
 0x9f7   : > { %2802 = vmatpush1.bf16.msra.mxu0 %v2531_v12 }
 0x9f8   : > { %2803 = vmatprep.subr.bf16.mxu0 %v2534_v47  ;;  %v2594_v17 = vpop.permute.xlu1 %2593 }
 0x9f9   : > { %v2596_v28 = vpop.permute.xlu0 %2595 }
 0x9fa   : > { %v2604_v31 = vsel %vm518_vm2, %v2594_v17, %v2596_v28 }
 0x9fb   : > { %2804 = vmatpush1.bf16.msra.mxu0 %v2533_v18  ;;  %v3833_v18 = vld [vmem:[%s4182_s5 + $0xc8] ss:$12 sps:$4 sm:$0xff]  }
 0x9fc   : > { %2805 = vmatprep.subr.bf16.mxu0 %v2568_v25  ;;  %v2592_v61 = vpop.permute.xlu1 %2591  ;;  %v3834_v25 = vld [vmem:[%s4182_s5 + $0xe0] ss:$12 sps:$4 sm:$0xff]  }
 0x9fd   : > { %v2564_v37 = vpop.permute.xlu0 %2563  ;;  %v2603_v43 = vsel %vm518_vm2, %v2592_v61, %v2594_v17 }
 0x9fe   : > { %v2569_v27 = vsel %vm472_vm1, %v2562_v24, %v2564_v37  ;;  %v3832_v24 = vld [vmem:[%s4182_s5 + $0xd8] ss:$12 sps:$4 sm:$0xff]  }
 0x9ff   : > { %2806 = vmatpush1.bf16.msra.mxu0 %v2567_v23 }
 0xa00   : > { %v2566_v13 = vpop.permute.xlu1 %2565 }
 0xa01   : > { %v2598_v29 = vpop.permute.xlu0 %2597  ;;  %v2570_v4 = vsel %vm472_vm1, %v2564_v37, %v2566_v13 }
 0xa02   : > { %2807 = vmatprep.subr.bf16.mxu0 %v2570_v4 }
 0xa03   : > { %2808 = vmatpush1.bf16.msra.mxu0 %v2569_v27 }
 0xa04   : > { %2809 = vmatprep.subr.bf16.mxu0 %v2604_v31  ;;  %v2618_v5 = vpop.permute.xlu1 %2617 }
 0xa05   : > { %v2600_v41 = vpop.permute.xlu0 %2599 }
 0xa06   : > { %v2605_v40 = vsel %vm518_vm2, %v2598_v29, %v2600_v41 }
 0xa07   : > { %2810 = vmatpush1.bf16.msra.mxu0 %v2603_v43 }
 0xa08   : > { %v2602_v6 = vpop.permute.xlu1 %2601 }
 0xa09   : > { %v2620_v33 = vpop.permute.xlu0 %2619  ;;  %v2606_v38 = vsel %vm518_vm2, %v2600_v41, %v2602_v6 }
 0xa0a   : > { %2811 = vmatprep.subr.bf16.mxu0 %v2606_v38  ;;  %v2628_v36 = vsel %vm543_vm3, %v2618_v5, %v2620_v33 }
 0xa0b   : > { %2812 = vmatpush1.bf16.msra.mxu0 %v2605_v40 }
 0xa0c   : > { %2813 = vmatprep.subr.bf16.mxu0 %v2628_v36  ;;  %v2616_v44 = vpop.permute.xlu1 %2615 }
 0xa0d   : > { %v2627_v30 = vsel %vm543_vm3, %v2616_v44, %v2618_v5  ;;  %v2624_v50 = vpop.permute.xlu0 %2623 }
 0xa0f   : > { %2814 = vmatpush1.bf16.msra.mxu0 %v2627_v30 }
 0xa10   : > { %v2626_v57 = vpop.permute.xlu1 %2625 }
 0xa11   : > { %v2622_v55 = vpop.permute.xlu0 %2621  ;;  %v2630_v52 = vsel %vm543_vm3, %v2624_v50, %v2626_v57 }
 0xa12   : > { %v2629_v3 = vsel %vm543_vm3, %v2622_v55, %v2624_v50  ;;  %2815 = vmatprep.subr.bf16.mxu0 %v2630_v52 }
 0xa13   : > { %2816 = vmatpush1.bf16.msra.mxu0 %v2629_v3 }
 0xa14   : > { %v2654_v2 = vpop.permute.xlu1 %2653 }
 0xa15   : > { %v2656_v9 = vpop.permute.xlu0 %2655 }
 0xa16   : > { %2818 = vmatmul.mubr.bf16.vlgmr.msra.gmra.mrb[16].mxu0 %v3827_v35  ;;  %v2664_v32 = vsel %vm589_vm4, %v2654_v2, %v2656_v9 }
 0xa17   : > { %2838 = vmatprep.subr.bf16.mxu0 %v2664_v32  ;;  %2827 = vmatprep.mubr.bf16.mxu0 %v3830_v58 }
 0xa18   : > { %v2652_v22 = vpop.permute.xlu1 %2651 }
 0xa19   : > { %v2663_v46 = vsel %vm589_vm4, %v2652_v22, %v2654_v2  ;;  %v2660_v10 = vpop.permute.xlu0 %2659 }
 0xa1a   : > { %2839 = vmatpush1.bf16.msra.mxu0 %v2663_v46 }
 0xa1c   : > { %v2662_v12 = vpop.permute.xlu1 %2661 }
 0xa1d   : > { %v2658_v47 = vpop.permute.xlu0 %2657  ;;  %v2666_v17 = vsel %vm589_vm4, %v2660_v10, %v2662_v12 }
 0xa1e   : > { %v2665_v28 = vsel %vm589_vm4, %v2658_v47, %v2660_v10  ;;  %2828 = vmatmul.mubr.bf16.gmra.mrb[20].mxu0 %v3832_v24  ;;  %2840 = vmatprep.subr.bf16.mxu0 %v2666_v17 }
 0xa1f   : > { %2841 = vmatpush1.bf16.msra.mxu0 %v2665_v28  ;;  %2870 = vmatprep.mubr.bf16.mxu0 %v3901_v1 }
 0xa26   : > { %3625 = vmatmul.mubr.msk.bf16.vlgmr.msra.gmra.mrb[16].mxu0 %vm489_vm11, %v3833_v18 }
 0xa27   : > { %2880 = vmatprep.mubr.bf16.mxu0 %v3901_v1 }
 0xa2d   : > { %v2732_v61 = vpop.permute.xlu1 %2731 }
 0xa2e   : > { %3626 = vmatmul.mubr.msk.bf16.gmra.mrb[20].mxu0 %vm489_vm11, %v3834_v25  ;;  %v2737_v29 = vpop.permute.xlu0 %2736 }
 0xa31   : > { %v2742_v36 = vpop.permute.xlu1 %2741 }
 0xa32   : > { %v2747_v55 = vpop.permute.xlu0 %2746 }
 0xaf9   : > { %v2872_v37 = vpop.f32.mrb[16].mxu0 }
 0xafa   : > { %v3686_v23 = vadd.f32 %v2872_v37, %v2732_v61  ;;  %v2874_v13 = vpop.f32.mrb[17].mxu0 }
 0xafb   : > { %v3687_v4 = vadd.f32 %v2874_v13, %v2732_v61  ;;  %v2876_v27 = vpop.f32.mrb[18].mxu0 }
 0xafc   : > { %v3688_v31 = vadd.f32 %v2876_v27, %v2737_v29  ;;  %v2878_v5 = vpop.f32.mrb[19].mxu0  ;;  %v2891_v43 = vadd.f32 %v3686_v23, %v4679_v54 }
 0xafd   : > { %v3689_v41 = vadd.f32 %v2878_v5, %v2737_v29  ;;  %v2892_v33 = vadd.f32 %v3687_v4, %v4685_v0 }
 0xafe   : > { %v2893_v6 = vadd.f32 %v3688_v31, %v4682_v62 }
 0xaff   : > { %v2894_v38 = vadd.f32 %v3689_v41, %v4688_v49 }
 0xb00   : > { %v2899_v40 = vpack.c.bf16 %v2893_v6, %v2891_v43 }
 0xb01   : > { %v2900_v44 = vpack.c.bf16 %v2894_v38, %v2892_v33  ;;  %v2882_v30 = vpop.f32.mrb[20].mxu0 }
 0xb02   : > { %v3690_v50 = vadd.f32 %v2882_v30, %v2742_v36  ;;  %v2884_v57 = vpop.f32.mrb[21].mxu0  ;;  %2907 = vrot.lane.b32.xlu1 %v2899_v40, %s3902_s11  ;;  %v3837_v40 = vld [vmem:[%s4182_s5 + $0xf4] ss:$12 sps:$4 sm:$0xff]  }
 0xb03   : > { %v3691_v52 = vadd.f32 %v2884_v57, %v2742_v36  ;;  %v2886_v3 = vpop.f32.mrb[22].mxu0  ;;  %2909 = vrot.lane.b32.xlu0 %v2900_v44, %s3902_s11  ;;  %3334 = vmatprep.mubr.bf16.mxu1 %v3837_v40  ;;  %v3637_v30 = vld [vmem:[%s4223_s10 + $0xa0] sm:$0xff] }
 0xb04   : > { %v3692_v54 = vadd.f32 %v2886_v3, %v2747_v55  ;;  %v2888_v35 = vpop.f32.mrb[23].mxu0  ;;  %v2895_v0 = vadd.f32 %v3690_v50, %v4697_v20 }
 0xb05   : > { %v3693_v62 = vadd.f32 %v2888_v35, %v2747_v55  ;;  %v2896_v58 = vadd.f32 %v3691_v52, %v4703_v16 }
 0xb06   : > { %v2897_v49 = vadd.f32 %v3692_v54, %v4700_v15 }
 0xb07   : > { %v2898_v2 = vadd.f32 %v3693_v62, %v4706_v21 }
 0xb08   : > { %v2901_v9 = vpack.c.bf16 %v2897_v49, %v2895_v0 }
 0xb09   : > { %v2902_v32 = vpack.c.bf16 %v2898_v2, %v2896_v58 }
 0xb0a   : > { %2911 = vrot.lane.b32.xlu1 %v2901_v9, %s3902_s11 }
 0xb0b   : > { %2913 = vrot.lane.b32.xlu0 %v2902_v32, %s3902_s11  ;;  %s3652_s11 = sshll.u32 %s3995_s12, 3 }
 0xb0c   : > { %s192_s15 = scalar_lea.vmem %s5302_s4, %s3652_s11 }
 0xb74   : > { %v2908_v22 = vpop.permute.xlu1 %2907 }
 0xb75   : > { %v5107_v46 = vsel %vm264_vm7, 0, %v2908_v22  ;;  %v2910_v10 = vpop.permute.xlu0 %2909 }
 0xb76   : > { %v5110_v24 = vsel %vm264_vm7, %v2908_v22, %v2910_v10  ;;  %v5113_v20 = vsel %vm264_vm7, %v2910_v10, 0  ;;  %2943 = vrot.lane.b32.xlu1 %v5107_v46, %s3909_s23  ;;  %v2931_v16 = vmul.bf16 %v5107_v46, %v4009_v14  ;;  %v2967_v37 = vmul.bf16 %v5107_v46, %v4043_v26 }
 0xb77   : > { %2947 = vrot.lane.b32.xlu0 %v5113_v20, %s3909_s23  ;;  %v2932_v15 = vmul.bf16 %v5110_v24, %v4015_v19  ;;  %v2969_v17 = vmul.bf16 %v5113_v20, %v4077_v39  ;;  %v3005_v61 = vmul.bf16 %v5113_v20, %v4087_v42  ;;  %v3004_v23 = vmul.bf16 %v5110_v24, %v4109_v48 }
 0xb78   : > { %v3063_v5 = vmul.bf16 %v5107_v46, %v4119_v51  ;;  %v3099_v43 = vmul.bf16 %v5107_v46, %v4144_v59 }
 0xb79   : > { %3302 = vmatprep.subr.bf16.mxu1 %v2932_v15 }
 0xb7a   : > { %3039 = vrot.lane.b32.xlu1 %v5107_v46, %s3912_s26  ;;  %3303 = vmatpush1.bf16.msra.mxu1 %v2931_v16 }
 0xb7b   : > { %3043 = vrot.lane.b32.xlu0 %v5113_v20, %s3912_s26 }
 0xb7c   : > { %v2912_v21 = vpop.permute.xlu1 %2911 }
 0xb7d   : > { %v5128_v12 = vsel %vm264_vm7, 0, %v2912_v21  ;;  %v2914_v47 = vpop.permute.xlu0 %2913 }
 0xb7e   : > { %v5133_v28 = vsel %vm264_vm7, %v2912_v21, %v2914_v47  ;;  %2945 = vrot.lane.b32.xlu1 %v5110_v24, %s3909_s23  ;;  %v2933_v25 = vmul.bf16 %v5128_v12, %v4009_v14  ;;  %v3003_v14 = vmul.bf16 %v5107_v46, %v4063_v34  ;;  %v2970_v13 = vmul.bf16 %v5128_v12, %v4043_v26 }
 0xb7f   : > { %2983 = vrot.lane.b32.xlu0 %v2969_v17, %s3910_s24  ;;  %v2934_v18 = vmul.bf16 %v5133_v28, %v4015_v19  ;;  %v2968_v19 = vmul.bf16 %v5110_v24, %v4097_v45  ;;  %v2929_v29 = vsel %vm264_vm7, %v2914_v47, 0  ;;  %v3006_v4 = vmul.bf16 %v5128_v12, %v4063_v34 }
 0xb80   : > { %v2971_v27 = vmul.bf16 %v5133_v28, %v4097_v45  ;;  %v2972_v26 = vmul.bf16 %v2929_v29, %v4077_v39  ;;  %v3064_v34 = vmul.bf16 %v5110_v24, %v4136_v56  ;;  %v3007_v31 = vmul.bf16 %v5133_v28, %v4109_v48 }
 0xb81   : > { %3304 = vmatprep.subr.bf16.mxu1 %v2934_v18  ;;  %v3008_v45 = vmul.bf16 %v2929_v29, %v4087_v42  ;;  %v3065_v39 = vmul.bf16 %v5113_v20, %v4125_v53  ;;  %v3066_v41 = vmul.bf16 %v5128_v12, %v4119_v51  ;;  %v3100_v42 = vmul.bf16 %v5110_v24, %v4157_v63 }
 0xb82   : > { %3041 = vrot.lane.b32.xlu1 %v5110_v24, %s3912_s26  ;;  %3305 = vmatpush1.bf16.msra.mxu1 %v2933_v25  ;;  %v3101_v48 = vmul.bf16 %v5113_v20, %v4146_v60  ;;  %v3067_v51 = vmul.bf16 %v5133_v28, %v4136_v56  ;;  %v3068_v6 = vmul.bf16 %v2929_v29, %v4125_v53 }
 0xb83   : > { %3019 = vrot.lane.b32.xlu0 %v3005_v61, %s3911_s25  ;;  %v3102_v33 = vmul.bf16 %v5128_v12, %v4144_v59  ;;  %v3103_v38 = vmul.bf16 %v5133_v28, %v4157_v63  ;;  %v3104_v56 = vmul.bf16 %v2929_v29, %v4146_v60  ;;  %v3160_v53 = vmul.bf16 %v5110_v24, %v4203_v11 }
 0xb84   : > { %v3161_v59 = vmul.bf16 %v5113_v20, %v4189_v7  ;;  %v3159_v60 = vmul.bf16 %v5107_v46, %v4191_v8  ;;  %v3163_v63 = vmul.bf16 %v5133_v28, %v4203_v11  ;;  %v3164_v36 = vmul.bf16 %v2929_v29, %v4189_v7 }
 0xb85   : > { %v3162_v44 = vmul.bf16 %v5128_v12, %v4191_v8 }
 0xb86   : > { %2979 = vrot.lane.b32.xlu1 %v2967_v37, %s3910_s24 }
 0xb87   : > { %2949 = vrot.lane.b32.xlu0 %v5128_v12, %s3909_s23 }
 0xb8a   : > { %3015 = vrot.lane.b32.xlu1 %v3003_v14, %s3911_s25 }
 0xb8b   : > { %2951 = vrot.lane.b32.xlu0 %v5133_v28, %s3909_s23 }
 0xb8e   : > { %2981 = vrot.lane.b32.xlu1 %v2968_v19, %s3910_s24 }
 0xb8f   : > { %3047 = vrot.lane.b32.xlu0 %v5133_v28, %s3912_s26 }
 0xb92   : > { %3017 = vrot.lane.b32.xlu1 %v3004_v23, %s3911_s25 }
 0xb93   : > { %2985 = vrot.lane.b32.xlu0 %v2970_v13, %s3910_s24 }
 0xb96   : > { %2953 = vrot.lane.b32.xlu1 %v2929_v29, %s3909_s23 }
 0xb97   : > { %3021 = vrot.lane.b32.xlu0 %v3006_v4, %s3911_s25 }
 0xb9a   : > { %3049 = vrot.lane.b32.xlu1 %v2929_v29, %s3912_s26 }
 0xb9b   : > { %2987 = vrot.lane.b32.xlu0 %v2971_v27, %s3910_s24 }
 0xb9e   : > { %2989 = vrot.lane.b32.xlu1 %v2972_v26, %s3910_s24 }
 0xb9f   : > { %3045 = vrot.lane.b32.xlu0 %v5128_v12, %s3912_s26 }
 0xba2   : > { %3077 = vrot.lane.b32.xlu1 %v3064_v34, %s3913_s27 }
 0xba3   : > { %3023 = vrot.lane.b32.xlu0 %v3007_v31, %s3911_s25 }
 0xba6   : > { %3025 = vrot.lane.b32.xlu1 %v3008_v45, %s3911_s25 }
 0xba7   : > { %3079 = vrot.lane.b32.xlu0 %v3065_v39, %s3913_s27 }
 0xbaa   : > { %3075 = vrot.lane.b32.xlu1 %v3063_v5, %s3913_s27 }
 0xbab   : > { %3081 = vrot.lane.b32.xlu0 %v3066_v41, %s3913_s27 }
 0xbae   : > { %3113 = vrot.lane.b32.xlu1 %v3100_v42, %s3914_s28 }
 0xbaf   : > { %3115 = vrot.lane.b32.xlu0 %v3101_v48, %s3914_s28 }
 0xbb2   : > { %3111 = vrot.lane.b32.xlu1 %v3099_v43, %s3914_s28 }
 0xbb3   : > { %3083 = vrot.lane.b32.xlu0 %v3067_v51, %s3913_s27 }
 0xbb6   : > { %3085 = vrot.lane.b32.xlu1 %v3068_v6, %s3913_s27 }
 0xbb7   : > { %3117 = vrot.lane.b32.xlu0 %v3102_v33, %s3914_s28 }
 0xbba   : > { %3137 = vrot.lane.b32.xlu1 %v5110_v24, %s3915_s0 }
 0xbbb   : > { %3119 = vrot.lane.b32.xlu0 %v3103_v38, %s3914_s28 }
 0xbbe   : > { %3121 = vrot.lane.b32.xlu1 %v3104_v56, %s3914_s28 }
 0xbbf   : > { %3139 = vrot.lane.b32.xlu0 %v5113_v20, %s3915_s0 }
 0xbc2   : > { %3135 = vrot.lane.b32.xlu1 %v5107_v46, %s3915_s0 }
 0xbc3   : > { %3143 = vrot.lane.b32.xlu0 %v5133_v28, %s3915_s0 }
 0xbc6   : > { %3145 = vrot.lane.b32.xlu1 %v2929_v29, %s3915_s0 }
 0xbc7   : > { %3141 = vrot.lane.b32.xlu0 %v5128_v12, %s3915_s0 }
 0xbca   : > { %3173 = vrot.lane.b32.xlu1 %v3160_v53, %s3916_s6 }
 0xbcb   : > { %3175 = vrot.lane.b32.xlu0 %v3161_v59, %s3916_s6 }
 0xbce   : > { %3171 = vrot.lane.b32.xlu1 %v3159_v60, %s3916_s6 }
 0xbcf   : > { %3179 = vrot.lane.b32.xlu0 %v3163_v63, %s3916_s6 }
 0xbd2   : > { %3181 = vrot.lane.b32.xlu1 %v3164_v36, %s3916_s6 }
 0xbd3   : > { %3177 = vrot.lane.b32.xlu0 %v3162_v44, %s3916_s6 }
 0xbd6   : > { %3251 = vperm.xlu1 %3794, %v3637_v30  }
 0xbe8   : > { %v2944_v50 = vpop.permute.xlu1 %2943 }
 0xbe9   : > { %v2948_v57 = vpop.permute.xlu0 %2947 }
 0xbec   : > { %v3040_v55 = vpop.permute.xlu1 %3039 }
 0xbed   : > { %v3044_v52 = vpop.permute.xlu0 %3043 }
 0xbf0   : > { %v2946_v11 = vpop.permute.xlu1 %2945 }
 0xbf1   : > { %v2955_v3 = vsel %vm305_vm13, %v2944_v50, %v2946_v11  ;;  %v2984_v54 = vpop.permute.xlu0 %2983  ;;  %v2956_v35 = vsel %vm305_vm13, %v2946_v11, %v2948_v57 }
 0xbf2   : > { %3306 = vmatprep.subr.bf16.mxu1 %v2956_v35  ;;  %v3835_v35 = vld [vmem:[%s4182_s5 + $0xf0] ss:$12 sps:$4 sm:$0xff]  }
 0xbf3   : > { %3307 = vmatpush1.bf16.msra.mxu1 %v2955_v3 }
 0xbf4   : > { %v3042_v7 = vpop.permute.xlu1 %3041 }
 0xbf5   : > { %v3020_v8 = vpop.permute.xlu0 %3019  ;;  %v3052_v4 = vsel %vm426_vm0, %v3042_v7, %v3044_v52  ;;  %v3051_v34 = vsel %vm426_vm0, %v3040_v55, %v3042_v7  ;;  %v3838_v7 = vld [vmem:[%s4182_s5 + $0x10c] ss:$12 sps:$4 sm:$0xff]  }
 0xbf8   : > { %v2980_v62 = vpop.permute.xlu1 %2979 }
 0xbf9   : > { %v2950_v0 = vpop.permute.xlu0 %2949 }
 0xbfc   : > { %v3016_v49 = vpop.permute.xlu1 %3015 }
 0xbfd   : > { %v2952_v58 = vpop.permute.xlu0 %2951 }
 0xbfe   : > { %v2957_v20 = vsel %vm305_vm13, %v2950_v0, %v2952_v58 }
 0xc00   : > { %v2982_v2 = vpop.permute.xlu1 %2981 }
 0xc01   : > { %v3048_v9 = vpop.permute.xlu0 %3047  ;;  %v2992_v15 = vsel %vm353_vm14, %v2982_v2, %v2984_v54  ;;  %v2991_v12 = vsel %vm353_vm14, %v2980_v62, %v2982_v2 }
 0xc04   : > { %v3018_v32 = vpop.permute.xlu1 %3017 }
 0xc05   : > { %v2986_v22 = vpop.permute.xlu0 %2985  ;;  %v3028_v25 = vsel %vm401_vm15, %v3018_v32, %v3020_v8  ;;  %v3027_v14 = vsel %vm401_vm15, %v3016_v49, %v3018_v32 }
 0xc08   : > { %v2954_v46 = vpop.permute.xlu1 %2953 }
 0xc09   : > { %v3022_v10 = vpop.permute.xlu0 %3021  ;;  %v2958_v24 = vsel %vm305_vm13, %v2952_v58, %v2954_v46 }
 0xc0a   : > { %3308 = vmatprep.subr.bf16.mxu1 %v2958_v24  ;;  %v3841_v24 = vld [vmem:[%s4182_s5 + $0xf8] ss:$12 sps:$4 sm:$0xff]  }
 0xc0b   : > { %3309 = vmatpush1.bf16.msra.mxu1 %v2957_v20  ;;  %v3842_v20 = vld [vmem:[%s4182_s5 + $0x110] ss:$12 sps:$4 sm:$0xff]  }
 0xc0c   : > { %3310 = vmatprep.subr.bf16.mxu1 %v2992_v15  ;;  %v3050_v16 = vpop.permute.xlu1 %3049 }
 0xc0d   : > { %v2988_v21 = vpop.permute.xlu0 %2987  ;;  %v3054_v31 = vsel %vm426_vm0, %v3048_v9, %v3050_v16 }
 0xc0e   : > { %v2993_v18 = vsel %vm353_vm14, %v2986_v22, %v2988_v21 }
 0xc0f   : > { %3311 = vmatpush1.bf16.msra.mxu1 %v2991_v12 }
 0xc10   : > { %v2990_v47 = vpop.permute.xlu1 %2989 }
 0xc11   : > { %v3046_v17 = vpop.permute.xlu0 %3045  ;;  %v2994_v28 = vsel %vm353_vm14, %v2988_v21, %v2990_v47 }
 0xc12   : > { %3312 = vmatprep.subr.bf16.mxu1 %v2994_v28  ;;  %v3053_v5 = vsel %vm426_vm0, %v3046_v17, %v3048_v9  ;;  %v3840_v9 = vld [vmem:[%s4182_s5 + $0x108] ss:$12 sps:$4 sm:$0xff]  }
 0xc13   : > { %3313 = vmatpush1.bf16.msra.mxu1 %v2993_v18 }
 0xc14   : > { %3314 = vmatprep.subr.bf16.mxu1 %v3028_v25  ;;  %v3078_v61 = vpop.permute.xlu1 %3077 }
 0xc15   : > { %v3024_v37 = vpop.permute.xlu0 %3023 }
 0xc16   : > { %v3029_v29 = vsel %vm401_vm15, %v3022_v10, %v3024_v37 }
 0xc17   : > { %3315 = vmatpush1.bf16.msra.mxu1 %v3027_v14 }
 0xc18   : > { %v3026_v19 = vpop.permute.xlu1 %3025 }
 0xc19   : > { %v3080_v23 = vpop.permute.xlu0 %3079  ;;  %v3030_v13 = vsel %vm401_vm15, %v3024_v37, %v3026_v19 }
 0xc1a   : > { %3316 = vmatprep.subr.bf16.mxu1 %v3030_v13  ;;  %v3088_v41 = vsel %vm472_vm1, %v3078_v61, %v3080_v23 }
 0xc1b   : > { %3317 = vmatpush1.bf16.msra.mxu1 %v3029_v29 }
 0xc1c   : > { %3318 = vmatprep.subr.bf16.mxu1 %v3052_v4  ;;  %v3076_v27 = vpop.permute.xlu1 %3075 }
 0xc1d   : > { %v3082_v26 = vpop.permute.xlu0 %3081  ;;  %v3087_v43 = vsel %vm472_vm1, %v3076_v27, %v3078_v61 }
 0xc1f   : > { %3319 = vmatpush1.bf16.msra.mxu1 %v3051_v34 }
 0xc20   : > { %3320 = vmatprep.subr.bf16.mxu1 %v3054_v31  ;;  %v3114_v45 = vpop.permute.xlu1 %3113 }
 0xc21   : > { %v3116_v39 = vpop.permute.xlu0 %3115 }
 0xc22   : > { %v3124_v56 = vsel %vm518_vm2, %v3114_v45, %v3116_v39 }
 0xc23   : > { %3321 = vmatpush1.bf16.msra.mxu1 %v3053_v5 }
 0xc24   : > { %3322 = vmatprep.subr.bf16.mxu1 %v3088_v41  ;;  %v3112_v42 = vpop.permute.xlu1 %3111 }
 0xc25   : > { %v3084_v48 = vpop.permute.xlu0 %3083  ;;  %v3123_v59 = vsel %vm518_vm2, %v3112_v42, %v3114_v45 }
 0xc26   : > { %v3089_v38 = vsel %vm472_vm1, %v3082_v26, %v3084_v48 }
 0xc27   : > { %3323 = vmatpush1.bf16.msra.mxu1 %v3087_v43 }
 0xc28   : > { %v3086_v51 = vpop.permute.xlu1 %3085 }
 0xc29   : > { %v3118_v6 = vpop.permute.xlu0 %3117  ;;  %v3090_v33 = vsel %vm472_vm1, %v3084_v48, %v3086_v51 }
 0xc2a   : > { %3324 = vmatprep.subr.bf16.mxu1 %v3090_v33 }
 0xc2b   : > { %3325 = vmatpush1.bf16.msra.mxu1 %v3089_v38 }
 0xc2c   : > { %3326 = vmatprep.subr.bf16.mxu1 %v3124_v56  ;;  %v3138_v40 = vpop.permute.xlu1 %3137 }
 0xc2d   : > { %v3120_v53 = vpop.permute.xlu0 %3119 }
 0xc2e   : > { %v3125_v44 = vsel %vm518_vm2, %v3118_v6, %v3120_v53 }
 0xc2f   : > { %3327 = vmatpush1.bf16.msra.mxu1 %v3123_v59 }
 0xc30   : > { %v3122_v60 = vpop.permute.xlu1 %3121 }
 0xc31   : > { %v3140_v63 = vpop.permute.xlu0 %3139  ;;  %v3126_v36 = vsel %vm518_vm2, %v3120_v53, %v3122_v60 }
 0xc32   : > { %3328 = vmatprep.subr.bf16.mxu1 %v3126_v36  ;;  %v3148_v30 = vsel %vm543_vm3, %v3138_v40, %v3140_v63 }
 0xc33   : > { %3329 = vmatpush1.bf16.msra.mxu1 %v3125_v44 }
 0xc34   : > { %3330 = vmatprep.subr.bf16.mxu1 %v3148_v30  ;;  %v3136_v50 = vpop.permute.xlu1 %3135 }
 0xc35   : > { %v3147_v57 = vsel %vm543_vm3, %v3136_v50, %v3138_v40  ;;  %v3144_v55 = vpop.permute.xlu0 %3143 }
 0xc37   : > { %3331 = vmatpush1.bf16.msra.mxu1 %v3147_v57 }
 0xc38   : > { %v3146_v52 = vpop.permute.xlu1 %3145 }
 0xc39   : > { %v3142_v11 = vpop.permute.xlu0 %3141  ;;  %v3150_v3 = vsel %vm543_vm3, %v3144_v55, %v3146_v52 }
 0xc3a   : > { %v3149_v54 = vsel %vm543_vm3, %v3142_v11, %v3144_v55  ;;  %3332 = vmatprep.subr.bf16.mxu1 %v3150_v3 }
 0xc3b   : > { %3333 = vmatpush1.bf16.msra.mxu1 %v3149_v54 }
 0xc3c   : > { %v3174_v8 = vpop.permute.xlu1 %3173 }
 0xc3d   : > { %v3176_v62 = vpop.permute.xlu0 %3175 }
 0xc3e   : > { %3335 = vmatmul.mubr.bf16.vlgmr.msra.gmra.mrb[16].mxu1 %v3835_v35  ;;  %v3184_v0 = vsel %vm589_vm4, %v3174_v8, %v3176_v62 }
 0xc3f   : > { %3349 = vmatprep.subr.bf16.mxu1 %v3184_v0  ;;  %3342 = vmatprep.mubr.bf16.mxu1 %v3838_v7 }
 0xc40   : > { %v3172_v49 = vpop.permute.xlu1 %3171 }
 0xc41   : > { %v3183_v58 = vsel %vm589_vm4, %v3172_v49, %v3174_v8  ;;  %v3180_v2 = vpop.permute.xlu0 %3179 }
 0xc42   : > { %3350 = vmatpush1.bf16.msra.mxu1 %v3183_v58 }
 0xc44   : > { %v3182_v32 = vpop.permute.xlu1 %3181 }
 0xc45   : > { %v3178_v22 = vpop.permute.xlu0 %3177  ;;  %v3186_v46 = vsel %vm589_vm4, %v3180_v2, %v3182_v32 }
 0xc46   : > { %v3185_v10 = vsel %vm589_vm4, %v3178_v22, %v3180_v2  ;;  %3343 = vmatmul.mubr.bf16.gmra.mrb[20].mxu1 %v3840_v9  ;;  %3351 = vmatprep.subr.bf16.mxu1 %v3186_v46 }
 0xc47   : > { %3352 = vmatpush1.bf16.msra.mxu1 %v3185_v10  ;;  %3381 = vmatprep.mubr.bf16.mxu1 %v3901_v1 }
 0xc4e   : > { %3647 = vmatmul.mubr.msk.bf16.vlgmr.msra.gmra.mrb[16].mxu1 %vm489_vm11, %v3841_v24 }
 0xc4f   : > { %3389 = vmatprep.mubr.bf16.mxu1 %v3901_v1 }
 0xc55   : > { %v3252_v47 = vpop.permute.xlu1 %3251 }
 0xc56   : > { %3648 = vmatmul.mubr.msk.bf16.gmra.mrb[24].mxu1 %vm489_vm11, %v3842_v20 }
 0xd19   : > { %v3344_v15 = vpop.f32.mrb[20].mxu1 }
 0xd1a   : > { %v3345_v16 = vpop.f32.mrb[21].mxu1 }
 0xd1b   : > { %v3346_v21 = vpop.f32.mrb[22].mxu1 }
 0xd1c   : > { %v3347_v12 = vpop.f32.mrb[23].mxu1 }
 0xd21   : > { %v3383_v17 = vpop.f32.mrb[16].mxu1 }
 0xd22   : > { %v3694_v28 = vadd.f32 %v3383_v17, %v3252_v47  ;;  %v3385_v18 = vpop.f32.mrb[17].mxu1 }
 0xd23   : > { %v3695_v25 = vadd.f32 %v3385_v18, %v3252_v47  ;;  %v3387_v61 = vpop.f32.mrb[18].mxu1 }
 0xd24   : > { %v3388_v37 = vpop.f32.mrb[19].mxu1 }
 0xd25   : > { %v3398_v1 = vcombine.low %v3694_v28, %v3695_v25 }
 0xd27   : > { %3400 = vst [vmem:[%s192_s15] sm:$0x77] %v3398_v1 }
 0xd29   : > { %v3391_v14 = vpop.f32.mrb[24].mxu1 }
 0xd2a   : > { %v3392_v19 = vpop.f32.mrb[25].mxu1 }
 0xd2b   : > { %v3393_v23 = vpop.f32.mrb[26].mxu1 }
 0xd2c   : > { %v3394_v13 = vpop.f32.mrb[27].mxu1 }
 0xd2d PF: > { %s21_s20 = sadd.s32 1, %s3895_s20  }
 0xd2e   : > { %p18_p8 = scmp.ge.s32.totalorder %s21_s20, 4  }
 0xd30   :  { %20 = sbr.rel (!%p18_p8) target bundleno = 16 (0x10), region = 79 }
 0xd37   :  { %3422 = vsyncpa [#allocation6], 1 }
 0xd38   :  { %3424 = vsyncpa [#allocation6 + $0x1], 1 }

</bundles_post_ra>
